<compile_context>
chip_gen: v6e
topology: v6e:2x2x1
jax: 0.10.0
libtpu: 0.0.40
codegen_flags: <defaults>
</compile_context>

<pallas_src>
import jax
import jax.numpy as jnp
from jax.experimental import pallas as pl
from jax.experimental.pallas import tpu as pltpu

D_IN = 3 * 28 * 28          # 2352
H = 512
D_OUT = 1
TB_MAX = 512                # batch-tile rows for large batches


def _round_up(x, m):
    return (x + m - 1) // m * m


def _choose_batch_tile(batch):
    """Pad batch to a bf16-friendly multiple of 16 and pick the tile size.

    Large batches -> TB_MAX tiles; mid-size batches -> ~2 tiles (so the
    'parallel' batch axis can shard across both TensorCores on v7x); tiny
    batches -> a single 16-row tile. Keeps pad waste small instead of rounding
    everything up to a full TB_MAX tile.
    """
    b16 = _round_up(max(batch, 1), 16)
    if b16 >= 2 * TB_MAX:
        tb = TB_MAX
    elif b16 > 16:
        tb = min(TB_MAX, _round_up((b16 + 1) // 2, 16))
    else:
        tb = b16
    return _round_up(b16, tb), tb


def _mlp_kernel(x_ref, w1_ref, b1_ref, w2_ref, b2_ref, w3_ref, b3_ref, o_ref):
    # fc1 + relu   (bf16 x bf16 -> f32 accumulate on the MXU)
    h1 = jnp.dot(x_ref[...], w1_ref[...], preferred_element_type=jnp.float32)
    h1 = jnp.maximum(h1 + b1_ref[...], 0.0)

    # fc2 + relu
    h2 = jnp.dot(h1.astype(jnp.bfloat16), w2_ref[...],
                 preferred_element_type=jnp.float32)
    h2 = jnp.maximum(h2 + b2_ref[...], 0.0)

    # fc3 (out_features == 1): VPU multiply + cross-lane sum instead of an
    # MXU matmul against a 1-wide RHS.
    logits = jnp.sum(h2 * w3_ref[...], axis=-1, keepdims=True) + b3_ref[...]
    # TODO(synk): lane-dense (1, tb) output store (XLU relayout) left out; the
    # (tb, 1) column store is a modest cost and keeps lowering simple.
    o_ref[...] = logits.astype(o_ref.dtype)


def prepare_params(params):
    """One-time weight preparation (bf16 cast, bias reshape).

    Hoisted out of net_forward so no pad/cast pass over ~5 MiB of weights runs
    on every forward call.
    """
    w1, b1, w2, b2, w3, b3 = params
    return (
        jnp.asarray(w1, jnp.bfloat16),                   # (D_IN, H)
        jnp.asarray(b1, jnp.float32).reshape(1, H),
        jnp.asarray(w2, jnp.bfloat16),                   # (H, H)
        jnp.asarray(b2, jnp.float32).reshape(1, H),
        jnp.asarray(w3, jnp.float32).reshape(1, H),      # (H, 1) -> row (1, H)
        jnp.asarray(b3, jnp.float32).reshape(1, D_OUT),
    )


def net_forward(x_nchw, prepped):
    """x_nchw: (B, 3, 28, 28) float32 -> logits (B,) float32."""
    w1b, b1, w2b, b2, w3r, b3 = prepped
    B = x_nchw.shape[0]

    # torch .view(-1, 3*28*28): row-major flatten.
    x2d = x_nchw.reshape(B, D_IN)

    b_pad, tb = _choose_batch_tile(B)

    # Single fused batch-pad + bf16-cast pass; skipped entirely when B already
    # matches the padded size. No K padding (block spans the full 2352 dim).
    if b_pad == B:
        x_in = x2d.astype(jnp.bfloat16)
    else:
        x_in = jnp.zeros((b_pad, D_IN), jnp.bfloat16).at[:B].set(
            x2d.astype(jnp.bfloat16))

    grid = (b_pad // tb,)

    out = pl.pallas_call(
        _mlp_kernel,
        out_shape=jax.ShapeDtypeStruct((b_pad, D_OUT), jnp.float32),
        grid=grid,
        in_specs=[
            pl.BlockSpec((tb, D_IN), lambda i: (i, 0)),   # x tile (pipelined)
            pl.BlockSpec((D_IN, H), lambda i: (0, 0)),    # w1 (VMEM resident)
            pl.BlockSpec((1, H), lambda i: (0, 0)),       # b1
            pl.BlockSpec((H, H), lambda i: (0, 0)),       # w2 (VMEM resident)
            pl.BlockSpec((1, H), lambda i: (0, 0)),       # b2
            pl.BlockSpec((1, H), lambda i: (0, 0)),       # w3 row
            pl.BlockSpec((1, D_OUT), lambda i: (0, 0)),   # b3
        ],
        out_specs=pl.BlockSpec((tb, D_OUT), lambda i: (i, 0)),
        compiler_params=pltpu.CompilerParams(
            dimension_semantics=("parallel",),
            vmem_limit_bytes=32 << 20,
        ),
    )(x_in, w1b, b1, w2b, b2, w3r, b3)

    return out[:B, 0]  # torch .flatten(); padded rows dropped


def init_params(key):
    """Deterministic init matching nn.Linear shapes (kaiming-uniform-ish)."""
    ks = jax.random.split(key, 6)

    def linear(kw, kb, fan_in, fan_out):
        bound = 1.0 / jnp.sqrt(fan_in)
        w = jax.random.uniform(kw, (fan_in, fan_out), jnp.float32, -bound, bound)
        b = jax.random.uniform(kb, (1, fan_out), jnp.float32, -bound, bound)
        return w, b

    w1, b1 = linear(ks[0], ks[1], D_IN, H)
    w2, b2 = linear(ks[2], ks[3], H, H)
    w3, b3 = linear(ks[4], ks[5], H, D_OUT)
    return (w1, b1, w2, b2, w3, b3)


if __name__ == "__main__":
    key = jax.random.PRNGKey(0)
    k_params, k_x = jax.random.split(key)

    params = init_params(k_params)
    prepped = prepare_params(params)          # one-time weight prep

    B = 2
    x = jax.random.normal(k_x, (B, 3, 28, 28), dtype=jnp.float32)

    fwd = jax.jit(net_forward)
    logits = fwd(x, prepped)
    jax.block_until_ready(logits)

    assert logits.shape == (B,), logits.shape
    assert logits.dtype == jnp.float32

    # Pure-JAX reference using the same bf16-weight / f32-accumulation recipe.
    w1, b1, w2, b2, w3, b3 = params
    x2d = x.reshape(B, D_IN)
    h = jnp.dot(x2d.astype(jnp.bfloat16), w1.astype(jnp.bfloat16),
                preferred_element_type=jnp.float32)
    h = jnp.maximum(h + b1, 0.0)
    h = jnp.dot(h.astype(jnp.bfloat16), w2.astype(jnp.bfloat16),
                preferred_element_type=jnp.float32)
    h = jnp.maximum(h + b2, 0.0)
    ref = (h @ w3 + b3).reshape(-1)
    assert jnp.allclose(logits, ref, atol=2e-2, rtol=2e-2), (
        jnp.max(jnp.abs(logits - ref)))

    print("KERNEL_OK")
</pallas_src>

<mosaic_0001>
module attributes {stable_mosaic.version = 11 : i64} {
  func.func @_mlp_kernel(%arg0: i32, %arg1: memref<16x2352xbf16, #tpu.memory_space<vmem>>, %arg2: memref<2352x512xbf16, #tpu.memory_space<vmem>>, %arg3: memref<1x512xf32, #tpu.memory_space<vmem>>, %arg4: memref<512x512xbf16, #tpu.memory_space<vmem>>, %arg5: memref<1x512xf32, #tpu.memory_space<vmem>>, %arg6: memref<1x512xf32, #tpu.memory_space<vmem>>, %arg7: memref<1x1xf32, #tpu.memory_space<vmem>>, %arg8: memref<16x1xf32, #tpu.memory_space<vmem>>) attributes {dimension_semantics = [#tpu.dimension_semantics<parallel>], iteration_bounds = array<i64: 1>, scalar_prefetch = 0 : i64, scratch_operands = 0 : i64, tpu.core_type = #tpu.core_type<tc>, window_params = [{transform_indices = @transform_0, window_bounds = array<i64: 16, 2352>}, {pipeline_mode = #tpu.pipeline_mode<synchronous>, transform_indices = @transform_1, window_bounds = array<i64: 2352, 512>}, {pipeline_mode = #tpu.pipeline_mode<synchronous>, transform_indices = @transform_2, window_bounds = array<i64: 1, 512>}, {pipeline_mode = #tpu.pipeline_mode<synchronous>, transform_indices = @transform_3, window_bounds = array<i64: 512, 512>}, {pipeline_mode = #tpu.pipeline_mode<synchronous>, transform_indices = @transform_4, window_bounds = array<i64: 1, 512>}, {pipeline_mode = #tpu.pipeline_mode<synchronous>, transform_indices = @transform_5, window_bounds = array<i64: 1, 512>}, {pipeline_mode = #tpu.pipeline_mode<synchronous>, transform_indices = @transform_6, window_bounds = array<i64: 1, 1>}, {transform_indices = @transform_7, window_bounds = array<i64: 16, 1>}]} {
    %c0 = arith.constant 0 : index
    %c0_0 = arith.constant 0 : index
    %0 = vector.load %arg1[%c0, %c0_0] : memref<16x2352xbf16, #tpu.memory_space<vmem>>, vector<16x2352xbf16>
    %c0_1 = arith.constant 0 : index
    %c0_2 = arith.constant 0 : index
    %1 = vector.load %arg2[%c0_1, %c0_2] : memref<2352x512xbf16, #tpu.memory_space<vmem>>, vector<2352x512xbf16>
    %cst = arith.constant dense<0.000000e+00> : vector<16x512xf32>
    %2 = tpu.matmul %0, %1, %cst {dimension_numbers = #tpu.dot_dimension_numbers<[1], [0], [0], [1], [0, 0, 1, 1], [], []>} : vector<16x2352xbf16>, vector<2352x512xbf16>, vector<16x512xf32> -> vector<16x512xf32>
    %c0_3 = arith.constant 0 : index
    %c0_4 = arith.constant 0 : index
    %3 = vector.load %arg3[%c0_3, %c0_4] : memref<1x512xf32, #tpu.memory_space<vmem>>, vector<1x512xf32>
    %4 = vector.broadcast %3 : vector<1x512xf32> to vector<16x512xf32>
    %5 = arith.addf %2, %4 : vector<16x512xf32>
    %cst_5 = arith.constant 0.000000e+00 : f32
    %6 = vector.broadcast %cst_5 : f32 to vector<16x512xf32>
    %7 = arith.maximumf %5, %6 : vector<16x512xf32>
    %8 = arith.truncf %7 : vector<16x512xf32> to vector<16x512xbf16>
    %c0_6 = arith.constant 0 : index
    %c0_7 = arith.constant 0 : index
    %9 = vector.load %arg4[%c0_6, %c0_7] : memref<512x512xbf16, #tpu.memory_space<vmem>>, vector<512x512xbf16>
    %cst_8 = arith.constant dense<0.000000e+00> : vector<16x512xf32>
    %10 = tpu.matmul %8, %9, %cst_8 {dimension_numbers = #tpu.dot_dimension_numbers<[1], [0], [0], [1], [0, 0, 1, 1], [], []>} : vector<16x512xbf16>, vector<512x512xbf16>, vector<16x512xf32> -> vector<16x512xf32>
    %c0_9 = arith.constant 0 : index
    %c0_10 = arith.constant 0 : index
    %11 = vector.load %arg5[%c0_9, %c0_10] : memref<1x512xf32, #tpu.memory_space<vmem>>, vector<1x512xf32>
    %12 = vector.broadcast %11 : vector<1x512xf32> to vector<16x512xf32>
    %13 = arith.addf %10, %12 : vector<16x512xf32>
    %cst_11 = arith.constant 0.000000e+00 : f32
    %14 = vector.broadcast %cst_11 : f32 to vector<16x512xf32>
    %15 = arith.maximumf %13, %14 : vector<16x512xf32>
    %c0_12 = arith.constant 0 : index
    %c0_13 = arith.constant 0 : index
    %16 = vector.load %arg6[%c0_12, %c0_13] : memref<1x512xf32, #tpu.memory_space<vmem>>, vector<1x512xf32>
    %17 = vector.broadcast %16 : vector<1x512xf32> to vector<16x512xf32>
    %18 = arith.mulf %15, %17 : vector<16x512xf32>
    %cst_14 = arith.constant dense<0.000000e+00> : vector<16xf32>
    %19 = vector.multi_reduction <add>, %18, %cst_14 [1] : vector<16x512xf32> to vector<16xf32>
    %20 = vector.shape_cast %19 : vector<16xf32> to vector<16x1xf32>
    %c0_15 = arith.constant 0 : index
    %c0_16 = arith.constant 0 : index
    %21 = vector.load %arg7[%c0_15, %c0_16] : memref<1x1xf32, #tpu.memory_space<vmem>>, vector<1x1xf32>
    %22 = vector.broadcast %21 : vector<1x1xf32> to vector<16x1xf32>
    %23 = arith.addf %20, %22 : vector<16x1xf32>
    %c0_17 = arith.constant 0 : index
    %c0_18 = arith.constant 0 : index
    %24 = vector.load %arg8[%c0_17, %c0_18] : memref<16x1xf32, #tpu.memory_space<vmem>>, vector<16x1xf32>
    tpu.vector_store %arg8[%c0_17, %c0_18], %23 {strides = array<i32>} : memref<16x1xf32, #tpu.memory_space<vmem>>, vector<16x1xf32>,
    return
  }
  func.func @transform_0(%arg0: i32) -> (i32, i32) {
    %c0_i32 = arith.constant 0 : i32
    %c0_i32_0 = arith.constant 0 : i32
    return %arg0, %c0_i32 : i32, i32
  }
  func.func @transform_1(%arg0: i32) -> (i32, i32) {
    %c0_i32 = arith.constant 0 : i32
    %c0_i32_0 = arith.constant 0 : i32
    %c0_i32_1 = arith.constant 0 : i32
    return %c0_i32, %c0_i32_0 : i32, i32
  }
  func.func @transform_2(%arg0: i32) -> (i32, i32) {
    %c0_i32 = arith.constant 0 : i32
    %c0_i32_0 = arith.constant 0 : i32
    %c0_i32_1 = arith.constant 0 : i32
    return %c0_i32, %c0_i32_0 : i32, i32
  }
  func.func @transform_3(%arg0: i32) -> (i32, i32) {
    %c0_i32 = arith.constant 0 : i32
    %c0_i32_0 = arith.constant 0 : i32
    %c0_i32_1 = arith.constant 0 : i32
    return %c0_i32, %c0_i32_0 : i32, i32
  }
  func.func @transform_4(%arg0: i32) -> (i32, i32) {
    %c0_i32 = arith.constant 0 : i32
    %c0_i32_0 = arith.constant 0 : i32
    %c0_i32_1 = arith.constant 0 : i32
    return %c0_i32, %c0_i32_0 : i32, i32
  }
  func.func @transform_5(%arg0: i32) -> (i32, i32) {
    %c0_i32 = arith.constant 0 : i32
    %c0_i32_0 = arith.constant 0 : i32
    %c0_i32_1 = arith.constant 0 : i32
    return %c0_i32, %c0_i32_0 : i32, i32
  }
  func.func @transform_6(%arg0: i32) -> (i32, i32) {
    %c0_i32 = arith.constant 0 : i32
    %c0_i32_0 = arith.constant 0 : i32
    %c0_i32_1 = arith.constant 0 : i32
    return %c0_i32, %c0_i32_0 : i32, i32
  }
  func.func @transform_7(%arg0: i32) -> (i32, i32) {
    %c0_i32 = arith.constant 0 : i32
    %c0_i32_0 = arith.constant 0 : i32
    return %arg0, %c0_i32 : i32, i32
  }
}

</mosaic_0001>

<bundles_post_ra>
// kernel: net_forward.1
= control target key start
LH: loop header
LB: loop body
LE: loop exit
PB: predicated region body
PF: predicated region fallthrough
CT: control target
= control target key end

     0   :  { %s7946_s0 = inlined_call_operand.vmem [shape: bf16[16,2352], index: 0, kind: input, shape index: {}]   ;;  %s7947_s1 = inlined_call_operand.hbm [shape: bf16[2352,512], index: 1, kind: input, shape index: {}]   ;;  %s7948_s2 = inlined_call_operand.hbm [shape: f32[1,512], index: 2, kind: input, shape index: {}]   ;;  %s7949_s3 = inlined_call_operand.hbm [shape: bf16[512,512], index: 3, kind: input, shape index: {}]   ;;  %s7950_s4 = inlined_call_operand.hbm [shape: f32[1,512], index: 4, kind: input, shape index: {}]   ;;  %s7951_s5 = inlined_call_operand.hbm [shape: f32[1,512], index: 5, kind: input, shape index: {}]   ;;  %s7952_s6 = inlined_call_operand.<no memory space> [shape: f32[1,1], index: 6, kind: input, shape index: {}]   ;;  %s7953_s7 = inlined_call_operand.vmem [shape: f32[16,1], index: 7, kind: output, shape index: {}]  }
   0x1   :  { %v12_v0 = vstv %s7952_s6 }
   0x2   :  { %13 = vst [vmem:[#allocation2] sm:$0x1] %v12_v0 }
   0x3   :  { %14 = vsyncpa [#allocation4], 0 }
   0x4   :  { %15 = vsyncpa [#allocation6], 0 }
   0x5   :  { %16 = vsyncpa [#allocation9], 0  ;;  %s7635_s26 = smov [#allocation5]   ;;  %s7636_s28 = smov [#allocation8]  }
   0x6   :  { %s37_s27 = sshll.u32 %s7635_s26, 4  ;;  %s59_s29 = sshll.u32 %s7636_s28, 4  ;;  %s38_s27 = int_to_ptr.vmem [resolvable:$true] %s37_s27  ;;  %s60_s29 = int_to_ptr.vmem [resolvable:$true] %s59_s29 }
   0x7   :  { %s7537_s30 = scalar_lea.vmem %s38_s27, 64  ;;  %p7542_p1 = scmp.lt.s32.totalorder %s38_s27, %s38_s27 }
   0x8   :  { %p7538_p0 = scmp.ne.s32.totalorder %s38_s27, %s7537_s30  ;;  %p7543_p2 = scmp.lt.s32.totalorder %s7537_s30, %s7537_s30 }
   0xa   :  { %p7544_p3 = por %p7543_p2, %p7542_p1 }
   0xc   :  { %p7545_p4 = pnand %p7544_p3, %p7538_p0 }
   0xe   :  { %7548 = shalt.err (!%p7545_p4)
}
   0xf   :  { %40 = dma.hbm_to_vmem [thread:$0]  %s7948_s2, 64, %s38_s27, [#allocation6]  }
  0x10   :  { %s7557_s6 = scalar_lea.vmem %s60_s29, 64  ;;  %p7562_p6 = scmp.lt.s32.totalorder %s60_s29, %s60_s29 }
  0x11   :  { %p7558_p5 = scmp.ne.s32.totalorder %s60_s29, %s7557_s6  ;;  %p7563_p7 = scmp.lt.s32.totalorder %s7557_s6, %s7557_s6 }
  0x13   :  { %p7564_p8 = por %p7563_p7, %p7562_p6 }
  0x15   :  { %p7565_p9 = pnand %p7564_p8, %p7558_p5 }
  0x17   :  { %7568 = shalt.err (!%p7565_p9)
}
  0x18   :  { %62 = dma.hbm_to_vmem [thread:$0]  %s7950_s4, 64, %s60_s29, [#allocation9]  }
  0x19   :  { %s7637_s12 = smov [#allocation3]  }
  0x1a   :  { %s24_s13 = sshll.u32 %s7637_s12, 4  ;;  %s25_s13 = int_to_ptr.vmem [resolvable:$true] %s24_s13 }
  0x1b   :  { %s7577_s14 = scalar_lea.vmem %s25_s13, 75264  ;;  %p7582_p11 = scmp.lt.s32.totalorder %s25_s13, %s25_s13 }
  0x1c   :  { %p7578_p10 = scmp.ne.s32.totalorder %s25_s13, %s7577_s14  ;;  %p7583_p12 = scmp.lt.s32.totalorder %s7577_s14, %s7577_s14 }
  0x1e   :  { %p7584_p13 = por %p7583_p12, %p7582_p11 }
  0x20   :  { %p7585_p0 = pnand %p7584_p13, %p7578_p10 }
  0x22   :  { %7588 = shalt.err (!%p7585_p0)
}
  0x23   :  { %s7638_s2 = smov 256   ;;  %s7639_s15 = smov 16  }
  0x24   :  { %30 = dma.hbm_to_vmem [thread:$0]  %s7947_s1, 75264, %s25_s13, [#allocation4], %s7638_s2, %s7638_s2, %s7639_s15  }
  0x25   :  { %s7640_s18 = smov [#allocation7]   ;;  %s7641_s4 = smov [#allocation10]  }
  0x26   :  { %s46_s19 = sshll.u32 %s7640_s18, 4  ;;  %s69_s20 = sshll.u32 %s7641_s4, 4  ;;  %s47_s19 = int_to_ptr.vmem [resolvable:$true] %s46_s19  ;;  %s70_s20 = int_to_ptr.vmem [resolvable:$true] %s69_s20 }
  0x27   :  { %s7597_s21 = scalar_lea.vmem %s47_s19, 16384  ;;  %p7602_p2 = scmp.lt.s32.totalorder %s47_s19, %s47_s19 }
  0x28   :  { %p7598_p1 = scmp.ne.s32.totalorder %s47_s19, %s7597_s21  ;;  %p7603_p3 = scmp.lt.s32.totalorder %s7597_s21, %s7597_s21 }
  0x2a   :  { %p7604_p4 = por %p7603_p3, %p7602_p2 }
  0x2c   :  { %p7605_p5 = pnand %p7604_p4, %p7598_p1 }
  0x2e   :  { %7608 = shalt.err (!%p7605_p5)
}
  0x2f   :  { %52 = dma.hbm_to_vmem [thread:$0]  %s7949_s3, 16384, %s47_s19, [#allocation6], %s7638_s2, %s7638_s2, %s7639_s15  }
  0x30   :  { %s7617_s24 = scalar_lea.vmem %s70_s20, 64  ;;  %p7622_p7 = scmp.lt.s32.totalorder %s70_s20, %s70_s20 }
  0x31   :  { %p7618_p6 = scmp.ne.s32.totalorder %s70_s20, %s7617_s24  ;;  %p7623_p8 = scmp.lt.s32.totalorder %s7617_s24, %s7617_s24 }
  0x33   :  { %p7624_p9 = por %p7623_p8, %p7622_p7 }
  0x35   :  { %p7625_p10 = pnand %p7624_p9, %p7618_p6 }
  0x37   :  { %7628 = shalt.err (!%p7625_p10)
}
  0x38   :  { %72 = dma.hbm_to_vmem [thread:$0]  %s7951_s5, 64, %s70_s20, [#allocation9]  }
  0x39   :  { %7629 = dma.done.wait [#allocation4], 75264  }
  0x3a   :  { %7630 = vsyncadd [#allocation4], 4294892032 }
  0x3b   :  { %7631 = dma.done.wait [#allocation6], 16448  }
  0x3c   :  { %7632 = vsyncadd [#allocation6], 4294950848 }
  0x3d   :  { %7633 = dma.done.wait [#allocation9], 128  }
  0x3e   :  { %7634 = vsyncadd [#allocation9], 4294967168  ;;  %v6407_v1 = vld [vmem:[#allocation3 + $0xe4] ss:$16 sps:$4 sm:$0xff]   ;;  %v6411_v3 = vld [vmem:[#allocation3 + $0xe0] ss:$16 sps:$4 sm:$0xff]  }
  0x3f   :  { %v6409_v2 = vld [vmem:[#allocation3 + $0x2e4] ss:$16 sps:$4 sm:$0xff]   ;;  %3760 = vmatprep.subr.bf16.mxu0 %v6407_v1  ;;  %v6412_v4 = vld [vmem:[#allocation3 + $0x2e0] ss:$16 sps:$4 sm:$0xff]   ;;  %vm3756_vm0 = vcmask 392192   ;;  %vm5651_vm1 = vcmask 7168  }
  0x40   :  { %3803 = vmatprep.subr.bf16.mxu1 %v6409_v2  ;;  %v6413_v5 = vld [vmem:[#allocation3 + $0xc4] ss:$16 sps:$4 sm:$0xff]   ;;  %3761 = vmatpush1.bf16.msra.mxu0 %v6411_v3  ;;  %v6417_v7 = vld [vmem:[#allocation3 + $0xc0] ss:$16 sps:$4 sm:$0xff]  }
  0x41   :  { %3804 = vmatpush1.bf16.msra.mxu1 %v6412_v4  ;;  %v6415_v6 = vld [vmem:[#allocation3 + $0x2c4] ss:$16 sps:$4 sm:$0xff]   ;;  %3762 = vmatprep.subr.bf16.mxu0 %v6413_v5  ;;  %v6418_v8 = vld [vmem:[#allocation3 + $0x2c0] ss:$16 sps:$4 sm:$0xff]  }
  0x42   :  { %3805 = vmatprep.subr.bf16.mxu1 %v6415_v6  ;;  %v6419_v9 = vld [vmem:[#allocation3 + $0xa4] ss:$16 sps:$4 sm:$0xff]   ;;  %v6423_v11 = vld [vmem:[#allocation3 + $0xa0] ss:$16 sps:$4 sm:$0xff]  }
  0x43   :  { %v6421_v10 = vld [vmem:[#allocation3 + $0x2a4] ss:$16 sps:$4 sm:$0xff]   ;;  %v6424_v12 = vld [vmem:[#allocation3 + $0x2a0] ss:$16 sps:$4 sm:$0xff]  }
  0x44   :  { %3763 = vmatpush1.bf16.msra.mxu0 %v6417_v7  ;;  %v6425_v13 = vld [vmem:[#allocation3 + $0x84] ss:$16 sps:$4 sm:$0xff]   ;;  %v6429_v15 = vld [vmem:[#allocation3 + $0x80] ss:$16 sps:$4 sm:$0xff]  }
  0x45   :  { %3806 = vmatpush1.bf16.msra.mxu1 %v6418_v8  ;;  %3764 = vmatprep.subr.bf16.mxu0 %v6419_v9  ;;  %v6427_v14 = vld [vmem:[#allocation3 + $0x284] ss:$16 sps:$4 sm:$0xff]   ;;  %v6430_v16 = vld [vmem:[#allocation3 + $0x280] ss:$16 sps:$4 sm:$0xff]  }
  0x46   :  { %3807 = vmatprep.subr.bf16.mxu1 %v6421_v10  ;;  %v6431_v17 = vld [vmem:[#allocation3 + $0x64] ss:$16 sps:$4 sm:$0xff]   ;;  %v6435_v19 = vld [vmem:[#allocation3 + $0x60] ss:$16 sps:$4 sm:$0xff]  }
  0x47   :  { %v6433_v18 = vld [vmem:[#allocation3 + $0x264] ss:$16 sps:$4 sm:$0xff]   ;;  %v6436_v20 = vld [vmem:[#allocation3 + $0x260] ss:$16 sps:$4 sm:$0xff]  }
  0x48   :  { %3765 = vmatpush1.bf16.msra.mxu0 %v6423_v11  ;;  %v6437_v21 = vld [vmem:[#allocation3 + $0x44] ss:$16 sps:$4 sm:$0xff]   ;;  %v6441_v23 = vld [vmem:[#allocation3 + $0x40] ss:$16 sps:$4 sm:$0xff]  }
  0x49   :  { %3808 = vmatpush1.bf16.msra.mxu1 %v6424_v12  ;;  %3766 = vmatprep.subr.bf16.mxu0 %v6425_v13  ;;  %v6439_v22 = vld [vmem:[#allocation3 + $0x244] ss:$16 sps:$4 sm:$0xff]   ;;  %v6442_v24 = vld [vmem:[#allocation3 + $0x240] ss:$16 sps:$4 sm:$0xff]  }
  0x4a   :  { %3809 = vmatprep.subr.bf16.mxu1 %v6427_v14  ;;  %v6443_v25 = vld [vmem:[#allocation3 + $0x24] ss:$16 sps:$4 sm:$0xff]   ;;  %v6447_v27 = vld [vmem:[#allocation3 + $0x20] ss:$16 sps:$4 sm:$0xff]  }
  0x4b   :  { %v6445_v26 = vld [vmem:[#allocation3 + $0x224] ss:$16 sps:$4 sm:$0xff]   ;;  %v6448_v28 = vld [vmem:[#allocation3 + $0x220] ss:$16 sps:$4 sm:$0xff]  }
  0x4c   :  { %3767 = vmatpush1.bf16.msra.mxu0 %v6429_v15  ;;  %v6449_v29 = vld [vmem:[#allocation3 + $0x4] ss:$16 sps:$4 sm:$0xff]   ;;  %v6453_v31 = vld [vmem:[#allocation3] ss:$16 sps:$4 sm:$0xff]  }
  0x4d   :  { %3810 = vmatpush1.bf16.msra.mxu1 %v6430_v16  ;;  %3768 = vmatprep.subr.bf16.mxu0 %v6431_v17  ;;  %v6451_v30 = vld [vmem:[#allocation3 + $0x204] ss:$16 sps:$4 sm:$0xff]   ;;  %v6454_v32 = vld [vmem:[#allocation3 + $0x200] ss:$16 sps:$4 sm:$0xff]  }
  0x4e   :  { %3811 = vmatprep.subr.bf16.mxu1 %v6433_v18  ;;  %v6455_v33 = vld [vmem:[#allocation3 + $0x1e4] ss:$16 sps:$4 sm:$0xff]   ;;  %v6459_v35 = vld [vmem:[#allocation3 + $0x1e0] ss:$16 sps:$4 sm:$0xff]  }
  0x4f   :  { %v6457_v34 = vld [vmem:[#allocation3 + $0x3e4] ss:$16 sps:$4 sm:$0xff]   ;;  %v6460_v36 = vld [vmem:[#allocation3 + $0x3e0] ss:$16 sps:$4 sm:$0xff]  }
  0x50   :  { %3769 = vmatpush1.bf16.msra.mxu0 %v6435_v19  ;;  %v6461_v37 = vld [vmem:[#allocation3 + $0x1c4] ss:$16 sps:$4 sm:$0xff]   ;;  %v6465_v39 = vld [vmem:[#allocation3 + $0x1c0] ss:$16 sps:$4 sm:$0xff]  }
  0x51   :  { %3812 = vmatpush1.bf16.msra.mxu1 %v6436_v20  ;;  %3770 = vmatprep.subr.bf16.mxu0 %v6437_v21  ;;  %v6463_v38 = vld [vmem:[#allocation3 + $0x3c4] ss:$16 sps:$4 sm:$0xff]   ;;  %v6466_v40 = vld [vmem:[#allocation3 + $0x3c0] ss:$16 sps:$4 sm:$0xff]  }
  0x52   :  { %3813 = vmatprep.subr.bf16.mxu1 %v6439_v22  ;;  %v6467_v41 = vld [vmem:[#allocation3 + $0x1a4] ss:$16 sps:$4 sm:$0xff]   ;;  %v6471_v43 = vld [vmem:[#allocation3 + $0x1a0] ss:$16 sps:$4 sm:$0xff]  }
  0x53   :  { %v6469_v42 = vld [vmem:[#allocation3 + $0x3a4] ss:$16 sps:$4 sm:$0xff]   ;;  %v6472_v44 = vld [vmem:[#allocation3 + $0x3a0] ss:$16 sps:$4 sm:$0xff]  }
  0x54   :  { %3771 = vmatpush1.bf16.msra.mxu0 %v6441_v23  ;;  %v6473_v45 = vld [vmem:[#allocation3 + $0x184] ss:$16 sps:$4 sm:$0xff]   ;;  %v6477_v47 = vld [vmem:[#allocation3 + $0x180] ss:$16 sps:$4 sm:$0xff]  }
  0x55   :  { %3814 = vmatpush1.bf16.msra.mxu1 %v6442_v24  ;;  %3772 = vmatprep.subr.bf16.mxu0 %v6443_v25  ;;  %v6475_v46 = vld [vmem:[#allocation3 + $0x384] ss:$16 sps:$4 sm:$0xff]   ;;  %v6478_v48 = vld [vmem:[#allocation3 + $0x380] ss:$16 sps:$4 sm:$0xff]  }
  0x56   :  { %3815 = vmatprep.subr.bf16.mxu1 %v6445_v26  ;;  %v6479_v49 = vld [vmem:[#allocation3 + $0x164] ss:$16 sps:$4 sm:$0xff]   ;;  %v6483_v53 = vld [vmem:[#allocation3 + $0x160] ss:$16 sps:$4 sm:$0xff]  }
  0x57   :  { %v6505_v50 = vld [vmem:[%s7946_s0 + $0x4] ss:$76 sps:$4 sm:$0xff]   ;;  %v6508_v52 = vld [vmem:[%s7946_s0 + $0xc] ss:$76 sps:$4 sm:$0xff]   ;;  %v6506_v6 = vld [vmem:[%s7946_s0 + $0x8] ss:$76 sps:$4 sm:$0xff]  }
  0x58   :  { %3773 = vmatpush1.bf16.msra.mxu0 %v6447_v27  ;;  %v6481_v51 = vld [vmem:[#allocation3 + $0x364] ss:$16 sps:$4 sm:$0xff]   ;;  %3792 = vmatprep.mubr.bf16.mxu0 %v6505_v50  ;;  %v6484_v54 = vld [vmem:[#allocation3 + $0x360] ss:$16 sps:$4 sm:$0xff]  }
  0x59   :  { %3816 = vmatpush1.bf16.msra.mxu1 %v6448_v28  ;;  %3774 = vmatprep.subr.bf16.mxu0 %v6449_v29  ;;  %v6485_v55 = vld [vmem:[#allocation3 + $0x144] ss:$16 sps:$4 sm:$0xff]   ;;  %v6489_v57 = vld [vmem:[#allocation3 + $0x140] ss:$16 sps:$4 sm:$0xff]  }
  0x5a   :  { %3817 = vmatprep.subr.bf16.mxu1 %v6451_v30  ;;  %3835 = vmatprep.mubr.bf16.mxu1 %v6508_v52  ;;  %v6487_v56 = vld [vmem:[#allocation3 + $0x344] ss:$16 sps:$4 sm:$0xff]   ;;  %v6490_v58 = vld [vmem:[#allocation3 + $0x340] ss:$16 sps:$4 sm:$0xff]  }
  0x5b   :  { %v6491_v59 = vld [vmem:[#allocation3 + $0x124] ss:$16 sps:$4 sm:$0xff]   ;;  %v6495_v61 = vld [vmem:[#allocation3 + $0x120] ss:$16 sps:$4 sm:$0xff]  }
  0x5c   :  { %3775 = vmatpush1.bf16.msra.mxu0 %v6453_v31  ;;  %v6493_v60 = vld [vmem:[#allocation3 + $0x324] ss:$16 sps:$4 sm:$0xff]   ;;  %v6496_v62 = vld [vmem:[#allocation3 + $0x320] ss:$16 sps:$4 sm:$0xff]  }
  0x5d   :  { %3818 = vmatpush1.bf16.msra.mxu1 %v6454_v32  ;;  %3776 = vmatprep.subr.bf16.mxu0 %v6455_v33  ;;  %v6497_v63 = vld [vmem:[#allocation3 + $0x104] ss:$16 sps:$4 sm:$0xff]   ;;  %v6501_v1 = vld [vmem:[#allocation3 + $0x100] ss:$16 sps:$4 sm:$0xff]  }
  0x5e   :  { %3819 = vmatprep.subr.bf16.mxu1 %v6457_v34  ;;  %v6499_v0 = vld [vmem:[#allocation3 + $0x304] ss:$16 sps:$4 sm:$0xff]   ;;  %v6502_v2 = vld [vmem:[#allocation3 + $0x300] ss:$16 sps:$4 sm:$0xff]  }
  0x5f   :  { %v6511_v3 = vld [vmem:[#allocation3 + $0x4e4] ss:$16 sps:$4 sm:$0xff]   ;;  %v6503_v5 = vld [vmem:[%s7946_s0] ss:$76 sps:$4 sm:$0xff]  }
  0x60   :  { %3777 = vmatpush2.bf16.msra.mxu0 %v6459_v35  ;;  %v6514_v4 = vld [vmem:[#allocation3 + $0x6e4] ss:$16 sps:$4 sm:$0xff]   ;;  %v6509_v7 = vld [vmem:[#allocation3 + $0x4e0] ss:$16 sps:$4 sm:$0xff]  }
  0x61   :  { %3820 = vmatpush2.bf16.msra.mxu1 %v6460_v36  ;;  %3778 = vmatprep.subr.bf16.mxu0 %v6461_v37  ;;  %v6512_v8 = vld [vmem:[#allocation3 + $0x6e0] ss:$16 sps:$4 sm:$0xff]   ;;  %v6517_v9 = vld [vmem:[#allocation3 + $0x4c4] ss:$16 sps:$4 sm:$0xff]  }
  0x62   :  { %3821 = vmatprep.subr.bf16.mxu1 %v6463_v38  ;;  %v6520_v10 = vld [vmem:[#allocation3 + $0x6c4] ss:$16 sps:$4 sm:$0xff]   ;;  %v6515_v11 = vld [vmem:[#allocation3 + $0x4c0] ss:$16 sps:$4 sm:$0xff]  }
  0x63   :  { %v6518_v12 = vld [vmem:[#allocation3 + $0x6c0] ss:$16 sps:$4 sm:$0xff]   ;;  %v6523_v13 = vld [vmem:[#allocation3 + $0x4a4] ss:$16 sps:$4 sm:$0xff]  }
  0x64   :  { %3779 = vmatpush2.bf16.msra.mxu0 %v6465_v39  ;;  %v6526_v14 = vld [vmem:[#allocation3 + $0x6a4] ss:$16 sps:$4 sm:$0xff]   ;;  %v6521_v15 = vld [vmem:[#allocation3 + $0x4a0] ss:$16 sps:$4 sm:$0xff]  }
  0x65   :  { %3822 = vmatpush2.bf16.msra.mxu1 %v6466_v40  ;;  %3780 = vmatprep.subr.bf16.mxu0 %v6467_v41  ;;  %v6524_v16 = vld [vmem:[#allocation3 + $0x6a0] ss:$16 sps:$4 sm:$0xff]   ;;  %v6529_v17 = vld [vmem:[#allocation3 + $0x484] ss:$16 sps:$4 sm:$0xff]  }
  0x66   :  { %3823 = vmatprep.subr.bf16.mxu1 %v6469_v42  ;;  %v6532_v18 = vld [vmem:[#allocation3 + $0x684] ss:$16 sps:$4 sm:$0xff]   ;;  %v6527_v19 = vld [vmem:[#allocation3 + $0x480] ss:$16 sps:$4 sm:$0xff]  }
  0x67   :  { %v6530_v20 = vld [vmem:[#allocation3 + $0x680] ss:$16 sps:$4 sm:$0xff]   ;;  %v6535_v21 = vld [vmem:[#allocation3 + $0x464] ss:$16 sps:$4 sm:$0xff]  }
  0x68   :  { %3781 = vmatpush2.bf16.msra.mxu0 %v6471_v43  ;;  %v6538_v22 = vld [vmem:[#allocation3 + $0x664] ss:$16 sps:$4 sm:$0xff]   ;;  %v6533_v23 = vld [vmem:[#allocation3 + $0x460] ss:$16 sps:$4 sm:$0xff]  }
  0x69   :  { %3824 = vmatpush2.bf16.msra.mxu1 %v6472_v44  ;;  %3782 = vmatprep.subr.bf16.mxu0 %v6473_v45  ;;  %v6536_v24 = vld [vmem:[#allocation3 + $0x660] ss:$16 sps:$4 sm:$0xff]   ;;  %v6541_v25 = vld [vmem:[#allocation3 + $0x444] ss:$16 sps:$4 sm:$0xff]  }
  0x6a   :  { %3825 = vmatprep.subr.bf16.mxu1 %v6475_v46  ;;  %v6544_v26 = vld [vmem:[#allocation3 + $0x644] ss:$16 sps:$4 sm:$0xff]   ;;  %v6539_v27 = vld [vmem:[#allocation3 + $0x440] ss:$16 sps:$4 sm:$0xff]  }
  0x6b   :  { %v6542_v28 = vld [vmem:[#allocation3 + $0x640] ss:$16 sps:$4 sm:$0xff]   ;;  %v6547_v29 = vld [vmem:[#allocation3 + $0x424] ss:$16 sps:$4 sm:$0xff]  }
  0x6c   :  { %3783 = vmatpush2.bf16.msra.mxu0 %v6477_v47  ;;  %v6550_v30 = vld [vmem:[#allocation3 + $0x624] ss:$16 sps:$4 sm:$0xff]   ;;  %v6545_v31 = vld [vmem:[#allocation3 + $0x420] ss:$16 sps:$4 sm:$0xff]  }
  0x6d   :  { %3826 = vmatpush2.bf16.msra.mxu1 %v6478_v48  ;;  %3784 = vmatprep.subr.bf16.mxu0 %v6479_v49  ;;  %v6548_v32 = vld [vmem:[#allocation3 + $0x620] ss:$16 sps:$4 sm:$0xff]   ;;  %v6553_v33 = vld [vmem:[#allocation3 + $0x404] ss:$16 sps:$4 sm:$0xff]  }
  0x6e   :  { %3827 = vmatprep.subr.bf16.mxu1 %v6481_v51  ;;  %v6556_v34 = vld [vmem:[#allocation3 + $0x604] ss:$16 sps:$4 sm:$0xff]   ;;  %v6551_v37 = vld [vmem:[#allocation3 + $0x400] ss:$16 sps:$4 sm:$0xff]  }
  0x6f   :  { %v6607_v35 = vld [vmem:[%s7946_s0 + $0x14] ss:$76 sps:$4 sm:$0xff]   ;;  %v6610_v36 = vld [vmem:[%s7946_s0 + $0x1c] ss:$76 sps:$4 sm:$0xff]  }
  0x70   :  { %3785 = vmatpush2.bf16.msra.mxu0 %v6483_v53  ;;  %v6554_v38 = vld [vmem:[#allocation3 + $0x600] ss:$16 sps:$4 sm:$0xff]   ;;  %v6559_v39 = vld [vmem:[#allocation3 + $0x5e4] ss:$16 sps:$4 sm:$0xff]  }
  0x71   :  { %3828 = vmatpush2.bf16.msra.mxu1 %v6484_v54  ;;  %3786 = vmatprep.subr.bf16.mxu0 %v6485_v55  ;;  %v6562_v40 = vld [vmem:[#allocation3 + $0x7e4] ss:$16 sps:$4 sm:$0xff]   ;;  %v6557_v41 = vld [vmem:[#allocation3 + $0x5e0] ss:$16 sps:$4 sm:$0xff]  }
  0x72   :  { %3829 = vmatprep.subr.bf16.mxu1 %v6487_v56  ;;  %v6560_v42 = vld [vmem:[#allocation3 + $0x7e0] ss:$16 sps:$4 sm:$0xff]   ;;  %v6565_v43 = vld [vmem:[#allocation3 + $0x5c4] ss:$16 sps:$4 sm:$0xff]  }
  0x73   :  { %v6568_v44 = vld [vmem:[#allocation3 + $0x7c4] ss:$16 sps:$4 sm:$0xff]   ;;  %v6563_v45 = vld [vmem:[#allocation3 + $0x5c0] ss:$16 sps:$4 sm:$0xff]  }
  0x74   :  { %3787 = vmatpush2.bf16.msra.mxu0 %v6489_v57  ;;  %v6566_v46 = vld [vmem:[#allocation3 + $0x7c0] ss:$16 sps:$4 sm:$0xff]   ;;  %v6571_v47 = vld [vmem:[#allocation3 + $0x5a4] ss:$16 sps:$4 sm:$0xff]  }
  0x75   :  { %3830 = vmatpush2.bf16.msra.mxu1 %v6490_v58  ;;  %3788 = vmatprep.subr.bf16.mxu0 %v6491_v59  ;;  %v6574_v48 = vld [vmem:[#allocation3 + $0x7a4] ss:$16 sps:$4 sm:$0xff]   ;;  %v6569_v49 = vld [vmem:[#allocation3 + $0x5a0] ss:$16 sps:$4 sm:$0xff]  }
  0x76   :  { %3831 = vmatprep.subr.bf16.mxu1 %v6493_v60  ;;  %v6572_v50 = vld [vmem:[#allocation3 + $0x7a0] ss:$16 sps:$4 sm:$0xff]   ;;  %v6577_v51 = vld [vmem:[#allocation3 + $0x584] ss:$16 sps:$4 sm:$0xff]  }
  0x77   :  { %v6580_v52 = vld [vmem:[#allocation3 + $0x784] ss:$16 sps:$4 sm:$0xff]   ;;  %v6575_v53 = vld [vmem:[#allocation3 + $0x580] ss:$16 sps:$4 sm:$0xff]  }
  0x78   :  { %3789 = vmatpush2.bf16.msra.mxu0 %v6495_v61  ;;  %v6578_v54 = vld [vmem:[#allocation3 + $0x780] ss:$16 sps:$4 sm:$0xff]   ;;  %v6583_v55 = vld [vmem:[#allocation3 + $0x564] ss:$16 sps:$4 sm:$0xff]  }
  0x79   :  { %3832 = vmatpush2.bf16.msra.mxu1 %v6496_v62  ;;  %3790 = vmatprep.subr.bf16.mxu0 %v6497_v63  ;;  %v6586_v56 = vld [vmem:[#allocation3 + $0x764] ss:$16 sps:$4 sm:$0xff]   ;;  %v6581_v57 = vld [vmem:[#allocation3 + $0x560] ss:$16 sps:$4 sm:$0xff]  }
  0x7a   :  { %3833 = vmatprep.subr.bf16.mxu1 %v6499_v0  ;;  %v6584_v58 = vld [vmem:[#allocation3 + $0x760] ss:$16 sps:$4 sm:$0xff]   ;;  %v6589_v59 = vld [vmem:[#allocation3 + $0x544] ss:$16 sps:$4 sm:$0xff]  }
  0x7b   :  { %v6592_v60 = vld [vmem:[#allocation3 + $0x744] ss:$16 sps:$4 sm:$0xff]   ;;  %v6587_v61 = vld [vmem:[#allocation3 + $0x540] ss:$16 sps:$4 sm:$0xff]  }
  0x7c   :  { %3791 = vmatpush2.bf16.msra.mxu0 %v6501_v1  ;;  %v6590_v62 = vld [vmem:[#allocation3 + $0x740] ss:$16 sps:$4 sm:$0xff]   ;;  %v6595_v63 = vld [vmem:[#allocation3 + $0x524] ss:$16 sps:$4 sm:$0xff]  }
  0x7d   :  { %3834 = vmatpush2.bf16.msra.mxu1 %v6502_v2  ;;  %3846 = vmatprep.subr.bf16.mxu0 %v6511_v3  ;;  %v6598_v0 = vld [vmem:[#allocation3 + $0x724] ss:$16 sps:$4 sm:$0xff]   ;;  %v6593_v1 = vld [vmem:[#allocation3 + $0x520] ss:$16 sps:$4 sm:$0xff]  }
  0x7e   :  { %3889 = vmatprep.subr.bf16.mxu1 %v6514_v4  ;;  %v6596_v2 = vld [vmem:[#allocation3 + $0x720] ss:$16 sps:$4 sm:$0xff]   ;;  %v6601_v3 = vld [vmem:[#allocation3 + $0x504] ss:$16 sps:$4 sm:$0xff]  }
  0x7f   :  { %3793 = vmatmul.mubr.bf16.vlgmr.msra.gmra.mxu0 %v6503_v5  ;;  %v6604_v4 = vld [vmem:[#allocation3 + $0x704] ss:$16 sps:$4 sm:$0xff]   ;;  %v6599_v5 = vld [vmem:[#allocation3 + $0x500] ss:$16 sps:$4 sm:$0xff]  }
  0x80   :  { %3836 = vmatmul.mubr.bf16.vlgmr.msra.gmra.mxu1 %v6506_v6  ;;  %3847 = vmatpush1.bf16.msra.mxu0 %v6509_v7  ;;  %v6602_v6 = vld [vmem:[#allocation3 + $0x700] ss:$16 sps:$4 sm:$0xff]   ;;  %v6613_v7 = vld [vmem:[#allocation3 + $0x8e4] ss:$16 sps:$4 sm:$0xff]  }
  0x81   :  { %3890 = vmatpush1.bf16.msra.mxu1 %v6512_v8  ;;  %3848 = vmatprep.subr.bf16.mxu0 %v6517_v9  ;;  %v6616_v8 = vld [vmem:[#allocation3 + $0xae4] ss:$16 sps:$4 sm:$0xff]   ;;  %v6605_v9 = vld [vmem:[%s7946_s0 + $0x10] ss:$76 sps:$4 sm:$0xff]  }
  0x82   :  { %3891 = vmatprep.subr.bf16.mxu1 %v6520_v10  ;;  %3878 = vmatprep.mubr.bf16.mxu0 %v6607_v35  ;;  %v6608_v10 = vld [vmem:[%s7946_s0 + $0x18] ss:$76 sps:$4 sm:$0xff]  }
  0x83   :  { %3921 = vmatprep.mubr.bf16.mxu1 %v6610_v36  ;;  %v6649_v35 = vld [vmem:[#allocation3 + $0x824] ss:$16 sps:$4 sm:$0xff]  }
  0x84   :  { %3849 = vmatpush1.bf16.msra.mxu0 %v6515_v11  ;;  %v6611_v11 = vld [vmem:[#allocation3 + $0x8e0] ss:$16 sps:$4 sm:$0xff]   ;;  %v6652_v36 = vld [vmem:[#allocation3 + $0xa24] ss:$16 sps:$4 sm:$0xff]  }
  0x85   :  { %3892 = vmatpush1.bf16.msra.mxu1 %v6518_v12  ;;  %3850 = vmatprep.subr.bf16.mxu0 %v6523_v13  ;;  %v6614_v12 = vld [vmem:[#allocation3 + $0xae0] ss:$16 sps:$4 sm:$0xff]   ;;  %v6619_v13 = vld [vmem:[#allocation3 + $0x8c4] ss:$16 sps:$4 sm:$0xff]  }
  0x86   :  { %3893 = vmatprep.subr.bf16.mxu1 %v6526_v14  ;;  %v6622_v14 = vld [vmem:[#allocation3 + $0xac4] ss:$16 sps:$4 sm:$0xff]  }
  0x88   :  { %3851 = vmatpush1.bf16.msra.mxu0 %v6521_v15  ;;  %v6617_v15 = vld [vmem:[#allocation3 + $0x8c0] ss:$16 sps:$4 sm:$0xff]  }
  0x89   :  { %3894 = vmatpush1.bf16.msra.mxu1 %v6524_v16  ;;  %3852 = vmatprep.subr.bf16.mxu0 %v6529_v17  ;;  %v6620_v16 = vld [vmem:[#allocation3 + $0xac0] ss:$16 sps:$4 sm:$0xff]   ;;  %v6625_v17 = vld [vmem:[#allocation3 + $0x8a4] ss:$16 sps:$4 sm:$0xff]  }
  0x8a   :  { %3895 = vmatprep.subr.bf16.mxu1 %v6532_v18  ;;  %v6628_v18 = vld [vmem:[#allocation3 + $0xaa4] ss:$16 sps:$4 sm:$0xff]  }
  0x8c   :  { %3853 = vmatpush1.bf16.msra.mxu0 %v6527_v19  ;;  %v6623_v19 = vld [vmem:[#allocation3 + $0x8a0] ss:$16 sps:$4 sm:$0xff]  }
  0x8d   :  { %3896 = vmatpush1.bf16.msra.mxu1 %v6530_v20  ;;  %3854 = vmatprep.subr.bf16.mxu0 %v6535_v21  ;;  %v6709_v20 = vld [vmem:[%s7946_s0 + $0x24] ss:$76 sps:$4 sm:$0xff]  }
  0x8e   :  { %3897 = vmatprep.subr.bf16.mxu1 %v6538_v22  ;;  %v6626_v21 = vld [vmem:[#allocation3 + $0xaa0] ss:$16 sps:$4 sm:$0xff]   ;;  %v6712_v22 = vld [vmem:[%s7946_s0 + $0x2c] ss:$76 sps:$4 sm:$0xff]  }
  0x90   :  { %3855 = vmatpush1.bf16.msra.mxu0 %v6533_v23  ;;  %v6631_v23 = vld [vmem:[#allocation3 + $0x884] ss:$16 sps:$4 sm:$0xff]  }
  0x91   :  { %3898 = vmatpush1.bf16.msra.mxu1 %v6536_v24  ;;  %3856 = vmatprep.subr.bf16.mxu0 %v6541_v25  ;;  %v6634_v24 = vld [vmem:[#allocation3 + $0xa84] ss:$16 sps:$4 sm:$0xff]   ;;  %v6629_v25 = vld [vmem:[#allocation3 + $0x880] ss:$16 sps:$4 sm:$0xff]  }
  0x92   :  { %3899 = vmatprep.subr.bf16.mxu1 %v6544_v26  ;;  %v6632_v26 = vld [vmem:[#allocation3 + $0xa80] ss:$16 sps:$4 sm:$0xff]  }
  0x94   :  { %3857 = vmatpush1.bf16.msra.mxu0 %v6539_v27  ;;  %v6637_v27 = vld [vmem:[#allocation3 + $0x864] ss:$16 sps:$4 sm:$0xff]  }
  0x95   :  { %3900 = vmatpush1.bf16.msra.mxu1 %v6542_v28  ;;  %3858 = vmatprep.subr.bf16.mxu0 %v6547_v29  ;;  %v6640_v28 = vld [vmem:[#allocation3 + $0xa64] ss:$16 sps:$4 sm:$0xff]   ;;  %v6635_v29 = vld [vmem:[#allocation3 + $0x860] ss:$16 sps:$4 sm:$0xff]  }
  0x96   :  { %3901 = vmatprep.subr.bf16.mxu1 %v6550_v30  ;;  %v6638_v30 = vld [vmem:[#allocation3 + $0xa60] ss:$16 sps:$4 sm:$0xff]  }
  0x98   :  { %3859 = vmatpush1.bf16.msra.mxu0 %v6545_v31  ;;  %v6643_v31 = vld [vmem:[#allocation3 + $0x844] ss:$16 sps:$4 sm:$0xff]  }
  0x99   :  { %3902 = vmatpush1.bf16.msra.mxu1 %v6548_v32  ;;  %3860 = vmatprep.subr.bf16.mxu0 %v6553_v33  ;;  %v6646_v32 = vld [vmem:[#allocation3 + $0xa44] ss:$16 sps:$4 sm:$0xff]   ;;  %v6641_v33 = vld [vmem:[#allocation3 + $0x840] ss:$16 sps:$4 sm:$0xff]  }
  0x9a   :  { %3903 = vmatprep.subr.bf16.mxu1 %v6556_v34  ;;  %v6644_v34 = vld [vmem:[#allocation3 + $0xa40] ss:$16 sps:$4 sm:$0xff]  }
  0x9c   :  { %3861 = vmatpush1.bf16.msra.mxu0 %v6551_v37  ;;  %v6647_v37 = vld [vmem:[#allocation3 + $0x820] ss:$16 sps:$4 sm:$0xff]  }
  0x9d   :  { %3904 = vmatpush1.bf16.msra.mxu1 %v6554_v38  ;;  %3862 = vmatprep.subr.bf16.mxu0 %v6559_v39  ;;  %v6650_v38 = vld [vmem:[#allocation3 + $0xa20] ss:$16 sps:$4 sm:$0xff]   ;;  %v6655_v39 = vld [vmem:[#allocation3 + $0x804] ss:$16 sps:$4 sm:$0xff]  }
  0x9e   :  { %3905 = vmatprep.subr.bf16.mxu1 %v6562_v40  ;;  %v6658_v40 = vld [vmem:[#allocation3 + $0xa04] ss:$16 sps:$4 sm:$0xff]  }
  0xa0   :  { %3863 = vmatpush2.bf16.msra.mxu0 %v6557_v41  ;;  %v6653_v41 = vld [vmem:[#allocation3 + $0x800] ss:$16 sps:$4 sm:$0xff]  }
  0xa1   :  { %3906 = vmatpush2.bf16.msra.mxu1 %v6560_v42  ;;  %3864 = vmatprep.subr.bf16.mxu0 %v6565_v43  ;;  %v6656_v42 = vld [vmem:[#allocation3 + $0xa00] ss:$16 sps:$4 sm:$0xff]   ;;  %v6661_v43 = vld [vmem:[#allocation3 + $0x9e4] ss:$16 sps:$4 sm:$0xff]  }
  0xa2   :  { %3907 = vmatprep.subr.bf16.mxu1 %v6568_v44  ;;  %v6664_v44 = vld [vmem:[#allocation3 + $0xbe4] ss:$16 sps:$4 sm:$0xff]  }
  0xa4   :  { %3865 = vmatpush2.bf16.msra.mxu0 %v6563_v45  ;;  %v6659_v45 = vld [vmem:[#allocation3 + $0x9e0] ss:$16 sps:$4 sm:$0xff]  }
  0xa5   :  { %3908 = vmatpush2.bf16.msra.mxu1 %v6566_v46  ;;  %3866 = vmatprep.subr.bf16.mxu0 %v6571_v47  ;;  %v6662_v46 = vld [vmem:[#allocation3 + $0xbe0] ss:$16 sps:$4 sm:$0xff]   ;;  %v6667_v47 = vld [vmem:[#allocation3 + $0x9c4] ss:$16 sps:$4 sm:$0xff]  }
  0xa6   :  { %3909 = vmatprep.subr.bf16.mxu1 %v6574_v48  ;;  %v6670_v48 = vld [vmem:[#allocation3 + $0xbc4] ss:$16 sps:$4 sm:$0xff]  }
  0xa8   :  { %3867 = vmatpush2.bf16.msra.mxu0 %v6569_v49  ;;  %v6665_v49 = vld [vmem:[#allocation3 + $0x9c0] ss:$16 sps:$4 sm:$0xff]  }
  0xa9   :  { %3910 = vmatpush2.bf16.msra.mxu1 %v6572_v50  ;;  %3868 = vmatprep.subr.bf16.mxu0 %v6577_v51  ;;  %v6668_v50 = vld [vmem:[#allocation3 + $0xbc0] ss:$16 sps:$4 sm:$0xff]   ;;  %v6673_v51 = vld [vmem:[#allocation3 + $0x9a4] ss:$16 sps:$4 sm:$0xff]  }
  0xaa   :  { %3911 = vmatprep.subr.bf16.mxu1 %v6580_v52  ;;  %v6676_v52 = vld [vmem:[#allocation3 + $0xba4] ss:$16 sps:$4 sm:$0xff]  }
  0xac   :  { %3869 = vmatpush2.bf16.msra.mxu0 %v6575_v53  ;;  %v6671_v53 = vld [vmem:[#allocation3 + $0x9a0] ss:$16 sps:$4 sm:$0xff]  }
  0xad   :  { %3912 = vmatpush2.bf16.msra.mxu1 %v6578_v54  ;;  %3870 = vmatprep.subr.bf16.mxu0 %v6583_v55  ;;  %v6674_v54 = vld [vmem:[#allocation3 + $0xba0] ss:$16 sps:$4 sm:$0xff]   ;;  %v6679_v55 = vld [vmem:[#allocation3 + $0x984] ss:$16 sps:$4 sm:$0xff]  }
  0xae   :  { %3913 = vmatprep.subr.bf16.mxu1 %v6586_v56  ;;  %v6682_v56 = vld [vmem:[#allocation3 + $0xb84] ss:$16 sps:$4 sm:$0xff]  }
  0xb0   :  { %3871 = vmatpush2.bf16.msra.mxu0 %v6581_v57  ;;  %v6677_v57 = vld [vmem:[#allocation3 + $0x980] ss:$16 sps:$4 sm:$0xff]  }
  0xb1   :  { %3914 = vmatpush2.bf16.msra.mxu1 %v6584_v58  ;;  %3872 = vmatprep.subr.bf16.mxu0 %v6589_v59  ;;  %v6680_v58 = vld [vmem:[#allocation3 + $0xb80] ss:$16 sps:$4 sm:$0xff]   ;;  %v6685_v59 = vld [vmem:[#allocation3 + $0x964] ss:$16 sps:$4 sm:$0xff]  }
  0xb2   :  { %3915 = vmatprep.subr.bf16.mxu1 %v6592_v60  ;;  %v6688_v60 = vld [vmem:[#allocation3 + $0xb64] ss:$16 sps:$4 sm:$0xff]  }
  0xb4   :  { %3873 = vmatpush2.bf16.msra.mxu0 %v6587_v61  ;;  %v6683_v61 = vld [vmem:[#allocation3 + $0x960] ss:$16 sps:$4 sm:$0xff]  }
  0xb5   :  { %3916 = vmatpush2.bf16.msra.mxu1 %v6590_v62  ;;  %3874 = vmatprep.subr.bf16.mxu0 %v6595_v63  ;;  %v6686_v62 = vld [vmem:[#allocation3 + $0xb60] ss:$16 sps:$4 sm:$0xff]   ;;  %v6691_v63 = vld [vmem:[#allocation3 + $0x944] ss:$16 sps:$4 sm:$0xff]  }
  0xb6   :  { %3917 = vmatprep.subr.bf16.mxu1 %v6598_v0  ;;  %v6694_v0 = vld [vmem:[#allocation3 + $0xb44] ss:$16 sps:$4 sm:$0xff]  }
  0xb8   :  { %3875 = vmatpush2.bf16.msra.mxu0 %v6593_v1  ;;  %v6689_v1 = vld [vmem:[#allocation3 + $0x940] ss:$16 sps:$4 sm:$0xff]  }
  0xb9   :  { %3918 = vmatpush2.bf16.msra.mxu1 %v6596_v2  ;;  %3876 = vmatprep.subr.bf16.mxu0 %v6601_v3  ;;  %v6692_v2 = vld [vmem:[#allocation3 + $0xb40] ss:$16 sps:$4 sm:$0xff]   ;;  %v6697_v3 = vld [vmem:[#allocation3 + $0x924] ss:$16 sps:$4 sm:$0xff]  }
  0xba   :  { %3919 = vmatprep.subr.bf16.mxu1 %v6604_v4  ;;  %v6700_v4 = vld [vmem:[#allocation3 + $0xb24] ss:$16 sps:$4 sm:$0xff]  }
  0xbc   :  { %3877 = vmatpush2.bf16.msra.mxu0 %v6599_v5  ;;  %v6695_v5 = vld [vmem:[#allocation3 + $0x920] ss:$16 sps:$4 sm:$0xff]  }
  0xbd   :  { %3920 = vmatpush2.bf16.msra.mxu1 %v6602_v6  ;;  %3932 = vmatprep.subr.bf16.mxu0 %v6613_v7  ;;  %v6698_v6 = vld [vmem:[#allocation3 + $0xb20] ss:$16 sps:$4 sm:$0xff]   ;;  %v6703_v7 = vld [vmem:[#allocation3 + $0x904] ss:$16 sps:$4 sm:$0xff]  }
  0xbe   :  { %3975 = vmatprep.subr.bf16.mxu1 %v6616_v8  ;;  %v6706_v8 = vld [vmem:[#allocation3 + $0xb04] ss:$16 sps:$4 sm:$0xff]  }
  0xbf   :  { %3879 = vmatmul.mubr.bf16.vlgmr.msra.gmra.mxu0 %v6605_v9  ;;  %v6701_v9 = vld [vmem:[#allocation3 + $0x900] ss:$16 sps:$4 sm:$0xff]  }
  0xc0   :  { %3922 = vmatmul.mubr.bf16.vlgmr.msra.gmra.mxu1 %v6608_v10  ;;  %3933 = vmatpush1.bf16.msra.mxu0 %v6611_v11  ;;  %v6704_v10 = vld [vmem:[#allocation3 + $0xb00] ss:$16 sps:$4 sm:$0xff]  }
  0xc1   :  { %3976 = vmatpush1.bf16.msra.mxu1 %v6614_v12  ;;  %3934 = vmatprep.subr.bf16.mxu0 %v6619_v13  ;;  %v6707_v11 = vld [vmem:[%s7946_s0 + $0x20] ss:$76 sps:$4 sm:$0xff]   ;;  %v6715_v12 = vld [vmem:[#allocation3 + $0xce4] ss:$16 sps:$4 sm:$0xff]  }
  0xc2   :  { %3977 = vmatprep.subr.bf16.mxu1 %v6622_v14  ;;  %3964 = vmatprep.mubr.bf16.mxu0 %v6709_v20  ;;  %v6718_v13 = vld [vmem:[#allocation3 + $0xee4] ss:$16 sps:$4 sm:$0xff]  }
  0xc3   :  { %4007 = vmatprep.mubr.bf16.mxu1 %v6712_v22  ;;  %v6710_v14 = vld [vmem:[%s7946_s0 + $0x28] ss:$76 sps:$4 sm:$0xff]  }
  0xc4   :  { %3935 = vmatpush1.bf16.msra.mxu0 %v6617_v15  ;;  %v6713_v15 = vld [vmem:[#allocation3 + $0xce0] ss:$16 sps:$4 sm:$0xff]   ;;  %v6814_v20 = vld [vmem:[%s7946_s0 + $0x3c] ss:$76 sps:$4 sm:$0xff]  }
  0xc5   :  { %3978 = vmatpush1.bf16.msra.mxu1 %v6620_v16  ;;  %3936 = vmatprep.subr.bf16.mxu0 %v6625_v17  ;;  %v6716_v16 = vld [vmem:[#allocation3 + $0xee0] ss:$16 sps:$4 sm:$0xff]   ;;  %v6721_v17 = vld [vmem:[#allocation3 + $0xcc4] ss:$16 sps:$4 sm:$0xff]  }
  0xc6   :  { %3979 = vmatprep.subr.bf16.mxu1 %v6628_v18  ;;  %v6724_v18 = vld [vmem:[#allocation3 + $0xec4] ss:$16 sps:$4 sm:$0xff]   ;;  %v6722_v22 = vld [vmem:[#allocation3 + $0xec0] ss:$16 sps:$4 sm:$0xff]  }
  0xc8   :  { %3937 = vmatpush1.bf16.msra.mxu0 %v6623_v19  ;;  %v6811_v19 = vld [vmem:[%s7946_s0 + $0x34] ss:$76 sps:$4 sm:$0xff]  }
  0xc9   :  { %3980 = vmatpush1.bf16.msra.mxu1 %v6626_v21  ;;  %3938 = vmatprep.subr.bf16.mxu0 %v6631_v23  ;;  %v6719_v21 = vld [vmem:[#allocation3 + $0xcc0] ss:$16 sps:$4 sm:$0xff]   ;;  %v6727_v23 = vld [vmem:[#allocation3 + $0xca4] ss:$16 sps:$4 sm:$0xff]  }
  0xca   :  { %3981 = vmatprep.subr.bf16.mxu1 %v6634_v24  ;;  %v6730_v24 = vld [vmem:[#allocation3 + $0xea4] ss:$16 sps:$4 sm:$0xff]  }
  0xcc   :  { %3939 = vmatpush1.bf16.msra.mxu0 %v6629_v25  ;;  %v6725_v25 = vld [vmem:[#allocation3 + $0xca0] ss:$16 sps:$4 sm:$0xff]  }
  0xcd   :  { %3982 = vmatpush1.bf16.msra.mxu1 %v6632_v26  ;;  %3940 = vmatprep.subr.bf16.mxu0 %v6637_v27  ;;  %v6728_v26 = vld [vmem:[#allocation3 + $0xea0] ss:$16 sps:$4 sm:$0xff]   ;;  %v6733_v27 = vld [vmem:[#allocation3 + $0xc84] ss:$16 sps:$4 sm:$0xff]  }
  0xce   :  { %3983 = vmatprep.subr.bf16.mxu1 %v6640_v28  ;;  %v6736_v28 = vld [vmem:[#allocation3 + $0xe84] ss:$16 sps:$4 sm:$0xff]  }
  0xd0   :  { %3941 = vmatpush1.bf16.msra.mxu0 %v6635_v29  ;;  %v6731_v29 = vld [vmem:[#allocation3 + $0xc80] ss:$16 sps:$4 sm:$0xff]  }
  0xd1   :  { %3984 = vmatpush1.bf16.msra.mxu1 %v6638_v30  ;;  %3942 = vmatprep.subr.bf16.mxu0 %v6643_v31  ;;  %v6734_v30 = vld [vmem:[#allocation3 + $0xe80] ss:$16 sps:$4 sm:$0xff]   ;;  %v6739_v31 = vld [vmem:[#allocation3 + $0xc64] ss:$16 sps:$4 sm:$0xff]  }
  0xd2   :  { %3985 = vmatprep.subr.bf16.mxu1 %v6646_v32  ;;  %v6742_v32 = vld [vmem:[#allocation3 + $0xe64] ss:$16 sps:$4 sm:$0xff]  }
  0xd4   :  { %3943 = vmatpush1.bf16.msra.mxu0 %v6641_v33  ;;  %v6737_v33 = vld [vmem:[#allocation3 + $0xc60] ss:$16 sps:$4 sm:$0xff]  }
  0xd5   :  { %3986 = vmatpush1.bf16.msra.mxu1 %v6644_v34  ;;  %3944 = vmatprep.subr.bf16.mxu0 %v6649_v35  ;;  %v6740_v34 = vld [vmem:[#allocation3 + $0xe60] ss:$16 sps:$4 sm:$0xff]   ;;  %v6745_v35 = vld [vmem:[#allocation3 + $0xc44] ss:$16 sps:$4 sm:$0xff]  }
  0xd6   :  { %3987 = vmatprep.subr.bf16.mxu1 %v6652_v36  ;;  %v6748_v36 = vld [vmem:[#allocation3 + $0xe44] ss:$16 sps:$4 sm:$0xff]  }
  0xd8   :  { %3945 = vmatpush1.bf16.msra.mxu0 %v6647_v37  ;;  %v6743_v37 = vld [vmem:[#allocation3 + $0xc40] ss:$16 sps:$4 sm:$0xff]  }
  0xd9   :  { %3988 = vmatpush1.bf16.msra.mxu1 %v6650_v38  ;;  %3946 = vmatprep.subr.bf16.mxu0 %v6655_v39  ;;  %v6746_v38 = vld [vmem:[#allocation3 + $0xe40] ss:$16 sps:$4 sm:$0xff]   ;;  %v6751_v39 = vld [vmem:[#allocation3 + $0xc24] ss:$16 sps:$4 sm:$0xff]  }
  0xda   :  { %3989 = vmatprep.subr.bf16.mxu1 %v6658_v40  ;;  %v6754_v40 = vld [vmem:[#allocation3 + $0xe24] ss:$16 sps:$4 sm:$0xff]  }
  0xdc   :  { %3947 = vmatpush1.bf16.msra.mxu0 %v6653_v41  ;;  %v6749_v41 = vld [vmem:[#allocation3 + $0xc20] ss:$16 sps:$4 sm:$0xff]  }
  0xdd   :  { %3990 = vmatpush1.bf16.msra.mxu1 %v6656_v42  ;;  %3948 = vmatprep.subr.bf16.mxu0 %v6661_v43  ;;  %v6752_v42 = vld [vmem:[#allocation3 + $0xe20] ss:$16 sps:$4 sm:$0xff]   ;;  %v6757_v43 = vld [vmem:[#allocation3 + $0xc04] ss:$16 sps:$4 sm:$0xff]  }
  0xde   :  { %3991 = vmatprep.subr.bf16.mxu1 %v6664_v44  ;;  %v6760_v44 = vld [vmem:[#allocation3 + $0xe04] ss:$16 sps:$4 sm:$0xff]  }
  0xe0   :  { %3949 = vmatpush2.bf16.msra.mxu0 %v6659_v45  ;;  %v6755_v45 = vld [vmem:[#allocation3 + $0xc00] ss:$16 sps:$4 sm:$0xff]  }
  0xe1   :  { %3992 = vmatpush2.bf16.msra.mxu1 %v6662_v46  ;;  %3950 = vmatprep.subr.bf16.mxu0 %v6667_v47  ;;  %v6758_v46 = vld [vmem:[#allocation3 + $0xe00] ss:$16 sps:$4 sm:$0xff]   ;;  %v6763_v47 = vld [vmem:[#allocation3 + $0xde4] ss:$16 sps:$4 sm:$0xff]  }
  0xe2   :  { %3993 = vmatprep.subr.bf16.mxu1 %v6670_v48  ;;  %v6766_v48 = vld [vmem:[#allocation3 + $0xfe4] ss:$16 sps:$4 sm:$0xff]  }
  0xe4   :  { %3951 = vmatpush2.bf16.msra.mxu0 %v6665_v49  ;;  %v6761_v49 = vld [vmem:[#allocation3 + $0xde0] ss:$16 sps:$4 sm:$0xff]  }
  0xe5   :  { %3994 = vmatpush2.bf16.msra.mxu1 %v6668_v50  ;;  %3952 = vmatprep.subr.bf16.mxu0 %v6673_v51  ;;  %v6764_v50 = vld [vmem:[#allocation3 + $0xfe0] ss:$16 sps:$4 sm:$0xff]   ;;  %v6769_v51 = vld [vmem:[#allocation3 + $0xdc4] ss:$16 sps:$4 sm:$0xff]  }
  0xe6   :  { %3995 = vmatprep.subr.bf16.mxu1 %v6676_v52  ;;  %v6772_v52 = vld [vmem:[#allocation3 + $0xfc4] ss:$16 sps:$4 sm:$0xff]  }
  0xe8   :  { %3953 = vmatpush2.bf16.msra.mxu0 %v6671_v53  ;;  %v6767_v53 = vld [vmem:[#allocation3 + $0xdc0] ss:$16 sps:$4 sm:$0xff]  }
  0xe9   :  { %3996 = vmatpush2.bf16.msra.mxu1 %v6674_v54  ;;  %3954 = vmatprep.subr.bf16.mxu0 %v6679_v55  ;;  %v6770_v54 = vld [vmem:[#allocation3 + $0xfc0] ss:$16 sps:$4 sm:$0xff]   ;;  %v6775_v55 = vld [vmem:[#allocation3 + $0xda4] ss:$16 sps:$4 sm:$0xff]  }
  0xea   :  { %3997 = vmatprep.subr.bf16.mxu1 %v6682_v56  ;;  %v6778_v56 = vld [vmem:[#allocation3 + $0xfa4] ss:$16 sps:$4 sm:$0xff]  }
  0xec   :  { %3955 = vmatpush2.bf16.msra.mxu0 %v6677_v57  ;;  %v6773_v57 = vld [vmem:[#allocation3 + $0xda0] ss:$16 sps:$4 sm:$0xff]  }
  0xed   :  { %3998 = vmatpush2.bf16.msra.mxu1 %v6680_v58  ;;  %3956 = vmatprep.subr.bf16.mxu0 %v6685_v59  ;;  %v6776_v58 = vld [vmem:[#allocation3 + $0xfa0] ss:$16 sps:$4 sm:$0xff]   ;;  %v6781_v59 = vld [vmem:[#allocation3 + $0xd84] ss:$16 sps:$4 sm:$0xff]  }
  0xee   :  { %3999 = vmatprep.subr.bf16.mxu1 %v6688_v60  ;;  %v6784_v60 = vld [vmem:[#allocation3 + $0xf84] ss:$16 sps:$4 sm:$0xff]  }
  0xf0   :  { %3957 = vmatpush2.bf16.msra.mxu0 %v6683_v61  ;;  %v6779_v61 = vld [vmem:[#allocation3 + $0xd80] ss:$16 sps:$4 sm:$0xff]  }
  0xf1   :  { %4000 = vmatpush2.bf16.msra.mxu1 %v6686_v62  ;;  %3958 = vmatprep.subr.bf16.mxu0 %v6691_v63  ;;  %v6782_v62 = vld [vmem:[#allocation3 + $0xf80] ss:$16 sps:$4 sm:$0xff]   ;;  %v6787_v63 = vld [vmem:[#allocation3 + $0xd64] ss:$16 sps:$4 sm:$0xff]  }
  0xf2   :  { %4001 = vmatprep.subr.bf16.mxu1 %v6694_v0  ;;  %v6790_v0 = vld [vmem:[#allocation3 + $0xf64] ss:$16 sps:$4 sm:$0xff]  }
  0xf4   :  { %3959 = vmatpush2.bf16.msra.mxu0 %v6689_v1  ;;  %v6785_v1 = vld [vmem:[#allocation3 + $0xd60] ss:$16 sps:$4 sm:$0xff]  }
  0xf5   :  { %4002 = vmatpush2.bf16.msra.mxu1 %v6692_v2  ;;  %3960 = vmatprep.subr.bf16.mxu0 %v6697_v3  ;;  %v6788_v2 = vld [vmem:[#allocation3 + $0xf60] ss:$16 sps:$4 sm:$0xff]   ;;  %v6793_v3 = vld [vmem:[#allocation3 + $0xd44] ss:$16 sps:$4 sm:$0xff]  }
  0xf6   :  { %4003 = vmatprep.subr.bf16.mxu1 %v6700_v4  ;;  %v6796_v4 = vld [vmem:[#allocation3 + $0xf44] ss:$16 sps:$4 sm:$0xff]  }
  0xf8   :  { %3961 = vmatpush2.bf16.msra.mxu0 %v6695_v5  ;;  %v6791_v5 = vld [vmem:[#allocation3 + $0xd40] ss:$16 sps:$4 sm:$0xff]  }
  0xf9   :  { %4004 = vmatpush2.bf16.msra.mxu1 %v6698_v6  ;;  %3962 = vmatprep.subr.bf16.mxu0 %v6703_v7  ;;  %v6794_v6 = vld [vmem:[#allocation3 + $0xf40] ss:$16 sps:$4 sm:$0xff]   ;;  %v6799_v7 = vld [vmem:[#allocation3 + $0xd24] ss:$16 sps:$4 sm:$0xff]  }
  0xfa   :  { %4005 = vmatprep.subr.bf16.mxu1 %v6706_v8  ;;  %v701_v8 = vlaneseq }
  0xfc   :  { %3963 = vmatpush2.bf16.msra.mxu0 %v6701_v9  ;;  %v6802_v9 = vld [vmem:[#allocation3 + $0xf24] ss:$16 sps:$4 sm:$0xff]  }
  0xfd   :  { %4006 = vmatpush2.bf16.msra.mxu1 %v6704_v10  ;;  %4018 = vmatprep.subr.bf16.mxu0 %v6715_v12  ;;  %v6797_v10 = vld [vmem:[#allocation3 + $0xd20] ss:$16 sps:$4 sm:$0xff]   ;;  %v6805_v12 = vld [vmem:[#allocation3 + $0xd04] ss:$16 sps:$4 sm:$0xff]  }
  0xfe   :  { %4061 = vmatprep.subr.bf16.mxu1 %v6718_v13  ;;  %v7743_v13 = vshrl.u32 %v701_v8, 7  ;;  %v6872_v8 = vld [vmem:[#allocation3 + $0x11c4] ss:$16 sps:$4 sm:$0xff]  }
  0xff   :  { %3965 = vmatmul.mubr.bf16.vlgmr.msra.gmra.mxu0 %v6707_v11  ;;  %v6800_v11 = vld [vmem:[#allocation3 + $0xf20] ss:$16 sps:$4 sm:$0xff]  }
 0x100   :  { %4008 = vmatmul.mubr.bf16.vlgmr.msra.gmra.mxu1 %v6710_v14  ;;  %4019 = vmatpush1.bf16.msra.mxu0 %v6713_v15  ;;  %v6808_v14 = vld [vmem:[#allocation3 + $0xf04] ss:$16 sps:$4 sm:$0xff]   ;;  %v6803_v15 = vld [vmem:[#allocation3 + $0xd00] ss:$16 sps:$4 sm:$0xff]  }
 0x101   :  { %4062 = vmatpush1.bf16.msra.mxu1 %v6716_v16  ;;  %4020 = vmatprep.subr.bf16.mxu0 %v6721_v17  ;;  %v6806_v16 = vld [vmem:[#allocation3 + $0xf00] ss:$16 sps:$4 sm:$0xff]  }
 0x102   :  { %4063 = vmatprep.subr.bf16.mxu1 %v6724_v18  ;;  %4050 = vmatprep.mubr.bf16.mxu0 %v6811_v19  ;;  %v699_v17 = vld [vmem:[#allocation5] sm:$0xf]  ;;  %v7746_v18 = vsub.s32 0, %v7743_v13  ;;  %v6817_v19 = vld [vmem:[#allocation3 + $0x10e4] ss:$16 sps:$4 sm:$0xff]  }
 0x103   :  { %4093 = vmatprep.mubr.bf16.mxu1 %v6814_v20  ;;  %v6820_v20 = vld [vmem:[#allocation3 + $0x1244] ss:$16 sps:$4 sm:$0xff]  }
 0x104   :  { %4021 = vmatpush1.bf16.msra.mxu0 %v6719_v21  ;;  %v6809_v21 = vld [vmem:[%s7946_s0 + $0x30] ss:$76 sps:$4 sm:$0xff]  }
 0x105   :  { %4064 = vmatpush1.bf16.msra.mxu1 %v6722_v22  ;;  %4022 = vmatprep.subr.bf16.mxu0 %v6727_v23  ;;  %v6812_v22 = vld [vmem:[%s7946_s0 + $0x38] ss:$76 sps:$4 sm:$0xff]  }
 0x106   :  { %4065 = vmatprep.subr.bf16.mxu1 %v6730_v24  ;;  %v6815_v23 = vld [vmem:[#allocation3 + $0x10e0] ss:$16 sps:$4 sm:$0xff]  }
 0x107   :  { %v6818_v24 = vld [vmem:[#allocation3 + $0x1240] ss:$16 sps:$4 sm:$0xff]  }
 0x108   :  { %4023 = vmatpush1.bf16.msra.mxu0 %v6725_v25  ;;  %v704_v25 = vrot.slane %v699_v17, %v7746_v18  ;;  %v6884_v17 = vld [vmem:[#allocation3 + $0x1184] ss:$16 sps:$4 sm:$0xff]  }
 0x109   :  { %4066 = vmatpush1.bf16.msra.mxu1 %v6728_v26  ;;  %4024 = vmatprep.subr.bf16.mxu0 %v6733_v27  ;;  %v6823_v26 = vld [vmem:[#allocation3 + $0x10c4] ss:$16 sps:$4 sm:$0xff]  }
 0x10a   :  { %4067 = vmatprep.subr.bf16.mxu1 %v6736_v28  ;;  %v6826_v27 = vld [vmem:[#allocation3 + $0x1224] ss:$16 sps:$4 sm:$0xff]  }
 0x10b   :  { %v6914_v28 = vld [vmem:[%s7946_s0 + $0x44] ss:$76 sps:$4 sm:$0xff]  }
 0x10c   :  { %4025 = vmatpush1.bf16.msra.mxu0 %v6731_v29 }
 0x10d   :  { %4068 = vmatpush1.bf16.msra.mxu1 %v6734_v30  ;;  %4026 = vmatprep.subr.bf16.mxu0 %v6739_v31  ;;  %v6821_v31 = vld [vmem:[#allocation3 + $0x10c0] ss:$16 sps:$4 sm:$0xff]  }
 0x10e   :  { %4069 = vmatprep.subr.bf16.mxu1 %v6742_v32  ;;  %v6824_v32 = vld [vmem:[#allocation3 + $0x1220] ss:$16 sps:$4 sm:$0xff]  }
 0x110   :  { %4027 = vmatpush1.bf16.msra.mxu0 %v6737_v33 }
 0x111   :  { %4070 = vmatpush1.bf16.msra.mxu1 %v6740_v34  ;;  %4028 = vmatprep.subr.bf16.mxu0 %v6745_v35  ;;  %v6829_v34 = vld [vmem:[#allocation3 + $0x10a4] ss:$16 sps:$4 sm:$0xff]  }
 0x112   :  { %4071 = vmatprep.subr.bf16.mxu1 %v6748_v36 }
 0x114   :  { %4029 = vmatpush1.bf16.msra.mxu0 %v6743_v37  ;;  %v6832_v37 = vld [vmem:[#allocation3 + $0x1204] ss:$16 sps:$4 sm:$0xff]  }
 0x115   :  { %4072 = vmatpush1.bf16.msra.mxu1 %v6746_v38  ;;  %4030 = vmatprep.subr.bf16.mxu0 %v6751_v39  ;;  %v7642_v39 = vmov 0  }
 0x116   :  { %4073 = vmatprep.subr.bf16.mxu1 %v6754_v40 }
 0x118   :  { %4031 = vmatpush1.bf16.msra.mxu0 %v6749_v41  ;;  %v6827_v41 = vld [vmem:[#allocation3 + $0x10a0] ss:$16 sps:$4 sm:$0xff]  }
 0x119   :  { %4074 = vmatpush1.bf16.msra.mxu1 %v6752_v42  ;;  %4032 = vmatprep.subr.bf16.mxu0 %v6757_v43  ;;  %v6830_v42 = vld [vmem:[#allocation3 + $0x1200] ss:$16 sps:$4 sm:$0xff]  }
 0x11a   :  { %4075 = vmatprep.subr.bf16.mxu1 %v6760_v44  ;;  %v6835_v44 = vld [vmem:[#allocation3 + $0x1084] ss:$16 sps:$4 sm:$0xff]  }
 0x11c   :  { %4033 = vmatpush1.bf16.msra.mxu0 %v6755_v45 }
 0x11d   :  { %4076 = vmatpush1.bf16.msra.mxu1 %v6758_v46  ;;  %4034 = vmatprep.subr.bf16.mxu0 %v6763_v47  ;;  %v6839_v46 = vld [vmem:[#allocation3 + $0xec] ss:$16 sps:$4 sm:$0xff]  }
 0x11e   :  { %4077 = vmatprep.subr.bf16.mxu1 %v6766_v48  ;;  %v6833_v48 = vld [vmem:[#allocation3 + $0x1080] ss:$16 sps:$4 sm:$0xff]  }
 0x120   :  { %4035 = vmatpush2.bf16.msra.mxu0 %v6761_v49  ;;  %v6836_v49 = vld [vmem:[%s7946_s0 + $0x48] ss:$76 sps:$4 sm:$0xff]  }
 0x121   :  { %4078 = vmatpush2.bf16.msra.mxu1 %v6764_v50  ;;  %4036 = vmatprep.subr.bf16.mxu0 %v6769_v51  ;;  %v6837_v50 = vld [vmem:[#allocation3 + $0xe8] ss:$16 sps:$4 sm:$0xff]   ;;  %v6842_v51 = vld [vmem:[#allocation3 + $0x1064] ss:$16 sps:$4 sm:$0xff]  }
 0x122   :  { %4079 = vmatprep.subr.bf16.mxu1 %v6772_v52  ;;  %v6845_v52 = vld [vmem:[#allocation3 + $0xcc] ss:$16 sps:$4 sm:$0xff]  }
 0x124   :  { %4037 = vmatpush2.bf16.msra.mxu0 %v6767_v53  ;;  %v6840_v53 = vld [vmem:[#allocation3 + $0x1060] ss:$16 sps:$4 sm:$0xff]  }
 0x125   :  { %4080 = vmatpush2.bf16.msra.mxu1 %v6770_v54  ;;  %4038 = vmatprep.subr.bf16.mxu0 %v6775_v55  ;;  %v6843_v54 = vld [vmem:[#allocation3 + $0xc8] ss:$16 sps:$4 sm:$0xff]   ;;  %v6848_v55 = vld [vmem:[#allocation3 + $0x1044] ss:$16 sps:$4 sm:$0xff]  }
 0x126   :  { %4081 = vmatprep.subr.bf16.mxu1 %v6778_v56  ;;  %v6851_v56 = vld [vmem:[#allocation3 + $0xac] ss:$16 sps:$4 sm:$0xff]  }
 0x128   :  { %4039 = vmatpush2.bf16.msra.mxu0 %v6773_v57  ;;  %v7509_v57 = vld [vmem:[%s7946_s0 + $0x4] ss:$76 sps:$4 sm:$0xff]  }
 0x129   :  { %4082 = vmatpush2.bf16.msra.mxu1 %v6776_v58  ;;  %4040 = vmatprep.subr.bf16.mxu0 %v6781_v59  ;;  %v6846_v58 = vld [vmem:[#allocation3 + $0x1040] ss:$16 sps:$4 sm:$0xff]   ;;  %v6849_v59 = vld [vmem:[#allocation3 + $0xa8] ss:$16 sps:$4 sm:$0xff]  }
 0x12a   :  { %4083 = vmatprep.subr.bf16.mxu1 %v6784_v60  ;;  %v6854_v60 = vld [vmem:[#allocation3 + $0x1024] ss:$16 sps:$4 sm:$0xff]  }
 0x12c   :  { %4041 = vmatpush2.bf16.msra.mxu0 %v6779_v61  ;;  %v6857_v61 = vld [vmem:[#allocation3 + $0x8c] ss:$16 sps:$4 sm:$0xff]  }
 0x12d   :  { %4084 = vmatpush2.bf16.msra.mxu1 %v6782_v62  ;;  %4042 = vmatprep.subr.bf16.mxu0 %v6787_v63  ;;  %v6852_v62 = vld [vmem:[#allocation3 + $0x1020] ss:$16 sps:$4 sm:$0xff]   ;;  %v6855_v63 = vld [vmem:[#allocation3 + $0x88] ss:$16 sps:$4 sm:$0xff]  }
 0x12e   :  { %4085 = vmatprep.subr.bf16.mxu1 %v6790_v0  ;;  %v6860_v0 = vld [vmem:[#allocation3 + $0x1004] ss:$16 sps:$4 sm:$0xff]  }
 0x130   :  { %4043 = vmatpush2.bf16.msra.mxu0 %v6785_v1  ;;  %v6863_v1 = vld [vmem:[#allocation3 + $0x6c] ss:$16 sps:$4 sm:$0xff]  }
 0x131   :  { %4086 = vmatpush2.bf16.msra.mxu1 %v6788_v2  ;;  %4044 = vmatprep.subr.bf16.mxu0 %v6793_v3  ;;  %v6858_v2 = vld [vmem:[#allocation3 + $0x1000] ss:$16 sps:$4 sm:$0xff]   ;;  %v6861_v3 = vld [vmem:[#allocation3 + $0x68] ss:$16 sps:$4 sm:$0xff]  }
 0x132   :  { %4087 = vmatprep.subr.bf16.mxu1 %v6796_v4  ;;  %v6866_v4 = vld [vmem:[#allocation3 + $0x11e4] ss:$16 sps:$4 sm:$0xff]  }
 0x134   :  { %4045 = vmatpush2.bf16.msra.mxu0 %v6791_v5  ;;  %v6869_v5 = vld [vmem:[#allocation3 + $0x4c] ss:$16 sps:$4 sm:$0xff]  }
 0x135   :  { %4088 = vmatpush2.bf16.msra.mxu1 %v6794_v6  ;;  %4046 = vmatprep.subr.bf16.mxu0 %v6799_v7  ;;  %v6864_v6 = vld [vmem:[#allocation3 + $0x11e0] ss:$16 sps:$4 sm:$0xff]   ;;  %v6867_v7 = vld [vmem:[#allocation3 + $0x48] ss:$16 sps:$4 sm:$0xff]  }
 0x136   :  { %4089 = vmatprep.subr.bf16.mxu1 %v6802_v9  ;;  %v6875_v9 = vld [vmem:[#allocation3 + $0x2c] ss:$16 sps:$4 sm:$0xff]  }
 0x138   :  { %4047 = vmatpush2.bf16.msra.mxu0 %v6797_v10  ;;  %v6870_v10 = vld [vmem:[#allocation3 + $0x11c0] ss:$16 sps:$4 sm:$0xff]  }
 0x139   :  { %4090 = vmatpush2.bf16.msra.mxu1 %v6800_v11  ;;  %4048 = vmatprep.subr.bf16.mxu0 %v6805_v12  ;;  %v6873_v11 = vld [vmem:[#allocation3 + $0x28] ss:$16 sps:$4 sm:$0xff]   ;;  %v6878_v12 = vld [vmem:[#allocation3 + $0x11a4] ss:$16 sps:$4 sm:$0xff]  }
 0x13a   :  { %4091 = vmatprep.subr.bf16.mxu1 %v6808_v14  ;;  %v6881_v14 = vld [vmem:[#allocation3 + $0xc] ss:$16 sps:$4 sm:$0xff]  }
 0x13c   :  { %4049 = vmatpush2.bf16.msra.mxu0 %v6803_v15  ;;  %v6876_v15 = vld [vmem:[#allocation3 + $0x11a0] ss:$16 sps:$4 sm:$0xff]  }
 0x13d   :  { %4092 = vmatpush2.bf16.msra.mxu1 %v6806_v16  ;;  %4104 = vmatprep.subr.bf16.mxu0 %v6817_v19  ;;  %v6879_v16 = vld [vmem:[#allocation3 + $0x8] ss:$16 sps:$4 sm:$0xff]   ;;  %v6887_v19 = vld [vmem:[#allocation3 + $0x1ec] ss:$16 sps:$4 sm:$0xff]  }
 0x13e   :  { %4157 = vmatprep.subr.bf16.mxu1 %v6820_v20  ;;  %v6882_v20 = vld [vmem:[#allocation3 + $0x1180] ss:$16 sps:$4 sm:$0xff]  }
 0x13f   :  { %v3794_v29 = vpop.f32.mrf.mxu0  ;;  %4051 = vmatmul.mubr.bf16.vlgmr.msra.gmra.mxu0 %v6809_v21  ;;  %v6885_v21 = vld [vmem:[#allocation3 + $0x1e8] ss:$16 sps:$4 sm:$0xff]  }
 0x140   :  { %v3837_v30 = vpop.f32.mrf.mxu1  ;;  %4094 = vmatmul.mubr.bf16.vlgmr.msra.gmra.mxu1 %v6812_v22  ;;  %v3795_v33 = vadd.f32 %v3794_v29, %v704_v25  ;;  %4105 = vmatpush1.bf16.msra.mxu0 %v6815_v23  ;;  %v6890_v22 = vld [vmem:[#allocation3 + $0x1164] ss:$16 sps:$4 sm:$0xff]   ;;  %v6893_v23 = vld [vmem:[#allocation3 + $0x1cc] ss:$16 sps:$4 sm:$0xff]   ;;  %v6897_v29 = vld [vmem:[#allocation3 + $0x1a8] ss:$16 sps:$4 sm:$0xff]  }
 0x141   :  { %4158 = vmatpush1.bf16.msra.mxu1 %v6818_v24  ;;  %v7758_v35 = vpop.f32.mrf.mxu0  ;;  %4106 = vmatprep.subr.bf16.mxu0 %v6823_v26  ;;  %v6888_v24 = vld [vmem:[#allocation3 + $0x1160] ss:$16 sps:$4 sm:$0xff]   ;;  %v6896_v26 = vld [vmem:[#allocation3 + $0x1144] ss:$16 sps:$4 sm:$0xff]  }
 0x142   :  { %v7760_v36 = vpop.f32.mrf.mxu1  ;;  %4159 = vmatprep.subr.bf16.mxu1 %v6826_v27  ;;  %v7762_v38 = vadd.f32 %v3837_v30, %v3795_v33  ;;  %4179 = vmatprep.mubr.bf16.mxu1 %v7642_v39  ;;  %v6899_v27 = vld [vmem:[#allocation3 + $0x1ac] ss:$16 sps:$4 sm:$0xff]   ;;  %v6902_v30 = vld [vmem:[#allocation3 + $0x1124] ss:$16 sps:$4 sm:$0xff]   ;;  %v6903_v33 = vld [vmem:[#allocation3 + $0x188] ss:$16 sps:$4 sm:$0xff]  }
 0x143   :  { %4136 = vmatprep.mubr.bf16.mxu0 %v6914_v28  ;;  %v3798_v40 = vpop.f32.mrf.mxu0  ;;  %v6894_v28 = vld [vmem:[#allocation3 + $0x1140] ss:$16 sps:$4 sm:$0xff]  }
 0x144   :  { %v3799_v43 = vadd.f32 %v3798_v40, %v704_v25  ;;  %4107 = vmatpush1.bf16.msra.mxu0 %v6821_v31  ;;  %v3841_v45 = vpop.f32.mrf.mxu1  ;;  %v6891_v25 = vld [vmem:[#allocation3 + $0x1c8] ss:$16 sps:$4 sm:$0xff]   ;;  %v6905_v31 = vld [vmem:[#allocation3 + $0x18c] ss:$16 sps:$4 sm:$0xff]   ;;  %v6906_v40 = vld [vmem:[#allocation3 + $0x1100] ss:$16 sps:$4 sm:$0xff]  }
 0x145   :  { %4160 = vmatpush1.bf16.msra.mxu1 %v6824_v32  ;;  %4108 = vmatprep.subr.bf16.mxu0 %v6829_v34  ;;  %v6900_v32 = vld [vmem:[#allocation3 + $0x1120] ss:$16 sps:$4 sm:$0xff]   ;;  %v6908_v34 = vld [vmem:[#allocation3 + $0x1104] ss:$16 sps:$4 sm:$0xff]  }
 0x146   :  { %4161 = vmatprep.subr.bf16.mxu1 %v6832_v37  ;;  %v7765_v47 = vadd.f32 %v3841_v45, %v3799_v43  ;;  %v6911_v37 = vld [vmem:[#allocation3 + $0x16c] ss:$16 sps:$4 sm:$0xff]   ;;  %v6915_v45 = vld [vmem:[#allocation3 + $0x148] ss:$16 sps:$4 sm:$0xff]  }
 0x147   :  { %v6917_v43 = vld [vmem:[#allocation3 + $0x14c] ss:$16 sps:$4 sm:$0xff]  }
 0x148   :  { %4109 = vmatpush1.bf16.msra.mxu0 %v6827_v41  ;;  %v6909_v41 = vld [vmem:[#allocation3 + $0x168] ss:$16 sps:$4 sm:$0xff]  }
 0x149   :  { %4162 = vmatpush1.bf16.msra.mxu1 %v6830_v42  ;;  %4110 = vmatprep.subr.bf16.mxu0 %v6835_v44  ;;  %v6912_v42 = vld [vmem:[%s7946_s0 + $0x40] ss:$76 sps:$4 sm:$0xff]  }
 0x14a   :  { %4190 = vmatprep.subr.bf16.mxu1 %v6839_v46  ;;  %v6920_v44 = vld [vmem:[#allocation3 + $0x2ec] ss:$16 sps:$4 sm:$0xff]   ;;  %v6918_v46 = vld [vmem:[#allocation3 + $0x2e8] ss:$16 sps:$4 sm:$0xff]  }
 0x14c   :  { %6268 = vmatmul.mubr.msk.bf16.vlgmr.msra.gmra.mxu1 %vm3756_vm0, %v6836_v49  ;;  %4111 = vmatpush1.bf16.msra.mxu0 %v6833_v48  ;;  %v7777_v48 = vpop.f32.mrf.mxu0  ;;  %v7779_v49 = vpop.f32.mrf.mxu1 }
 0x14d   :  { %4191 = vmatpush1.bf16.msra.mxu1 %v6837_v50  ;;  %4112 = vmatprep.subr.bf16.mxu0 %v6842_v51  ;;  %v6923_v50 = vld [vmem:[#allocation3 + $0x12c] ss:$16 sps:$4 sm:$0xff]  }
 0x14e   :  { %4192 = vmatprep.subr.bf16.mxu1 %v6845_v52  ;;  %4222 = vmatprep.mubr.bf16.mxu1 %v7509_v57  ;;  %v6926_v51 = vld [vmem:[#allocation3 + $0x2cc] ss:$16 sps:$4 sm:$0xff]   ;;  %v6921_v52 = vld [vmem:[#allocation3 + $0x128] ss:$16 sps:$4 sm:$0xff]  }
 0x150   :  { %4113 = vmatpush1.bf16.msra.mxu0 %v6840_v53  ;;  %v6924_v53 = vld [vmem:[#allocation3 + $0x2c8] ss:$16 sps:$4 sm:$0xff]  }
 0x151   :  { %4193 = vmatpush1.bf16.msra.mxu1 %v6843_v54  ;;  %4114 = vmatprep.subr.bf16.mxu0 %v6848_v55 }
 0x152   :  { %4194 = vmatprep.subr.bf16.mxu1 %v6851_v56 }
 0x154   :  { %4115 = vmatpush1.bf16.msra.mxu0 %v6846_v58 }
 0x155   :  { %4195 = vmatpush1.bf16.msra.mxu1 %v6849_v59  ;;  %4116 = vmatprep.subr.bf16.mxu0 %v6854_v60  ;;  %v6929_v59 = vld [vmem:[#allocation3 + $0x10c] ss:$16 sps:$4 sm:$0xff]  }
 0x156   :  { %4196 = vmatprep.subr.bf16.mxu1 %v6857_v61  ;;  %v6932_v60 = vld [vmem:[#allocation3 + $0x2ac] ss:$16 sps:$4 sm:$0xff]  }
 0x158   :  { %4117 = vmatpush1.bf16.msra.mxu0 %v6852_v62  ;;  %v6927_v62 = vld [vmem:[#allocation3 + $0x108] ss:$16 sps:$4 sm:$0xff]  }
 0x159   :  { %4197 = vmatpush1.bf16.msra.mxu1 %v6855_v63  ;;  %4118 = vmatprep.subr.bf16.mxu0 %v6860_v0  ;;  %v6930_v63 = vld [vmem:[#allocation3 + $0x2a8] ss:$16 sps:$4 sm:$0xff]  }
 0x15a   :  { %4198 = vmatprep.subr.bf16.mxu1 %v6863_v1  ;;  %v7510_v0 = vld [vmem:[%s7946_s0 + $0xc] ss:$76 sps:$4 sm:$0xff]  }
 0x15c   :  { %4119 = vmatpush1.bf16.msra.mxu0 %v6858_v2 }
 0x15d   :  { %4199 = vmatpush1.bf16.msra.mxu1 %v6861_v3  ;;  %4120 = vmatprep.subr.bf16.mxu0 %v6866_v4  ;;  %v6935_v3 = vld [vmem:[#allocation3 + $0x28c] ss:$16 sps:$4 sm:$0xff]  }
 0x15e   :  { %4200 = vmatprep.subr.bf16.mxu1 %v6869_v5  ;;  %v6938_v4 = vld [vmem:[#allocation3 + $0x4ec] ss:$16 sps:$4 sm:$0xff]  }
 0x160   :  { %4121 = vmatpush2.bf16.msra.mxu0 %v6864_v6  ;;  %v6933_v6 = vld [vmem:[#allocation3 + $0x288] ss:$16 sps:$4 sm:$0xff]  }
 0x161   :  { %4201 = vmatpush1.bf16.msra.mxu1 %v6867_v7  ;;  %4122 = vmatprep.subr.bf16.mxu0 %v6872_v8  ;;  %v6936_v7 = vld [vmem:[#allocation3 + $0x4e8] ss:$16 sps:$4 sm:$0xff]   ;;  %v6941_v8 = vld [vmem:[#allocation3 + $0x26c] ss:$16 sps:$4 sm:$0xff]  }
 0x162   :  { %4202 = vmatprep.subr.bf16.mxu1 %v6875_v9  ;;  %v6944_v9 = vld [vmem:[#allocation3 + $0x4cc] ss:$16 sps:$4 sm:$0xff]  }
 0x164   :  { %4123 = vmatpush2.bf16.msra.mxu0 %v6870_v10  ;;  %v6939_v10 = vld [vmem:[#allocation3 + $0x268] ss:$16 sps:$4 sm:$0xff]  }
 0x165   :  { %4203 = vmatpush1.bf16.msra.mxu1 %v6873_v11  ;;  %4124 = vmatprep.subr.bf16.mxu0 %v6878_v12  ;;  %v6942_v11 = vld [vmem:[#allocation3 + $0x4c8] ss:$16 sps:$4 sm:$0xff]   ;;  %v6947_v12 = vld [vmem:[#allocation3 + $0x24c] ss:$16 sps:$4 sm:$0xff]  }
 0x166   :  { %4204 = vmatprep.subr.bf16.mxu1 %v6881_v14  ;;  %v6950_v14 = vld [vmem:[#allocation3 + $0x4ac] ss:$16 sps:$4 sm:$0xff]  }
 0x168   :  { %4125 = vmatpush2.bf16.msra.mxu0 %v6876_v15  ;;  %v6945_v15 = vld [vmem:[#allocation3 + $0x248] ss:$16 sps:$4 sm:$0xff]  }
 0x169   :  { %4205 = vmatpush1.bf16.msra.mxu1 %v6879_v16  ;;  %4126 = vmatprep.subr.bf16.mxu0 %v6884_v17  ;;  %v6948_v16 = vld [vmem:[#allocation3 + $0x4a8] ss:$16 sps:$4 sm:$0xff]   ;;  %v7512_v17 = vld [vmem:[%s7946_s0 + $0x14] ss:$76 sps:$4 sm:$0xff]  }
 0x16a   :  { %4206 = vmatprep.subr.bf16.mxu1 %v6887_v19  ;;  %v6953_v19 = vld [vmem:[#allocation3 + $0x22c] ss:$16 sps:$4 sm:$0xff]  }
 0x16c   :  { %4127 = vmatpush2.bf16.msra.mxu0 %v6882_v20  ;;  %v6956_v20 = vld [vmem:[#allocation3 + $0x48c] ss:$16 sps:$4 sm:$0xff]  }
 0x16d   :  { %4207 = vmatpush2.bf16.msra.mxu1 %v6885_v21  ;;  %4128 = vmatprep.subr.bf16.mxu0 %v6890_v22  ;;  %v6951_v21 = vld [vmem:[#allocation3 + $0x228] ss:$16 sps:$4 sm:$0xff]  }
 0x16e   :  { %4208 = vmatprep.subr.bf16.mxu1 %v6893_v23  ;;  %v6954_v22 = vld [vmem:[#allocation3 + $0x488] ss:$16 sps:$4 sm:$0xff]   ;;  %v6959_v23 = vld [vmem:[#allocation3 + $0x20c] ss:$16 sps:$4 sm:$0xff]  }
 0x170   :  { %4129 = vmatpush2.bf16.msra.mxu0 %v6888_v24  ;;  %v6962_v24 = vld [vmem:[#allocation3 + $0x46c] ss:$16 sps:$4 sm:$0xff]  }
 0x171   :  { %4209 = vmatpush2.bf16.msra.mxu1 %v6891_v25  ;;  %4130 = vmatprep.subr.bf16.mxu0 %v6896_v26  ;;  %v6957_v25 = vld [vmem:[#allocation3 + $0x208] ss:$16 sps:$4 sm:$0xff]  }
 0x172   :  { %4210 = vmatprep.subr.bf16.mxu1 %v6899_v27  ;;  %v6960_v26 = vld [vmem:[#allocation3 + $0x468] ss:$16 sps:$4 sm:$0xff]   ;;  %v6965_v27 = vld [vmem:[#allocation3 + $0x3ec] ss:$16 sps:$4 sm:$0xff]  }
 0x174   :  { %4131 = vmatpush2.bf16.msra.mxu0 %v6894_v28  ;;  %v6968_v28 = vld [vmem:[#allocation3 + $0x44c] ss:$16 sps:$4 sm:$0xff]  }
 0x175   :  { %4211 = vmatpush2.bf16.msra.mxu1 %v6897_v29  ;;  %4132 = vmatprep.subr.bf16.mxu0 %v6902_v30  ;;  %v6963_v29 = vld [vmem:[#allocation3 + $0x3e8] ss:$16 sps:$4 sm:$0xff]  }
 0x176   :  { %4212 = vmatprep.subr.bf16.mxu1 %v6905_v31  ;;  %v6966_v30 = vld [vmem:[#allocation3 + $0x448] ss:$16 sps:$4 sm:$0xff]   ;;  %v6971_v31 = vld [vmem:[#allocation3 + $0x3cc] ss:$16 sps:$4 sm:$0xff]  }
 0x178   :  { %4133 = vmatpush2.bf16.msra.mxu0 %v6900_v32  ;;  %v6974_v32 = vld [vmem:[#allocation3 + $0x42c] ss:$16 sps:$4 sm:$0xff]  }
 0x179   :  { %4213 = vmatpush2.bf16.msra.mxu1 %v6903_v33  ;;  %4134 = vmatprep.subr.bf16.mxu0 %v6908_v34  ;;  %v6969_v33 = vld [vmem:[#allocation3 + $0x3c8] ss:$16 sps:$4 sm:$0xff]  }
 0x17a   :  { %4214 = vmatprep.subr.bf16.mxu1 %v6911_v37  ;;  %v6972_v34 = vld [vmem:[#allocation3 + $0x428] ss:$16 sps:$4 sm:$0xff]   ;;  %v6977_v37 = vld [vmem:[#allocation3 + $0x3ac] ss:$16 sps:$4 sm:$0xff]  }
 0x17c   :  { %4135 = vmatpush2.bf16.msra.mxu0 %v6906_v40  ;;  %v6980_v40 = vld [vmem:[#allocation3 + $0x40c] ss:$16 sps:$4 sm:$0xff]  }
 0x17d   :  { %4215 = vmatpush2.bf16.msra.mxu1 %v6909_v41  ;;  %4233 = vmatprep.subr.bf16.mxu0 %v6920_v44  ;;  %v6975_v41 = vld [vmem:[#allocation3 + $0x3a8] ss:$16 sps:$4 sm:$0xff]   ;;  %v6986_v44 = vld [vmem:[#allocation3 + $0x5ec] ss:$16 sps:$4 sm:$0xff]  }
 0x17e   :  { %4216 = vmatprep.subr.bf16.mxu1 %v6917_v43  ;;  %v6983_v43 = vld [vmem:[#allocation3 + $0x38c] ss:$16 sps:$4 sm:$0xff]  }
 0x17f   :  { %v3880_v54 = vpop.f32.mrf.mxu0  ;;  %4137 = vmatmul.mubr.bf16.vlgmr.msra.gmra.mxu0 %v6912_v42  ;;  %v6978_v42 = vld [vmem:[#allocation3 + $0x408] ss:$16 sps:$4 sm:$0xff]  }
 0x180   :  { %v3923_v55 = vpop.f32.mrf.mxu1  ;;  %v3881_v56 = vadd.f32 %v3880_v54, %v7762_v38  ;;  %4234 = vmatpush1.bf16.msra.mxu0 %v6918_v46  ;;  %4265 = vmatprep.mubr.bf16.mxu0 %v7510_v0  ;;  %v6984_v46 = vld [vmem:[#allocation3 + $0x5e8] ss:$16 sps:$4 sm:$0xff]   ;;  %v6995_v54 = vld [vmem:[#allocation3 + $0x34c] ss:$16 sps:$4 sm:$0xff]  }
 0x181   :  { %4217 = vmatpush2.bf16.msra.mxu1 %v6915_v45  ;;  %v7782_v57 = vpop.f32.mrf.mxu0  ;;  %4235 = vmatprep.subr.bf16.mxu0 %v6926_v51  ;;  %v6981_v45 = vld [vmem:[#allocation3 + $0x388] ss:$16 sps:$4 sm:$0xff]   ;;  %v6992_v51 = vld [vmem:[#allocation3 + $0x5cc] ss:$16 sps:$4 sm:$0xff]  }
 0x182   :  { %v7784_v58 = vpop.f32.mrf.mxu1  ;;  %4218 = vmatprep.subr.bf16.mxu1 %v6923_v50  ;;  %v7786_v61 = vadd.f32 %v3923_v55, %v3881_v56  ;;  %v6989_v50 = vld [vmem:[#allocation3 + $0x36c] ss:$16 sps:$4 sm:$0xff]   ;;  %v6993_v56 = vld [vmem:[#allocation3 + $0x348] ss:$16 sps:$4 sm:$0xff]  }
 0x183   :  { %v3884_v38 = vpop.f32.mrf.mxu0  ;;  %v6998_v55 = vld [vmem:[#allocation3 + $0x5ac] ss:$16 sps:$4 sm:$0xff]   ;;  %v7002_v0 = vld [vmem:[#allocation3 + $0x588] ss:$16 sps:$4 sm:$0xff]  }
 0x184   :  { %v3885_v1 = vadd.f32 %v3884_v38, %v7765_v47  ;;  %4236 = vmatpush1.bf16.msra.mxu0 %v6924_v53  ;;  %v3927_v2 = vpop.f32.mrf.mxu1  ;;  %v7511_v47 = vld [vmem:[%s7946_s0] ss:$76 sps:$4 sm:$0xff]  }
 0x185   :  { %4219 = vmatpush2.bf16.msra.mxu1 %v6921_v52  ;;  %4237 = vmatprep.subr.bf16.mxu0 %v6932_v60  ;;  %v6987_v52 = vld [vmem:[#allocation3 + $0x368] ss:$16 sps:$4 sm:$0xff]   ;;  %v7001_v60 = vld [vmem:[#allocation3 + $0x32c] ss:$16 sps:$4 sm:$0xff]  }
 0x186   :  { %4220 = vmatprep.subr.bf16.mxu1 %v6929_v59  ;;  %v7792_v5 = vadd.f32 %v3927_v2, %v3885_v1  ;;  %v6990_v53 = vld [vmem:[#allocation3 + $0x5c8] ss:$16 sps:$4 sm:$0xff]   ;;  %v7007_v38 = vld [vmem:[#allocation3 + $0x30c] ss:$16 sps:$4 sm:$0xff]  }
 0x187   :  { %v6996_v59 = vld [vmem:[#allocation3 + $0x5a8] ss:$16 sps:$4 sm:$0xff]   ;;  %v7010_v1 = vld [vmem:[#allocation3 + $0x56c] ss:$16 sps:$4 sm:$0xff]  }
 0x188   :  { %4238 = vmatpush1.bf16.msra.mxu0 %v6930_v63  ;;  %v6999_v63 = vld [vmem:[#allocation3 + $0x328] ss:$16 sps:$4 sm:$0xff]  }
 0x189   :  { %4221 = vmatpush2.bf16.msra.mxu1 %v6927_v62  ;;  %4239 = vmatprep.subr.bf16.mxu0 %v6935_v3  ;;  %v7004_v62 = vld [vmem:[#allocation3 + $0x58c] ss:$16 sps:$4 sm:$0xff]   ;;  %v7005_v2 = vld [vmem:[#allocation3 + $0x308] ss:$16 sps:$4 sm:$0xff]  }
 0x18a   :  { %4276 = vmatprep.subr.bf16.mxu1 %v6938_v4  ;;  %v7008_v3 = vld [vmem:[#allocation3 + $0x568] ss:$16 sps:$4 sm:$0xff]   ;;  %v7013_v4 = vld [vmem:[#allocation3 + $0x54c] ss:$16 sps:$4 sm:$0xff]  }
 0x18c   :  { %4223 = vmatmul.mubr.bf16.vlgmr.msra.gmra.mxu1 %v7511_v47  ;;  %4240 = vmatpush1.bf16.msra.mxu0 %v6933_v6  ;;  %v7016_v6 = vld [vmem:[#allocation3 + $0x6ec] ss:$16 sps:$4 sm:$0xff]  }
 0x18d   :  { %4277 = vmatpush1.bf16.msra.mxu1 %v6936_v7  ;;  %4241 = vmatprep.subr.bf16.mxu0 %v6941_v8  ;;  %v7011_v7 = vld [vmem:[#allocation3 + $0x548] ss:$16 sps:$4 sm:$0xff]   ;;  %v7022_v47 = vld [vmem:[#allocation3 + $0x6cc] ss:$16 sps:$4 sm:$0xff]  }
 0x18e   :  { %4278 = vmatprep.subr.bf16.mxu1 %v6944_v9  ;;  %4308 = vmatprep.mubr.bf16.mxu1 %v7512_v17  ;;  %v7014_v8 = vld [vmem:[#allocation3 + $0x6e8] ss:$16 sps:$4 sm:$0xff]   ;;  %v7800_v9 = vpop.f32.mrf.mxu0 }
 0x18f   :  { %v7513_v17 = vld [vmem:[%s7946_s0 + $0x8] ss:$76 sps:$4 sm:$0xff]  }
 0x190   :  { %4242 = vmatpush1.bf16.msra.mxu0 %v6939_v10  ;;  %v7802_v10 = vpop.f32.mrf.mxu1 }
 0x191   :  { %4279 = vmatpush1.bf16.msra.mxu1 %v6942_v11  ;;  %4243 = vmatprep.subr.bf16.mxu0 %v6947_v12  ;;  %v7019_v11 = vld [vmem:[#allocation3 + $0x52c] ss:$16 sps:$4 sm:$0xff]   ;;  %v7017_v12 = vld [vmem:[#allocation3 + $0x528] ss:$16 sps:$4 sm:$0xff]  }
 0x192   :  { %4280 = vmatprep.subr.bf16.mxu1 %v6950_v14  ;;  %v7020_v14 = vld [vmem:[#allocation3 + $0x6c8] ss:$16 sps:$4 sm:$0xff]  }
 0x194   :  { %4244 = vmatpush1.bf16.msra.mxu0 %v6945_v15 }
 0x195   :  { %4281 = vmatpush1.bf16.msra.mxu1 %v6948_v16  ;;  %4245 = vmatprep.subr.bf16.mxu0 %v6953_v19 }
 0x196   :  { %4282 = vmatprep.subr.bf16.mxu1 %v6956_v20 }
 0x198   :  { %4246 = vmatpush1.bf16.msra.mxu0 %v6951_v21 }
 0x199   :  { %4283 = vmatpush1.bf16.msra.mxu1 %v6954_v22  ;;  %4247 = vmatprep.subr.bf16.mxu0 %v6959_v23  ;;  %v7025_v22 = vld [vmem:[#allocation3 + $0x50c] ss:$16 sps:$4 sm:$0xff]  }
 0x19a   :  { %4284 = vmatprep.subr.bf16.mxu1 %v6962_v24  ;;  %v7028_v23 = vld [vmem:[#allocation3 + $0x6ac] ss:$16 sps:$4 sm:$0xff]  }
 0x19c   :  { %4248 = vmatpush1.bf16.msra.mxu0 %v6957_v25  ;;  %v7023_v25 = vld [vmem:[#allocation3 + $0x508] ss:$16 sps:$4 sm:$0xff]  }
 0x19d   :  { %4285 = vmatpush1.bf16.msra.mxu1 %v6960_v26  ;;  %4249 = vmatprep.subr.bf16.mxu0 %v6965_v27  ;;  %v7026_v26 = vld [vmem:[#allocation3 + $0x6a8] ss:$16 sps:$4 sm:$0xff]  }
 0x19e   :  { %4286 = vmatprep.subr.bf16.mxu1 %v6968_v28  ;;  %v7514_v27 = vld [vmem:[%s7946_s0 + $0x1c] ss:$76 sps:$4 sm:$0xff]  }
 0x1a0   :  { %4250 = vmatpush2.bf16.msra.mxu0 %v6963_v29 }
 0x1a1   :  { %4287 = vmatpush1.bf16.msra.mxu1 %v6966_v30  ;;  %4251 = vmatprep.subr.bf16.mxu0 %v6971_v31  ;;  %v7031_v30 = vld [vmem:[#allocation3 + $0x68c] ss:$16 sps:$4 sm:$0xff]  }
 0x1a2   :  { %4288 = vmatprep.subr.bf16.mxu1 %v6974_v32  ;;  %v7034_v31 = vld [vmem:[#allocation3 + $0x8ec] ss:$16 sps:$4 sm:$0xff]  }
 0x1a4   :  { %4252 = vmatpush2.bf16.msra.mxu0 %v6969_v33  ;;  %v7029_v33 = vld [vmem:[#allocation3 + $0x688] ss:$16 sps:$4 sm:$0xff]  }
 0x1a5   :  { %4289 = vmatpush1.bf16.msra.mxu1 %v6972_v34  ;;  %4253 = vmatprep.subr.bf16.mxu0 %v6977_v37  ;;  %v7032_v34 = vld [vmem:[#allocation3 + $0x8e8] ss:$16 sps:$4 sm:$0xff]   ;;  %v7037_v37 = vld [vmem:[#allocation3 + $0x66c] ss:$16 sps:$4 sm:$0xff]  }
 0x1a6   :  { %4290 = vmatprep.subr.bf16.mxu1 %v6980_v40  ;;  %v7040_v40 = vld [vmem:[#allocation3 + $0x8cc] ss:$16 sps:$4 sm:$0xff]  }
 0x1a8   :  { %4254 = vmatpush2.bf16.msra.mxu0 %v6975_v41  ;;  %v7035_v41 = vld [vmem:[#allocation3 + $0x668] ss:$16 sps:$4 sm:$0xff]  }
 0x1a9   :  { %4291 = vmatpush1.bf16.msra.mxu1 %v6978_v42  ;;  %4255 = vmatprep.subr.bf16.mxu0 %v6983_v43  ;;  %v7038_v42 = vld [vmem:[#allocation3 + $0x8c8] ss:$16 sps:$4 sm:$0xff]   ;;  %v7043_v43 = vld [vmem:[#allocation3 + $0x64c] ss:$16 sps:$4 sm:$0xff]  }
 0x1aa   :  { %4292 = vmatprep.subr.bf16.mxu1 %v6986_v44  ;;  %v7046_v44 = vld [vmem:[#allocation3 + $0x8ac] ss:$16 sps:$4 sm:$0xff]  }
 0x1ac   :  { %4256 = vmatpush2.bf16.msra.mxu0 %v6981_v45  ;;  %v7041_v45 = vld [vmem:[#allocation3 + $0x648] ss:$16 sps:$4 sm:$0xff]  }
 0x1ad   :  { %4293 = vmatpush2.bf16.msra.mxu1 %v6984_v46  ;;  %4257 = vmatprep.subr.bf16.mxu0 %v6989_v50  ;;  %v7044_v46 = vld [vmem:[#allocation3 + $0x8a8] ss:$16 sps:$4 sm:$0xff]   ;;  %v7516_v50 = vld [vmem:[%s7946_s0 + $0x24] ss:$76 sps:$4 sm:$0xff]  }
 0x1ae   :  { %4294 = vmatprep.subr.bf16.mxu1 %v6992_v51  ;;  %v7049_v51 = vld [vmem:[#allocation3 + $0x62c] ss:$16 sps:$4 sm:$0xff]  }
 0x1b0   :  { %4258 = vmatpush2.bf16.msra.mxu0 %v6987_v52  ;;  %v7052_v52 = vld [vmem:[#allocation3 + $0x88c] ss:$16 sps:$4 sm:$0xff]  }
 0x1b1   :  { %4295 = vmatpush2.bf16.msra.mxu1 %v6990_v53  ;;  %4259 = vmatprep.subr.bf16.mxu0 %v6995_v54  ;;  %v7047_v53 = vld [vmem:[#allocation3 + $0x628] ss:$16 sps:$4 sm:$0xff]  }
 0x1b2   :  { %4296 = vmatprep.subr.bf16.mxu1 %v6998_v55  ;;  %v7050_v54 = vld [vmem:[#allocation3 + $0x888] ss:$16 sps:$4 sm:$0xff]   ;;  %v7055_v55 = vld [vmem:[#allocation3 + $0x60c] ss:$16 sps:$4 sm:$0xff]  }
 0x1b4   :  { %4260 = vmatpush2.bf16.msra.mxu0 %v6993_v56  ;;  %v7058_v56 = vld [vmem:[#allocation3 + $0x86c] ss:$16 sps:$4 sm:$0xff]  }
 0x1b5   :  { %4297 = vmatpush2.bf16.msra.mxu1 %v6996_v59  ;;  %4261 = vmatprep.subr.bf16.mxu0 %v7001_v60  ;;  %v7053_v59 = vld [vmem:[#allocation3 + $0x608] ss:$16 sps:$4 sm:$0xff]  }
 0x1b6   :  { %4298 = vmatprep.subr.bf16.mxu1 %v7004_v62  ;;  %v7056_v60 = vld [vmem:[#allocation3 + $0x868] ss:$16 sps:$4 sm:$0xff]   ;;  %v7061_v62 = vld [vmem:[#allocation3 + $0x7ec] ss:$16 sps:$4 sm:$0xff]  }
 0x1b8   :  { %4262 = vmatpush2.bf16.msra.mxu0 %v6999_v63  ;;  %v7064_v63 = vld [vmem:[#allocation3 + $0x84c] ss:$16 sps:$4 sm:$0xff]  }
 0x1b9   :  { %4299 = vmatpush2.bf16.msra.mxu1 %v7002_v0  ;;  %4263 = vmatprep.subr.bf16.mxu0 %v7007_v38  ;;  %v7059_v0 = vld [vmem:[#allocation3 + $0x7e8] ss:$16 sps:$4 sm:$0xff]  }
 0x1ba   :  { %4300 = vmatprep.subr.bf16.mxu1 %v7010_v1  ;;  %v7062_v38 = vld [vmem:[#allocation3 + $0x848] ss:$16 sps:$4 sm:$0xff]   ;;  %v7067_v1 = vld [vmem:[#allocation3 + $0x7cc] ss:$16 sps:$4 sm:$0xff]  }
 0x1bc   :  { %4264 = vmatpush2.bf16.msra.mxu0 %v7005_v2  ;;  %v7070_v2 = vld [vmem:[#allocation3 + $0x82c] ss:$16 sps:$4 sm:$0xff]  }
 0x1bd   :  { %4301 = vmatpush2.bf16.msra.mxu1 %v7008_v3  ;;  %4319 = vmatprep.subr.bf16.mxu0 %v7016_v6  ;;  %v7065_v3 = vld [vmem:[#allocation3 + $0x7c8] ss:$16 sps:$4 sm:$0xff]   ;;  %v7073_v6 = vld [vmem:[#allocation3 + $0x7ac] ss:$16 sps:$4 sm:$0xff]  }
 0x1be   :  { %4302 = vmatprep.subr.bf16.mxu1 %v7013_v4  ;;  %v7068_v4 = vld [vmem:[#allocation3 + $0x828] ss:$16 sps:$4 sm:$0xff]  }
 0x1bf   :  { %v3966_v15 = vpop.f32.mrf.mxu0  ;;  %4266 = vmatmul.mubr.bf16.vlgmr.msra.gmra.mxu0 %v7513_v17  ;;  %v7088_v17 = vld [vmem:[#allocation3 + $0x9cc] ss:$16 sps:$4 sm:$0xff]  }
 0x1c0   :  { %v4009_v16 = vpop.f32.mrf.mxu1  ;;  %v3967_v19 = vadd.f32 %v3966_v15, %v7786_v61  ;;  %4320 = vmatpush1.bf16.msra.mxu0 %v7014_v8  ;;  %4351 = vmatprep.mubr.bf16.mxu0 %v7514_v27  ;;  %v7071_v8 = vld [vmem:[#allocation3 + $0x7a8] ss:$16 sps:$4 sm:$0xff]  }
 0x1c1   :  { %4303 = vmatpush2.bf16.msra.mxu1 %v7011_v7  ;;  %v7808_v20 = vpop.f32.mrf.mxu0  ;;  %4321 = vmatprep.subr.bf16.mxu0 %v7022_v47  ;;  %v7076_v7 = vld [vmem:[#allocation3 + $0x80c] ss:$16 sps:$4 sm:$0xff]   ;;  %v7080_v15 = vld [vmem:[#allocation3 + $0x9e8] ss:$16 sps:$4 sm:$0xff]  }
 0x1c2   :  { %v7810_v21 = vpop.f32.mrf.mxu1  ;;  %4304 = vmatprep.subr.bf16.mxu1 %v7019_v11  ;;  %v7812_v24 = vadd.f32 %v4009_v16, %v3967_v19  ;;  %v7074_v11 = vld [vmem:[#allocation3 + $0x808] ss:$16 sps:$4 sm:$0xff]   ;;  %v7079_v47 = vld [vmem:[#allocation3 + $0x78c] ss:$16 sps:$4 sm:$0xff]  }
 0x1c3   :  { %v3970_v61 = vpop.f32.mrf.mxu0  ;;  %v7085_v16 = vld [vmem:[#allocation3 + $0x76c] ss:$16 sps:$4 sm:$0xff]   ;;  %v7083_v19 = vld [vmem:[#allocation3 + $0x768] ss:$16 sps:$4 sm:$0xff]  }
 0x1c4   :  { %v3971_v28 = vadd.f32 %v3970_v61, %v7792_v5  ;;  %4322 = vmatpush1.bf16.msra.mxu0 %v7020_v14  ;;  %v4013_v29 = vpop.f32.mrf.mxu1  ;;  %v7515_v5 = vld [vmem:[%s7946_s0 + $0x10] ss:$76 sps:$4 sm:$0xff]  }
 0x1c5   :  { %4305 = vmatpush2.bf16.msra.mxu1 %v7017_v12  ;;  %4323 = vmatprep.subr.bf16.mxu0 %v7028_v23  ;;  %v7082_v12 = vld [vmem:[#allocation3 + $0x9ec] ss:$16 sps:$4 sm:$0xff]   ;;  %v7077_v14 = vld [vmem:[#allocation3 + $0x788] ss:$16 sps:$4 sm:$0xff]  }
 0x1c6   :  { %4306 = vmatprep.subr.bf16.mxu1 %v7025_v22  ;;  %v7818_v32 = vadd.f32 %v4013_v29, %v3971_v28  ;;  %v7086_v22 = vld [vmem:[#allocation3 + $0x9c8] ss:$16 sps:$4 sm:$0xff]   ;;  %v7091_v23 = vld [vmem:[#allocation3 + $0x74c] ss:$16 sps:$4 sm:$0xff]  }
 0x1c7   :  { %v7092_v27 = vld [vmem:[#allocation3 + $0x9a8] ss:$16 sps:$4 sm:$0xff]   ;;  %v7097_v61 = vld [vmem:[#allocation3 + $0x72c] ss:$16 sps:$4 sm:$0xff]  }
 0x1c8   :  { %4324 = vmatpush1.bf16.msra.mxu0 %v7026_v26  ;;  %v7089_v26 = vld [vmem:[#allocation3 + $0x748] ss:$16 sps:$4 sm:$0xff]   ;;  %v7100_v28 = vld [vmem:[#allocation3 + $0x98c] ss:$16 sps:$4 sm:$0xff]  }
 0x1c9   :  { %4307 = vmatpush2.bf16.msra.mxu1 %v7023_v25  ;;  %4325 = vmatprep.subr.bf16.mxu0 %v7031_v30  ;;  %v7094_v25 = vld [vmem:[#allocation3 + $0x9ac] ss:$16 sps:$4 sm:$0xff]   ;;  %v7095_v29 = vld [vmem:[#allocation3 + $0x728] ss:$16 sps:$4 sm:$0xff]  }
 0x1ca   :  { %4362 = vmatprep.subr.bf16.mxu1 %v7034_v31  ;;  %v7098_v30 = vld [vmem:[#allocation3 + $0x988] ss:$16 sps:$4 sm:$0xff]   ;;  %v7103_v31 = vld [vmem:[#allocation3 + $0x70c] ss:$16 sps:$4 sm:$0xff]  }
 0x1cc   :  { %4309 = vmatmul.mubr.bf16.vlgmr.msra.gmra.mxu1 %v7515_v5  ;;  %4326 = vmatpush1.bf16.msra.mxu0 %v7029_v33  ;;  %v7106_v33 = vld [vmem:[#allocation3 + $0x96c] ss:$16 sps:$4 sm:$0xff]   ;;  %v7110_v5 = vld [vmem:[#allocation3 + $0xae8] ss:$16 sps:$4 sm:$0xff]  }
 0x1cd   :  { %4363 = vmatpush1.bf16.msra.mxu1 %v7032_v34  ;;  %4327 = vmatprep.subr.bf16.mxu0 %v7037_v37  ;;  %v7101_v34 = vld [vmem:[#allocation3 + $0x708] ss:$16 sps:$4 sm:$0xff]  }
 0x1ce   :  { %4364 = vmatprep.subr.bf16.mxu1 %v7040_v40  ;;  %4394 = vmatprep.mubr.bf16.mxu1 %v7516_v50  ;;  %v7104_v37 = vld [vmem:[#allocation3 + $0x968] ss:$16 sps:$4 sm:$0xff]   ;;  %v7109_v40 = vld [vmem:[#allocation3 + $0x94c] ss:$16 sps:$4 sm:$0xff]  }
 0x1d0   :  { %4328 = vmatpush1.bf16.msra.mxu0 %v7035_v41  ;;  %v7112_v41 = vld [vmem:[#allocation3 + $0xaec] ss:$16 sps:$4 sm:$0xff]  }
 0x1d1   :  { %4365 = vmatpush1.bf16.msra.mxu1 %v7038_v42  ;;  %4329 = vmatprep.subr.bf16.mxu0 %v7043_v43  ;;  %v7107_v42 = vld [vmem:[#allocation3 + $0x948] ss:$16 sps:$4 sm:$0xff]   ;;  %v7826_v43 = vpop.f32.mrf.mxu0 }
 0x1d2   :  { %4366 = vmatprep.subr.bf16.mxu1 %v7046_v44  ;;  %v7828_v44 = vpop.f32.mrf.mxu1 }
 0x1d4   :  { %4330 = vmatpush1.bf16.msra.mxu0 %v7041_v45  ;;  %v7115_v45 = vld [vmem:[#allocation3 + $0x92c] ss:$16 sps:$4 sm:$0xff]  }
 0x1d5   :  { %4367 = vmatpush1.bf16.msra.mxu1 %v7044_v46  ;;  %4331 = vmatprep.subr.bf16.mxu0 %v7049_v51  ;;  %v7118_v46 = vld [vmem:[#allocation3 + $0xacc] ss:$16 sps:$4 sm:$0xff]  }
 0x1d6   :  { %4368 = vmatprep.subr.bf16.mxu1 %v7052_v52  ;;  %v7517_v52 = vld [vmem:[%s7946_s0 + $0x18] ss:$76 sps:$4 sm:$0xff]  }
 0x1d8   :  { %4332 = vmatpush1.bf16.msra.mxu0 %v7047_v53 }
 0x1d9   :  { %4369 = vmatpush1.bf16.msra.mxu1 %v7050_v54  ;;  %4333 = vmatprep.subr.bf16.mxu0 %v7055_v55  ;;  %v7113_v54 = vld [vmem:[#allocation3 + $0x928] ss:$16 sps:$4 sm:$0xff]  }
 0x1da   :  { %4370 = vmatprep.subr.bf16.mxu1 %v7058_v56  ;;  %v7116_v55 = vld [vmem:[#allocation3 + $0xac8] ss:$16 sps:$4 sm:$0xff]  }
 0x1dc   :  { %4334 = vmatpush1.bf16.msra.mxu0 %v7053_v59 }
 0x1dd   :  { %4371 = vmatpush1.bf16.msra.mxu1 %v7056_v60  ;;  %4335 = vmatprep.subr.bf16.mxu0 %v7061_v62  ;;  %v7121_v60 = vld [vmem:[#allocation3 + $0x90c] ss:$16 sps:$4 sm:$0xff]  }
 0x1de   :  { %4372 = vmatprep.subr.bf16.mxu1 %v7064_v63  ;;  %v7124_v62 = vld [vmem:[#allocation3 + $0xaac] ss:$16 sps:$4 sm:$0xff]  }
 0x1e0   :  { %4336 = vmatpush2.bf16.msra.mxu0 %v7059_v0  ;;  %v7518_v0 = vld [vmem:[%s7946_s0 + $0x2c] ss:$76 sps:$4 sm:$0xff]  }
 0x1e1   :  { %4373 = vmatpush1.bf16.msra.mxu1 %v7062_v38  ;;  %4337 = vmatprep.subr.bf16.mxu0 %v7067_v1  ;;  %v7119_v1 = vld [vmem:[#allocation3 + $0x908] ss:$16 sps:$4 sm:$0xff]  }
 0x1e2   :  { %4374 = vmatprep.subr.bf16.mxu1 %v7070_v2  ;;  %v7122_v2 = vld [vmem:[#allocation3 + $0xaa8] ss:$16 sps:$4 sm:$0xff]  }
 0x1e4   :  { %4338 = vmatpush2.bf16.msra.mxu0 %v7065_v3 }
 0x1e5   :  { %4375 = vmatpush1.bf16.msra.mxu1 %v7068_v4  ;;  %4339 = vmatprep.subr.bf16.mxu0 %v7073_v6  ;;  %v7127_v4 = vld [vmem:[#allocation3 + $0xa8c] ss:$16 sps:$4 sm:$0xff]  }
 0x1e6   :  { %4376 = vmatprep.subr.bf16.mxu1 %v7076_v7  ;;  %v7130_v6 = vld [vmem:[#allocation3 + $0xcec] ss:$16 sps:$4 sm:$0xff]  }
 0x1e8   :  { %4340 = vmatpush2.bf16.msra.mxu0 %v7071_v8  ;;  %v7125_v8 = vld [vmem:[#allocation3 + $0xa88] ss:$16 sps:$4 sm:$0xff]  }
 0x1e9   :  { %4377 = vmatpush1.bf16.msra.mxu1 %v7074_v11  ;;  %4341 = vmatprep.subr.bf16.mxu0 %v7079_v47  ;;  %v7128_v11 = vld [vmem:[#allocation3 + $0xce8] ss:$16 sps:$4 sm:$0xff]   ;;  %v7133_v47 = vld [vmem:[#allocation3 + $0xa6c] ss:$16 sps:$4 sm:$0xff]  }
 0x1ea   :  { %4378 = vmatprep.subr.bf16.mxu1 %v7082_v12  ;;  %v7136_v12 = vld [vmem:[#allocation3 + $0xccc] ss:$16 sps:$4 sm:$0xff]  }
 0x1ec   :  { %4342 = vmatpush2.bf16.msra.mxu0 %v7077_v14  ;;  %v7131_v14 = vld [vmem:[#allocation3 + $0xa68] ss:$16 sps:$4 sm:$0xff]  }
 0x1ed   :  { %4379 = vmatpush2.bf16.msra.mxu1 %v7080_v15  ;;  %4343 = vmatprep.subr.bf16.mxu0 %v7085_v16  ;;  %v7134_v15 = vld [vmem:[#allocation3 + $0xcc8] ss:$16 sps:$4 sm:$0xff]   ;;  %v7139_v16 = vld [vmem:[#allocation3 + $0xa4c] ss:$16 sps:$4 sm:$0xff]  }
 0x1ee   :  { %4380 = vmatprep.subr.bf16.mxu1 %v7088_v17  ;;  %v7142_v17 = vld [vmem:[#allocation3 + $0xcac] ss:$16 sps:$4 sm:$0xff]  }
 0x1f0   :  { %4344 = vmatpush2.bf16.msra.mxu0 %v7083_v19  ;;  %v7520_v19 = vld [vmem:[%s7946_s0 + $0x34] ss:$76 sps:$4 sm:$0xff]  }
 0x1f1   :  { %4381 = vmatpush2.bf16.msra.mxu1 %v7086_v22  ;;  %4345 = vmatprep.subr.bf16.mxu0 %v7091_v23  ;;  %v7137_v22 = vld [vmem:[#allocation3 + $0xa48] ss:$16 sps:$4 sm:$0xff]  }
 0x1f2   :  { %4382 = vmatprep.subr.bf16.mxu1 %v7094_v25  ;;  %v7140_v23 = vld [vmem:[#allocation3 + $0xca8] ss:$16 sps:$4 sm:$0xff]   ;;  %v7145_v25 = vld [vmem:[#allocation3 + $0xa2c] ss:$16 sps:$4 sm:$0xff]  }
 0x1f4   :  { %4346 = vmatpush2.bf16.msra.mxu0 %v7089_v26  ;;  %v7148_v26 = vld [vmem:[#allocation3 + $0xc8c] ss:$16 sps:$4 sm:$0xff]  }
 0x1f5   :  { %4383 = vmatpush2.bf16.msra.mxu1 %v7092_v27  ;;  %4347 = vmatprep.subr.bf16.mxu0 %v7097_v61  ;;  %v7143_v27 = vld [vmem:[#allocation3 + $0xa28] ss:$16 sps:$4 sm:$0xff]  }
 0x1f6   :  { %4384 = vmatprep.subr.bf16.mxu1 %v7100_v28  ;;  %v7146_v61 = vld [vmem:[#allocation3 + $0xc88] ss:$16 sps:$4 sm:$0xff]   ;;  %v7151_v28 = vld [vmem:[#allocation3 + $0xa0c] ss:$16 sps:$4 sm:$0xff]  }
 0x1f8   :  { %4348 = vmatpush2.bf16.msra.mxu0 %v7095_v29  ;;  %v7154_v29 = vld [vmem:[#allocation3 + $0xc6c] ss:$16 sps:$4 sm:$0xff]  }
 0x1f9   :  { %4385 = vmatpush2.bf16.msra.mxu1 %v7098_v30  ;;  %4349 = vmatprep.subr.bf16.mxu0 %v7103_v31  ;;  %v7149_v30 = vld [vmem:[#allocation3 + $0xa08] ss:$16 sps:$4 sm:$0xff]  }
 0x1fa   :  { %4386 = vmatprep.subr.bf16.mxu1 %v7106_v33  ;;  %v7152_v31 = vld [vmem:[#allocation3 + $0xc68] ss:$16 sps:$4 sm:$0xff]   ;;  %v7157_v33 = vld [vmem:[#allocation3 + $0xbec] ss:$16 sps:$4 sm:$0xff]  }
 0x1fc   :  { %4350 = vmatpush2.bf16.msra.mxu0 %v7101_v34  ;;  %v7160_v34 = vld [vmem:[#allocation3 + $0xc4c] ss:$16 sps:$4 sm:$0xff]  }
 0x1fd   :  { %4387 = vmatpush2.bf16.msra.mxu1 %v7104_v37  ;;  %4405 = vmatprep.subr.bf16.mxu0 %v7112_v41  ;;  %v7155_v37 = vld [vmem:[#allocation3 + $0xbe8] ss:$16 sps:$4 sm:$0xff]   ;;  %v7163_v41 = vld [vmem:[#allocation3 + $0xbcc] ss:$16 sps:$4 sm:$0xff]  }
 0x1fe   :  { %4388 = vmatprep.subr.bf16.mxu1 %v7109_v40  ;;  %v7158_v40 = vld [vmem:[#allocation3 + $0xc48] ss:$16 sps:$4 sm:$0xff]  }
 0x1ff   :  { %v4052_v50 = vpop.f32.mrf.mxu0  ;;  %4352 = vmatmul.mubr.bf16.vlgmr.msra.gmra.mxu0 %v7517_v52  ;;  %v7170_v52 = vld [vmem:[#allocation3 + $0xc08] ss:$16 sps:$4 sm:$0xff]  }
 0x200   :  { %v4095_v51 = vpop.f32.mrf.mxu1  ;;  %v4053_v53 = vadd.f32 %v4052_v50, %v7812_v24  ;;  %4406 = vmatpush1.bf16.msra.mxu0 %v7110_v5  ;;  %4437 = vmatprep.mubr.bf16.mxu0 %v7518_v0  ;;  %v7161_v5 = vld [vmem:[#allocation3 + $0xbc8] ss:$16 sps:$4 sm:$0xff]   ;;  %v7172_v50 = vld [vmem:[#allocation3 + $0xc0c] ss:$16 sps:$4 sm:$0xff]  }
 0x201   :  { %4389 = vmatpush2.bf16.msra.mxu1 %v7107_v42  ;;  %v7834_v56 = vpop.f32.mrf.mxu0  ;;  %4407 = vmatprep.subr.bf16.mxu0 %v7118_v46  ;;  %v7166_v42 = vld [vmem:[#allocation3 + $0xc2c] ss:$16 sps:$4 sm:$0xff]  }
 0x202   :  { %v7836_v59 = vpop.f32.mrf.mxu1  ;;  %4390 = vmatprep.subr.bf16.mxu1 %v7115_v45  ;;  %v7838_v63 = vadd.f32 %v4095_v51, %v4053_v53  ;;  %v7164_v45 = vld [vmem:[#allocation3 + $0xc28] ss:$16 sps:$4 sm:$0xff]   ;;  %v7169_v46 = vld [vmem:[#allocation3 + $0xbac] ss:$16 sps:$4 sm:$0xff]  }
 0x203   :  { %v4056_v24 = vpop.f32.mrf.mxu0  ;;  %v7167_v51 = vld [vmem:[#allocation3 + $0xba8] ss:$16 sps:$4 sm:$0xff]   ;;  %v7175_v53 = vld [vmem:[#allocation3 + $0xb8c] ss:$16 sps:$4 sm:$0xff]  }
 0x204   :  { %v4057_v38 = vadd.f32 %v4056_v24, %v7818_v32  ;;  %4408 = vmatpush1.bf16.msra.mxu0 %v7116_v55  ;;  %v4099_v3 = vpop.f32.mrf.mxu1  ;;  %v7519_v32 = vld [vmem:[%s7946_s0 + $0x20] ss:$76 sps:$4 sm:$0xff]  }
 0x205   :  { %4391 = vmatpush2.bf16.msra.mxu1 %v7113_v54  ;;  %4409 = vmatprep.subr.bf16.mxu0 %v7124_v62  ;;  %v7178_v54 = vld [vmem:[#allocation3 + $0xdec] ss:$16 sps:$4 sm:$0xff]   ;;  %v7173_v55 = vld [vmem:[#allocation3 + $0xb88] ss:$16 sps:$4 sm:$0xff]  }
 0x206   :  { %4392 = vmatprep.subr.bf16.mxu1 %v7121_v60  ;;  %v7844_v7 = vadd.f32 %v4099_v3, %v4057_v38  ;;  %v7176_v60 = vld [vmem:[#allocation3 + $0xde8] ss:$16 sps:$4 sm:$0xff]   ;;  %v7181_v62 = vld [vmem:[#allocation3 + $0xb6c] ss:$16 sps:$4 sm:$0xff]  }
 0x207   :  { %v7184_v0 = vld [vmem:[#allocation3 + $0xdcc] ss:$16 sps:$4 sm:$0xff]   ;;  %v7179_v24 = vld [vmem:[#allocation3 + $0xb68] ss:$16 sps:$4 sm:$0xff]  }
 0x208   :  { %4410 = vmatpush1.bf16.msra.mxu0 %v7122_v2  ;;  %v7182_v38 = vld [vmem:[#allocation3 + $0xdc8] ss:$16 sps:$4 sm:$0xff]   ;;  %v7190_v2 = vld [vmem:[#allocation3 + $0xdac] ss:$16 sps:$4 sm:$0xff]  }
 0x209   :  { %4393 = vmatpush2.bf16.msra.mxu1 %v7119_v1  ;;  %4411 = vmatprep.subr.bf16.mxu0 %v7127_v4  ;;  %v7187_v1 = vld [vmem:[#allocation3 + $0xb4c] ss:$16 sps:$4 sm:$0xff]   ;;  %v7185_v3 = vld [vmem:[#allocation3 + $0xb48] ss:$16 sps:$4 sm:$0xff]  }
 0x20a   :  { %4448 = vmatprep.subr.bf16.mxu1 %v7130_v6  ;;  %v7188_v4 = vld [vmem:[#allocation3 + $0xda8] ss:$16 sps:$4 sm:$0xff]   ;;  %v7193_v6 = vld [vmem:[#allocation3 + $0xb2c] ss:$16 sps:$4 sm:$0xff]  }
 0x20c   :  { %4395 = vmatmul.mubr.bf16.vlgmr.msra.gmra.mxu1 %v7519_v32  ;;  %4412 = vmatpush1.bf16.msra.mxu0 %v7125_v8  ;;  %v7196_v8 = vld [vmem:[#allocation3 + $0xd8c] ss:$16 sps:$4 sm:$0xff]  }
 0x20d   :  { %4449 = vmatpush1.bf16.msra.mxu1 %v7128_v11  ;;  %4413 = vmatprep.subr.bf16.mxu0 %v7133_v47  ;;  %v7191_v11 = vld [vmem:[#allocation3 + $0xb28] ss:$16 sps:$4 sm:$0xff]   ;;  %v7202_v32 = vld [vmem:[#allocation3 + $0xd6c] ss:$16 sps:$4 sm:$0xff]  }
 0x20e   :  { %4450 = vmatprep.subr.bf16.mxu1 %v7136_v12  ;;  %4480 = vmatprep.mubr.bf16.mxu1 %v7520_v19  ;;  %v7194_v47 = vld [vmem:[#allocation3 + $0xd88] ss:$16 sps:$4 sm:$0xff]   ;;  %v7199_v12 = vld [vmem:[#allocation3 + $0xb0c] ss:$16 sps:$4 sm:$0xff]   ;;  %v7852_v19 = vpop.f32.mrf.mxu1 }
 0x210   :  { %4414 = vmatpush1.bf16.msra.mxu0 %v7131_v14  ;;  %v7197_v14 = vld [vmem:[#allocation3 + $0xb08] ss:$16 sps:$4 sm:$0xff]  }
 0x211   :  { %4451 = vmatpush1.bf16.msra.mxu1 %v7134_v15  ;;  %4415 = vmatprep.subr.bf16.mxu0 %v7139_v16  ;;  %v7200_v15 = vld [vmem:[#allocation3 + $0xd68] ss:$16 sps:$4 sm:$0xff]   ;;  %v7205_v16 = vld [vmem:[#allocation3 + $0xd4c] ss:$16 sps:$4 sm:$0xff]  }
 0x212   :  { %4452 = vmatprep.subr.bf16.mxu1 %v7142_v17  ;;  %v7208_v17 = vld [vmem:[#allocation3 + $0xeec] ss:$16 sps:$4 sm:$0xff]  }
 0x214   :  { %4416 = vmatpush1.bf16.msra.mxu0 %v7137_v22  ;;  %v7203_v22 = vld [vmem:[#allocation3 + $0xd48] ss:$16 sps:$4 sm:$0xff]  }
 0x215   :  { %4453 = vmatpush1.bf16.msra.mxu1 %v7140_v23  ;;  %4417 = vmatprep.subr.bf16.mxu0 %v7145_v25  ;;  %v7206_v23 = vld [vmem:[#allocation3 + $0xee8] ss:$16 sps:$4 sm:$0xff]   ;;  %v7854_v25 = vpop.f32.mrf.mxu0 }
 0x216   :  { %4454 = vmatprep.subr.bf16.mxu1 %v7148_v26  ;;  %v4181_v26 = vpop.f32.mrf.mxu1 }
 0x218   :  { %4418 = vmatpush1.bf16.msra.mxu0 %v7143_v27  ;;  %v7211_v27 = vld [vmem:[#allocation3 + $0xd2c] ss:$16 sps:$4 sm:$0xff]  }
 0x219   :  { %4455 = vmatpush1.bf16.msra.mxu1 %v7146_v61  ;;  %4419 = vmatprep.subr.bf16.mxu0 %v7151_v28  ;;  %v7214_v61 = vld [vmem:[#allocation3 + $0xecc] ss:$16 sps:$4 sm:$0xff]  }
 0x21a   :  { %4456 = vmatprep.subr.bf16.mxu1 %v7154_v29  ;;  %v7521_v29 = vld [vmem:[%s7946_s0 + $0x28] ss:$76 sps:$4 sm:$0xff]  }
 0x21c   :  { %4420 = vmatpush1.bf16.msra.mxu0 %v7149_v30 }
 0x21d   :  { %4457 = vmatpush1.bf16.msra.mxu1 %v7152_v31  ;;  %4421 = vmatprep.subr.bf16.mxu0 %v7157_v33  ;;  %v7209_v31 = vld [vmem:[#allocation3 + $0xd28] ss:$16 sps:$4 sm:$0xff]  }
 0x21e   :  { %4458 = vmatprep.subr.bf16.mxu1 %v7160_v34  ;;  %v7212_v33 = vld [vmem:[#allocation3 + $0xec8] ss:$16 sps:$4 sm:$0xff]   ;;  %v7860_v34 = vpop.f32.mrf.mxu1 }
 0x220   :  { %4422 = vmatpush2.bf16.msra.mxu0 %v7155_v37 }
 0x221   :  { %4459 = vmatpush1.bf16.msra.mxu1 %v7158_v40  ;;  %4423 = vmatprep.subr.bf16.mxu0 %v7163_v41  ;;  %v7217_v40 = vld [vmem:[#allocation3 + $0xd0c] ss:$16 sps:$4 sm:$0xff]  }
 0x222   :  { %4460 = vmatprep.subr.bf16.mxu1 %v7166_v42  ;;  %v7220_v41 = vld [vmem:[#allocation3 + $0xeac] ss:$16 sps:$4 sm:$0xff]  }
 0x224   :  { %4424 = vmatpush2.bf16.msra.mxu0 %v7161_v5  ;;  %v7522_v5 = vld [vmem:[%s7946_s0 + $0x3c] ss:$76 sps:$4 sm:$0xff]  }
 0x225   :  { %4461 = vmatpush1.bf16.msra.mxu1 %v7164_v45  ;;  %4425 = vmatprep.subr.bf16.mxu0 %v7169_v46  ;;  %v7215_v46 = vld [vmem:[#allocation3 + $0xd08] ss:$16 sps:$4 sm:$0xff]  }
 0x226   :  { %4462 = vmatprep.subr.bf16.mxu1 %v7172_v50  ;;  %v7218_v50 = vld [vmem:[#allocation3 + $0xea8] ss:$16 sps:$4 sm:$0xff]  }
 0x228   :  { %4426 = vmatpush2.bf16.msra.mxu0 %v7167_v51  ;;  %v4185_v51 = vpop.f32.mrf.mxu1 }
 0x229   :  { %4463 = vmatpush1.bf16.msra.mxu1 %v7170_v52  ;;  %4427 = vmatprep.subr.bf16.mxu0 %v7175_v53  ;;  %v7223_v52 = vld [vmem:[#allocation3 + $0xe8c] ss:$16 sps:$4 sm:$0xff]  }
 0x22a   :  { %4464 = vmatprep.subr.bf16.mxu1 %v7178_v54  ;;  %v7226_v53 = vld [vmem:[#allocation3 + $0x10ec] ss:$16 sps:$4 sm:$0xff]  }
 0x22c   :  { %4428 = vmatpush2.bf16.msra.mxu0 %v7173_v55 }
 0x22d   :  { %4465 = vmatpush2.bf16.msra.mxu1 %v7176_v60  ;;  %4429 = vmatprep.subr.bf16.mxu0 %v7181_v62  ;;  %v7221_v62 = vld [vmem:[#allocation3 + $0xe88] ss:$16 sps:$4 sm:$0xff]  }
 0x22e   :  { %4466 = vmatprep.subr.bf16.mxu1 %v7184_v0  ;;  %v7224_v0 = vld [vmem:[#allocation3 + $0x10e8] ss:$16 sps:$4 sm:$0xff]  }
 0x230   :  { %4430 = vmatpush2.bf16.msra.mxu0 %v7179_v24  ;;  %v7229_v24 = vld [vmem:[#allocation3 + $0xe6c] ss:$16 sps:$4 sm:$0xff]  }
 0x231   :  { %4467 = vmatpush2.bf16.msra.mxu1 %v7182_v38  ;;  %4431 = vmatprep.subr.bf16.mxu0 %v7187_v1  ;;  %v7523_v1 = vld [vmem:[%s7946_s0 + $0x30] ss:$76 sps:$4 sm:$0xff]  }
 0x232   :  { %4468 = vmatprep.subr.bf16.mxu1 %v7190_v2  ;;  %v7227_v2 = vld [vmem:[#allocation3 + $0xe68] ss:$16 sps:$4 sm:$0xff]  }
 0x234   :  { %4432 = vmatpush2.bf16.msra.mxu0 %v7185_v3  ;;  %v7230_v3 = vld [vmem:[#allocation3 + $0x10c8] ss:$16 sps:$4 sm:$0xff]  }
 0x235   :  { %4469 = vmatpush2.bf16.msra.mxu1 %v7188_v4  ;;  %4433 = vmatprep.subr.bf16.mxu0 %v7193_v6  ;;  %v7235_v4 = vld [vmem:[#allocation3 + $0xe4c] ss:$16 sps:$4 sm:$0xff]  }
 0x236   :  { %4470 = vmatprep.subr.bf16.mxu1 %v7196_v8  ;;  %v7238_v6 = vld [vmem:[#allocation3 + $0x10ac] ss:$16 sps:$4 sm:$0xff]  }
 0x237   :  { %v7524_v8 = vld [vmem:[%s7946_s0 + $0x44] ss:$76 sps:$4 sm:$0xff]  }
 0x238   :  { %4434 = vmatpush2.bf16.msra.mxu0 %v7191_v11  ;;  %v7233_v11 = vld [vmem:[#allocation3 + $0xe48] ss:$16 sps:$4 sm:$0xff]  }
 0x239   :  { %4471 = vmatpush2.bf16.msra.mxu1 %v7194_v47  ;;  %4435 = vmatprep.subr.bf16.mxu0 %v7199_v12  ;;  %v7236_v47 = vld [vmem:[#allocation3 + $0x10a8] ss:$16 sps:$4 sm:$0xff]   ;;  %v7241_v12 = vld [vmem:[#allocation3 + $0xe2c] ss:$16 sps:$4 sm:$0xff]  }
 0x23a   :  { %4472 = vmatprep.subr.bf16.mxu1 %v7202_v32  ;;  %v7244_v32 = vld [vmem:[#allocation3 + $0x108c] ss:$16 sps:$4 sm:$0xff]  }
 0x23c   :  { %4436 = vmatpush2.bf16.msra.mxu0 %v7197_v14  ;;  %v7239_v14 = vld [vmem:[#allocation3 + $0xe28] ss:$16 sps:$4 sm:$0xff]  }
 0x23d   :  { %4473 = vmatpush2.bf16.msra.mxu1 %v7200_v15  ;;  %4491 = vmatprep.subr.bf16.mxu0 %v7208_v17  ;;  %v7242_v15 = vld [vmem:[#allocation3 + $0x1088] ss:$16 sps:$4 sm:$0xff]   ;;  %v7250_v17 = vld [vmem:[#allocation3 + $0x106c] ss:$16 sps:$4 sm:$0xff]  }
 0x23e   :  { %4474 = vmatprep.subr.bf16.mxu1 %v7205_v16  ;;  %v7247_v16 = vld [vmem:[#allocation3 + $0xe0c] ss:$16 sps:$4 sm:$0xff]  }
 0x23f   :  { %v4138_v28 = vpop.f32.mrf.mxu0  ;;  %4438 = vmatmul.mubr.bf16.vlgmr.msra.gmra.mxu0 %v7521_v29  ;;  %v7259_v29 = vld [vmem:[#allocation3 + $0xfcc] ss:$16 sps:$4 sm:$0xff]  }
 0x240   :  { %v4139_v30 = vadd.f32 %v4138_v28, %v7838_v63  ;;  %4492 = vmatpush1.bf16.msra.mxu0 %v7206_v23  ;;  %4523 = vmatprep.mubr.bf16.mxu0 %v7522_v5  ;;  %v7248_v23 = vld [vmem:[#allocation3 + $0x1068] ss:$16 sps:$4 sm:$0xff]   ;;  %v7879_v5 = vld [vmem:[#allocation5] sm:$0xf] }
 0x241   :  { %4475 = vmatpush2.bf16.msra.mxu1 %v7203_v22  ;;  %v7862_v37 = vpop.f32.mrf.mxu0  ;;  %4493 = vmatprep.subr.bf16.mxu0 %v7214_v61  ;;  %v7245_v22 = vld [vmem:[#allocation3 + $0xe08] ss:$16 sps:$4 sm:$0xff]  }
 0x242   :  { %4476 = vmatprep.subr.bf16.mxu1 %v7211_v27  ;;  %v4182_v42 = vadd.f32 %v4181_v26, %v4139_v30  ;;  %v7253_v26 = vld [vmem:[#allocation3 + $0xfec] ss:$16 sps:$4 sm:$0xff]   ;;  %v7251_v61 = vld [vmem:[#allocation3 + $0xfe8] ss:$16 sps:$4 sm:$0xff]  }
 0x243   :  { %v4142_v45 = vpop.f32.mrf.mxu0  ;;  %v7256_v27 = vld [vmem:[#allocation3 + $0x104c] ss:$16 sps:$4 sm:$0xff]   ;;  %v7254_v28 = vld [vmem:[#allocation3 + $0x1048] ss:$16 sps:$4 sm:$0xff]  }
 0x244   :  { %v4143_v63 = vadd.f32 %v4142_v45, %v7844_v7  ;;  %4494 = vmatpush1.bf16.msra.mxu0 %v7212_v33  ;;  %v4620_v55 = vmax.f32 %v4182_v42, 0.0  ;;  %v7232_v7 = vld [vmem:[#allocation3 + $0x10cc] ss:$16 sps:$4 sm:$0xff]   ;;  %v7257_v33 = vld [vmem:[#allocation3 + $0xfc8] ss:$16 sps:$4 sm:$0xff]  }
 0x245   :  { %4477 = vmatpush2.bf16.msra.mxu1 %v7209_v31  ;;  %4495 = vmatprep.subr.bf16.mxu0 %v7220_v41  ;;  %v7262_v30 = vld [vmem:[#allocation3 + $0x102c] ss:$16 sps:$4 sm:$0xff]   ;;  %v7877_v31 = vsub.s32 1, %v7743_v13 }
 0x246   :  { %4478 = vmatprep.subr.bf16.mxu1 %v7217_v40  ;;  %v4186_v54 = vadd.f32 %v4185_v51, %v4143_v63  ;;  %v7260_v40 = vld [vmem:[#allocation3 + $0x1028] ss:$16 sps:$4 sm:$0xff]   ;;  %v7265_v41 = vld [vmem:[#allocation3 + $0xfac] ss:$16 sps:$4 sm:$0xff]  }
 0x247   :  { %v7268_v42 = vld [vmem:[#allocation3 + $0x100c] ss:$16 sps:$4 sm:$0xff]   ;;  %v708_v45 = vrot.slane %v7879_v5, %v7877_v31  ;;  %v7263_v63 = vld [vmem:[#allocation3 + $0xfa8] ss:$16 sps:$4 sm:$0xff]  }
 0x248   :  { %v4624_v60 = vmax.f32 %v4186_v54, 0.0  ;;  %4496 = vmatpush1.bf16.msra.mxu0 %v7218_v50  ;;  %v7271_v50 = vld [vmem:[#allocation3 + $0xf8c] ss:$16 sps:$4 sm:$0xff]   ;;  %v7269_v54 = vld [vmem:[#allocation3 + $0xf88] ss:$16 sps:$4 sm:$0xff]  }
 0x249   :  { %4479 = vmatpush2.bf16.msra.mxu1 %v7215_v46  ;;  %4497 = vmatprep.subr.bf16.mxu0 %v7223_v52  ;;  %v7266_v46 = vld [vmem:[#allocation3 + $0x1008] ss:$16 sps:$4 sm:$0xff]   ;;  %v7274_v51 = vld [vmem:[#allocation3 + $0x11ec] ss:$16 sps:$4 sm:$0xff]   ;;  %v3801_v52 = vadd.f32 %v7777_v48, %v708_v45 }
 0x24a   :  { %4534 = vmatprep.subr.bf16.mxu1 %v7226_v53  ;;  %v7868_v38 = vpack.c.bf16 %v4624_v60, %v4620_v55  ;;  %v3797_v53 = vadd.f32 %v7758_v35, %v708_v45  ;;  %v7272_v55 = vld [vmem:[#allocation3 + $0x11e8] ss:$16 sps:$4 sm:$0xff]   ;;  %v7277_v60 = vld [vmem:[#allocation3 + $0xf6c] ss:$16 sps:$4 sm:$0xff]  }
 0x24b   :  { %v7278_v48 = vld [vmem:[#allocation3 + $0x11c8] ss:$16 sps:$4 sm:$0xff]   ;;  %v7283_v35 = vld [vmem:[#allocation3 + $0xf4c] ss:$16 sps:$4 sm:$0xff]  }
 0x24c   :  { %4481 = vmatmul.mubr.bf16.vlgmr.msra.gmra.mxu1 %v7523_v1  ;;  %4498 = vmatpush1.bf16.msra.mxu0 %v7221_v62  ;;  %v7280_v62 = vld [vmem:[#allocation3 + $0x11cc] ss:$16 sps:$4 sm:$0xff]   ;;  %v7275_v1 = vld [vmem:[#allocation3 + $0xf68] ss:$16 sps:$4 sm:$0xff]  }
 0x24d   :  { %4535 = vmatpush1.bf16.msra.mxu1 %v7224_v0  ;;  %4499 = vmatprep.subr.bf16.mxu0 %v7229_v24  ;;  %v3844_v0 = vadd.f32 %v7779_v49, %v3801_v52  ;;  %v3840_v24 = vadd.f32 %v7760_v36, %v3797_v53  ;;  %v7284_v49 = vld [vmem:[#allocation3 + $0x11a8] ss:$16 sps:$4 sm:$0xff]   ;;  %v7289_v36 = vld [vmem:[#allocation3 + $0xf2c] ss:$16 sps:$4 sm:$0xff]  }
 0x24e   :  { %4536 = vmatprep.subr.bf16.mxu1 %v7232_v7  ;;  %4566 = vmatprep.mubr.bf16.mxu1 %v7524_v8  ;;  %v7311_v45 = vld [vmem:[#allocation3 + $0x1108] ss:$16 sps:$4 sm:$0xff]  }
 0x24f   :  { %v3887_v7 = vadd.f32 %v7800_v9, %v3844_v0  ;;  %v7292_v9 = vld [vmem:[#allocation3 + $0x118c] ss:$16 sps:$4 sm:$0xff]   ;;  %v7322_v52 = vld [vmem:[#allocation7 + $0xc4] ss:$16 sps:$4 sm:$0xff]   ;;  %v7413_v0 = vld [vmem:[#allocation7 + $0x2e0] ss:$16 sps:$4 sm:$0xff]  }
 0x250   :  { %4500 = vmatpush1.bf16.msra.mxu0 %v7227_v2  ;;  %v7286_v2 = vld [vmem:[#allocation3 + $0x11ac] ss:$16 sps:$4 sm:$0xff]  }
 0x251   :  { %4537 = vmatpush1.bf16.msra.mxu1 %v7230_v3  ;;  %4501 = vmatprep.subr.bf16.mxu0 %v7235_v4  ;;  %v3883_v3 = vadd.f32 %v7782_v57, %v3840_v24  ;;  %v3930_v4 = vadd.f32 %v7802_v10, %v3887_v7  ;;  %v7290_v57 = vld [vmem:[#allocation3 + $0x1188] ss:$16 sps:$4 sm:$0xff]   ;;  %v7295_v10 = vld [vmem:[#allocation3 + $0xf0c] ss:$16 sps:$4 sm:$0xff]  }
 0x252   :  { %4538 = vmatprep.subr.bf16.mxu1 %v7238_v6  ;;  %v7281_v6 = vld [vmem:[#allocation3 + $0xf48] ss:$16 sps:$4 sm:$0xff]  }
 0x253   :  { %v3926_v8 = vadd.f32 %v7784_v58, %v3883_v3  ;;  %v7293_v58 = vld [vmem:[#allocation3 + $0xf08] ss:$16 sps:$4 sm:$0xff]   ;;  %v7329_v3 = vld [vmem:[#allocation7 + $0x60] ss:$16 sps:$4 sm:$0xff]  }
 0x254   :  { %4502 = vmatpush1.bf16.msra.mxu0 %v7233_v11  ;;  %v3973_v11 = vadd.f32 %v7826_v43, %v3930_v4  ;;  %v7296_v43 = vld [vmem:[#allocation3 + $0x1168] ss:$16 sps:$4 sm:$0xff]  }
 0x255   :  { %4539 = vmatpush1.bf16.msra.mxu1 %v7236_v47  ;;  %4503 = vmatprep.subr.bf16.mxu0 %v7241_v12  ;;  %v3969_v47 = vadd.f32 %v7808_v20, %v3926_v8  ;;  %v7287_v12 = vld [vmem:[#allocation3 + $0xf28] ss:$16 sps:$4 sm:$0xff]   ;;  %v7301_v20 = vld [vmem:[#allocation3 + $0x114c] ss:$16 sps:$4 sm:$0xff]   ;;  %v7422_v8 = vld [vmem:[#allocation7 + $0x280] ss:$16 sps:$4 sm:$0xff]  }
 0x256   :  { %4540 = vmatprep.subr.bf16.mxu1 %v7244_v32  ;;  %v7298_v32 = vld [vmem:[#allocation3 + $0x116c] ss:$16 sps:$4 sm:$0xff]   ;;  %v7415_v24 = vld [vmem:[#allocation7 + $0x2e4] ss:$16 sps:$4 sm:$0xff]  }
 0x257   :  { %v7418_v7 = vld [vmem:[#allocation7 + $0x2c4] ss:$16 sps:$4 sm:$0xff]  }
 0x258   :  { %4504 = vmatpush1.bf16.msra.mxu0 %v7239_v14  ;;  %v4016_v14 = vadd.f32 %v7828_v44, %v3973_v11  ;;  %v7299_v44 = vld [vmem:[#allocation3 + $0x1148] ss:$16 sps:$4 sm:$0xff]  }
 0x259   :  { %4541 = vmatpush1.bf16.msra.mxu1 %v7242_v15  ;;  %4505 = vmatprep.subr.bf16.mxu0 %v7247_v16  ;;  %v4012_v15 = vadd.f32 %v7810_v21, %v3969_v47  ;;  %v7307_v21 = vld [vmem:[#allocation3 + $0x112c] ss:$16 sps:$4 sm:$0xff]   ;;  %v7334_v4 = vld [vmem:[#allocation7 + $0x44] ss:$16 sps:$4 sm:$0xff]   ;;  %v7335_v47 = vld [vmem:[#allocation7 + $0x20] ss:$16 sps:$4 sm:$0xff]  }
 0x25a   :  { %4542 = vmatprep.subr.bf16.mxu1 %v7250_v17  ;;  %v4059_v16 = vadd.f32 %v7854_v25, %v4016_v14  ;;  %v7304_v17 = vld [vmem:[#allocation3 + $0x124c] ss:$16 sps:$4 sm:$0xff]   ;;  %v7427_v11 = vld [vmem:[#allocation7 + $0x264] ss:$16 sps:$4 sm:$0xff]  }
 0x25b   :  { %v7310_v25 = vld [vmem:[#allocation3 + $0x122c] ss:$16 sps:$4 sm:$0xff]   ;;  %v7343_v14 = vld [vmem:[#allocation7 + $0x1e4] ss:$16 sps:$4 sm:$0xff]  }
 0x25c   :  { %4506 = vmatpush1.bf16.msra.mxu0 %v7245_v22  ;;  %v4055_v22 = vadd.f32 %v7834_v56, %v4012_v15  ;;  %v7428_v15 = vld [vmem:[#allocation7 + $0x240] ss:$16 sps:$4 sm:$0xff]  }
 0x25d   :  { %4543 = vmatpush1.bf16.msra.mxu1 %v7248_v23  ;;  %4507 = vmatprep.subr.bf16.mxu0 %v7253_v26  ;;  %v4144_v23 = vpop.f32.mrf.mxu0  ;;  %v4102_v26 = vadd.f32 %v7852_v19, %v4059_v16  ;;  %v7305_v19 = vld [vmem:[#allocation3 + $0x1128] ss:$16 sps:$4 sm:$0xff]  }
 0x25e   :  { %4544 = vmatprep.subr.bf16.mxu1 %v7256_v27  ;;  %v7302_v27 = vld [vmem:[#allocation3 + $0x1248] ss:$16 sps:$4 sm:$0xff]  }
 0x25f   :  { %v7433_v16 = vld [vmem:[#allocation7 + $0x224] ss:$16 sps:$4 sm:$0xff]  }
 0x260   :  { %4508 = vmatpush2.bf16.msra.mxu0 %v7251_v61  ;;  %v4098_v61 = vadd.f32 %v7836_v59, %v4055_v22  ;;  %v7344_v22 = vld [vmem:[#allocation7 + $0x1c0] ss:$16 sps:$4 sm:$0xff]  }
 0x261   :  { %4545 = vmatpush1.bf16.msra.mxu1 %v7254_v28  ;;  %4509 = vmatprep.subr.bf16.mxu0 %v7259_v29  ;;  %v4145_v28 = vadd.f32 %v4144_v23, %v4102_v26  ;;  %v7526_v29 = vld [vmem:[%s7946_s0 + $0x38] ss:$76 sps:$4 sm:$0xff]  }
 0x262   :  { %4546 = vmatprep.subr.bf16.mxu1 %v7262_v30  ;;  %v4141_v56 = vadd.f32 %v7862_v37, %v4098_v61  ;;  %v7308_v30 = vld [vmem:[#allocation3 + $0x1228] ss:$16 sps:$4 sm:$0xff]   ;;  %v7434_v26 = vld [vmem:[#allocation7 + $0x200] ss:$16 sps:$4 sm:$0xff]  }
 0x263   :  { %v7319_v37 = vld [vmem:[#allocation7 + $0xe4] ss:$16 sps:$4 sm:$0xff]  }
 0x264   :  { %4510 = vmatpush2.bf16.msra.mxu0 %v7257_v33  ;;  %v4187_v33 = vpop.f32.mrf.mxu1  ;;  %v4184_v59 = vadd.f32 %v7860_v34, %v4141_v56  ;;  %v7528_v34 = vld [vmem:[%s7946_s0 + $0x48] ss:$76 sps:$4 sm:$0xff]  }
 0x265   :  { %4547 = vmatpush1.bf16.msra.mxu1 %v7260_v40  ;;  %4511 = vmatprep.subr.bf16.mxu0 %v7265_v41  ;;  %v7313_v40 = vld [vmem:[#allocation3 + $0x110c] ss:$16 sps:$4 sm:$0xff]   ;;  %v7349_v23 = vld [vmem:[#allocation7 + $0x1a4] ss:$16 sps:$4 sm:$0xff]   ;;  %v7440_v56 = vld [vmem:[#allocation7 + $0x3c0] ss:$16 sps:$4 sm:$0xff]  }
 0x266   :  { %4548 = vmatprep.subr.bf16.mxu1 %v7268_v42  ;;  %v7316_v41 = vld [vmem:[#allocation3 + $0x120c] ss:$16 sps:$4 sm:$0xff]   ;;  %v4188_v42 = vadd.f32 %v4187_v33, %v4145_v28  ;;  %v7442_v61 = vld [vmem:[#allocation7 + $0x3c4] ss:$16 sps:$4 sm:$0xff]   ;;  %v7350_v28 = vld [vmem:[#allocation7 + $0x180] ss:$16 sps:$4 sm:$0xff]  }
 0x267   :  { %v7356_v33 = vld [vmem:[#allocation7 + $0x140] ss:$16 sps:$4 sm:$0xff]  }
 0x268   :  { %4512 = vmatpush2.bf16.msra.mxu0 %v7263_v63  ;;  %v7314_v63 = vld [vmem:[#allocation3 + $0x1208] ss:$16 sps:$4 sm:$0xff]  }
 0x269   :  { %4549 = vmatpush1.bf16.msra.mxu1 %v7266_v46  ;;  %4513 = vmatprep.subr.bf16.mxu0 %v7271_v50  ;;  %v4625_v46 = vmax.f32 %v4188_v42, 0.0  ;;  %v4621_v50 = vmax.f32 %v4184_v59, 0.0  ;;  %v7445_v42 = vld [vmem:[#allocation7 + $0x3a4] ss:$16 sps:$4 sm:$0xff]  }
 0x26a   :  { %4550 = vmatprep.subr.bf16.mxu1 %v7274_v51  ;;  %v7317_v51 = vld [vmem:[#allocation7 + $0xe0] ss:$16 sps:$4 sm:$0xff]   ;;  %v7364_v59 = vld [vmem:[#allocation7 + $0x104] ss:$16 sps:$4 sm:$0xff]  }
 0x26b   :  { %v7905_v53 = vpack.c.bf16 %v4625_v46, %v4621_v50  ;;  %v7367_v46 = vld [vmem:[#allocation7 + $0xec] ss:$16 sps:$4 sm:$0xff]   ;;  %v7446_v50 = vld [vmem:[#allocation7 + $0x380] ss:$16 sps:$4 sm:$0xff]  }
 0x26c   :  { %4514 = vmatpush2.bf16.msra.mxu0 %v7269_v54  ;;  %v7320_v54 = vld [vmem:[#allocation7 + $0xc0] ss:$16 sps:$4 sm:$0xff]  }
 0x26d   :  { %4551 = vmatpush2.bf16.msra.mxu1 %v7272_v55  ;;  %4515 = vmatprep.subr.bf16.mxu0 %v7277_v60  ;;  %v7325_v55 = vld [vmem:[#allocation7 + $0xa4] ss:$16 sps:$4 sm:$0xff]   ;;  %v7323_v60 = vld [vmem:[#allocation7 + $0xa0] ss:$16 sps:$4 sm:$0xff]  }
 0x26e   :  { %4552 = vmatprep.subr.bf16.mxu1 %v7280_v62  ;;  %v7328_v62 = vld [vmem:[#allocation7 + $0x84] ss:$16 sps:$4 sm:$0xff]  }
 0x270   :  { %4516 = vmatpush2.bf16.msra.mxu0 %v7275_v1  ;;  %v7326_v1 = vld [vmem:[#allocation7 + $0x80] ss:$16 sps:$4 sm:$0xff]  }
 0x271   :  { %4553 = vmatpush2.bf16.msra.mxu1 %v7278_v48  ;;  %4517 = vmatprep.subr.bf16.mxu0 %v7283_v35  ;;  %v7331_v48 = vld [vmem:[#allocation7 + $0x64] ss:$16 sps:$4 sm:$0xff]   ;;  %v7416_v35 = vld [vmem:[#allocation7 + $0x2c0] ss:$16 sps:$4 sm:$0xff]  }
 0x272   :  { %4554 = vmatprep.subr.bf16.mxu1 %v7286_v2  ;;  %v7421_v2 = vld [vmem:[#allocation7 + $0x2a4] ss:$16 sps:$4 sm:$0xff]  }
 0x274   :  { %4518 = vmatpush2.bf16.msra.mxu0 %v7281_v6  ;;  %v7419_v6 = vld [vmem:[#allocation7 + $0x2a0] ss:$16 sps:$4 sm:$0xff]  }
 0x275   :  { %4555 = vmatpush2.bf16.msra.mxu1 %v7284_v49  ;;  %4519 = vmatprep.subr.bf16.mxu0 %v7289_v36  ;;  %v7424_v49 = vld [vmem:[#allocation7 + $0x284] ss:$16 sps:$4 sm:$0xff]   ;;  %v7332_v36 = vld [vmem:[#allocation7 + $0x40] ss:$16 sps:$4 sm:$0xff]  }
 0x276   :  { %4556 = vmatprep.subr.bf16.mxu1 %v7292_v9  ;;  %v7337_v9 = vld [vmem:[#allocation7 + $0x24] ss:$16 sps:$4 sm:$0xff]  }
 0x278   :  { %4520 = vmatpush2.bf16.msra.mxu0 %v7287_v12  ;;  %v7340_v12 = vld [vmem:[#allocation7 + $0x4] ss:$16 sps:$4 sm:$0xff]  }
 0x279   :  { %4557 = vmatpush2.bf16.msra.mxu1 %v7290_v57  ;;  %4521 = vmatprep.subr.bf16.mxu0 %v7295_v10  ;;  %v7425_v57 = vld [vmem:[#allocation7 + $0x260] ss:$16 sps:$4 sm:$0xff]   ;;  %v7430_v10 = vld [vmem:[#allocation7 + $0x244] ss:$16 sps:$4 sm:$0xff]  }
 0x27a   :  { %4558 = vmatprep.subr.bf16.mxu1 %v7298_v32  ;;  %v7338_v32 = vld [vmem:[#allocation7] ss:$16 sps:$4 sm:$0xff]  }
 0x27c   :  { %4522 = vmatpush2.bf16.msra.mxu0 %v7293_v58  ;;  %v7341_v58 = vld [vmem:[#allocation7 + $0x1e0] ss:$16 sps:$4 sm:$0xff]  }
 0x27d   :  { %4559 = vmatpush2.bf16.msra.mxu1 %v7296_v43  ;;  %4587 = vmatprep.subr.bf16.mxu0 %v7304_v17  ;;  %v7346_v43 = vld [vmem:[#allocation7 + $0x1c4] ss:$16 sps:$4 sm:$0xff]  }
 0x27e   :  { %4560 = vmatprep.subr.bf16.mxu1 %v7301_v20  ;;  %v7431_v20 = vld [vmem:[#allocation7 + $0x220] ss:$16 sps:$4 sm:$0xff]   ;;  %v7436_v17 = vld [vmem:[#allocation7 + $0x204] ss:$16 sps:$4 sm:$0xff]  }
 0x27f   :  { %4524 = vmatmul.mubr.bf16.vlgmr.msra.gmra.mxu0 %v7526_v29  ;;  %v7355_v29 = vld [vmem:[#allocation7 + $0x164] ss:$16 sps:$4 sm:$0xff]  }
 0x280   :  { %4588 = vmatpush1.bf16.msra.mxu0 %v7302_v27  ;;  %4609 = vmatprep.mubr.bf16.mxu0 %v7642_v39  ;;  %v7527_v39 = vld [vmem:[%s7946_s0 + $0x40] ss:$76 sps:$4 sm:$0xff]   ;;  %v7347_v27 = vld [vmem:[#allocation7 + $0x1a0] ss:$16 sps:$4 sm:$0xff]  }
 0x281   :  { %4561 = vmatpush2.bf16.msra.mxu1 %v7299_v44  ;;  %4589 = vmatprep.subr.bf16.mxu0 %v7310_v25  ;;  %v7439_v44 = vld [vmem:[#allocation7 + $0x3e4] ss:$16 sps:$4 sm:$0xff]   ;;  %v7437_v25 = vld [vmem:[#allocation7 + $0x3e0] ss:$16 sps:$4 sm:$0xff]  }
 0x282   :  { %4562 = vmatprep.subr.bf16.mxu1 %v7307_v21  ;;  %v7352_v21 = vld [vmem:[#allocation7 + $0x184] ss:$16 sps:$4 sm:$0xff]  }
 0x284   :  { %4590 = vmatpush1.bf16.msra.mxu0 %v7308_v30  ;;  %v7358_v30 = vld [vmem:[#allocation7 + $0x144] ss:$16 sps:$4 sm:$0xff]  }
 0x285   :  { %4563 = vmatpush2.bf16.msra.mxu1 %v7305_v19  ;;  %4591 = vmatprep.subr.bf16.mxu0 %v7316_v41  ;;  %v7353_v19 = vld [vmem:[#allocation7 + $0x160] ss:$16 sps:$4 sm:$0xff]  }
 0x286   :  { %4564 = vmatprep.subr.bf16.mxu1 %v7313_v40  ;;  %v7361_v40 = vld [vmem:[#allocation7 + $0x124] ss:$16 sps:$4 sm:$0xff]   ;;  %v7359_v41 = vld [vmem:[#allocation7 + $0x120] ss:$16 sps:$4 sm:$0xff]  }
 0x288   :  { %4592 = vmatpush1.bf16.msra.mxu0 %v7314_v63  ;;  %v7362_v63 = vld [vmem:[#allocation7 + $0x100] ss:$16 sps:$4 sm:$0xff]  }
 0x289   :  { %4565 = vmatpush2.bf16.msra.mxu1 %v7311_v45  ;;  %5422 = vmatprep.subr.bf16.mxu0 %v7319_v37  ;;  %v7443_v45 = vld [vmem:[#allocation7 + $0x3a0] ss:$16 sps:$4 sm:$0xff]   ;;  %v7448_v37 = vld [vmem:[#allocation7 + $0x384] ss:$16 sps:$4 sm:$0xff]  }
 0x28a   :  { %5465 = vmatprep.subr.bf16.mxu1 %v7415_v24  ;;  %v7457_v24 = vld [vmem:[#allocation7 + $0x324] ss:$16 sps:$4 sm:$0xff]  }
 0x28b   :  { %6269 = vmatmul.mubr.msk.bf16.vlgmr.msra.gmra.mxu0 %vm3756_vm0, %v7528_v34  ;;  %v7370_v34 = vld [vmem:[#allocation7 + $0xcc] ss:$16 sps:$4 sm:$0xff]  }
 0x28c   :  { %4567 = vmatmul.mubr.bf16.vlgmr.msra.gmra.mxu1 %v7527_v39  ;;  %5423 = vmatpush1.bf16.msra.mxu0 %v7317_v51  ;;  %v7451_v51 = vld [vmem:[#allocation7 + $0x364] ss:$16 sps:$4 sm:$0xff]   ;;  %v7365_v39 = vld [vmem:[#allocation7 + $0xe8] ss:$16 sps:$4 sm:$0xff]  }
 0x28d   :  { %5454 = vmatprep.mubr.bf16.mxu0 %v7905_v53  ;;  %5424 = vmatprep.subr.bf16.mxu0 %v7322_v52  ;;  %v7449_v52 = vld [vmem:[#allocation7 + $0x360] ss:$16 sps:$4 sm:$0xff]  }
 0x28e   :  { %5466 = vmatpush1.bf16.msra.mxu1 %v7413_v0  ;;  %v7371_v0 = vld [vmem:[#allocation7 + $0xa8] ss:$16 sps:$4 sm:$0xff]  }
 0x28f   :  { %5467 = vmatprep.subr.bf16.mxu1 %v7418_v7  ;;  %v7376_v7 = vld [vmem:[#allocation7 + $0x8c] ss:$16 sps:$4 sm:$0xff]  }
 0x290   :  { %5425 = vmatpush1.bf16.msra.mxu0 %v7320_v54  ;;  %v7368_v54 = vld [vmem:[#allocation7 + $0xc8] ss:$16 sps:$4 sm:$0xff]  }
 0x291   :  { %5426 = vmatprep.subr.bf16.mxu0 %v7325_v55  ;;  %v7454_v55 = vld [vmem:[#allocation7 + $0x344] ss:$16 sps:$4 sm:$0xff]  }
 0x292   :  { %5468 = vmatpush1.bf16.msra.mxu1 %v7416_v35  ;;  %v7460_v35 = vld [vmem:[#allocation7 + $0x304] ss:$16 sps:$4 sm:$0xff]  }
 0x293   :  { %5469 = vmatprep.subr.bf16.mxu1 %v7421_v2  ;;  %v7458_v2 = vld [vmem:[#allocation7 + $0x300] ss:$16 sps:$4 sm:$0xff]  }
 0x294   :  { %5427 = vmatpush1.bf16.msra.mxu0 %v7323_v60  ;;  %v7373_v60 = vld [vmem:[#allocation7 + $0xac] ss:$16 sps:$4 sm:$0xff]  }
 0x295   :  { %5428 = vmatprep.subr.bf16.mxu0 %v7328_v62  ;;  %v7452_v62 = vld [vmem:[#allocation7 + $0x340] ss:$16 sps:$4 sm:$0xff]  }
 0x296   :  { %5470 = vmatpush1.bf16.msra.mxu1 %v7419_v6  ;;  %v7382_v6 = vld [vmem:[#allocation7 + $0x4c] ss:$16 sps:$4 sm:$0xff]  }
 0x297   :  { %5471 = vmatprep.subr.bf16.mxu1 %v7424_v49  ;;  %v7380_v49 = vld [vmem:[#allocation7 + $0x48] ss:$16 sps:$4 sm:$0xff]  }
 0x298   :  { %5429 = vmatpush1.bf16.msra.mxu0 %v7326_v1  ;;  %v7455_v1 = vld [vmem:[#allocation7 + $0x320] ss:$16 sps:$4 sm:$0xff]  }
 0x299   :  { %5430 = vmatprep.subr.bf16.mxu0 %v7331_v48  ;;  %v7374_v48 = vld [vmem:[#allocation7 + $0x88] ss:$16 sps:$4 sm:$0xff]  }
 0x29a   :  { %5472 = vmatpush1.bf16.msra.mxu1 %v7422_v8  ;;  %v7388_v8 = vld [vmem:[#allocation7 + $0xc] ss:$16 sps:$4 sm:$0xff]  }
 0x29b   :  { %5473 = vmatprep.subr.bf16.mxu1 %v7427_v11  ;;  %v7386_v11 = vld [vmem:[#allocation7 + $0x8] ss:$16 sps:$4 sm:$0xff]  }
 0x29c   :  { %5431 = vmatpush1.bf16.msra.mxu0 %v7329_v3  ;;  %v7377_v3 = vld [vmem:[#allocation7 + $0x68] ss:$16 sps:$4 sm:$0xff]  }
 0x29d   :  { %5432 = vmatprep.subr.bf16.mxu0 %v7334_v4  ;;  %v7463_v4 = vld [vmem:[#allocation7 + $0x2ec] ss:$16 sps:$4 sm:$0xff]  }
 0x29e   :  { %5474 = vmatpush1.bf16.msra.mxu1 %v7425_v57  ;;  %v7394_v57 = vld [vmem:[#allocation7 + $0x1cc] ss:$16 sps:$4 sm:$0xff]  }
 0x29f   :  { %5475 = vmatprep.subr.bf16.mxu1 %v7430_v10  ;;  %v7392_v10 = vld [vmem:[#allocation7 + $0x1c8] ss:$16 sps:$4 sm:$0xff]  }
 0x2a0   :  { %5433 = vmatpush1.bf16.msra.mxu0 %v7332_v36  ;;  %v7385_v36 = vld [vmem:[#allocation7 + $0x2c] ss:$16 sps:$4 sm:$0xff]  }
 0x2a1   :  { %5434 = vmatprep.subr.bf16.mxu0 %v7337_v9  ;;  %v7383_v9 = vld [vmem:[#allocation7 + $0x28] ss:$16 sps:$4 sm:$0xff]  }
 0x2a2   :  { %5476 = vmatpush1.bf16.msra.mxu1 %v7428_v15  ;;  %v7400_v15 = vld [vmem:[#allocation7 + $0x18c] ss:$16 sps:$4 sm:$0xff]  }
 0x2a3   :  { %5477 = vmatprep.subr.bf16.mxu1 %v7433_v16  ;;  %v7398_v16 = vld [vmem:[#allocation7 + $0x188] ss:$16 sps:$4 sm:$0xff]  }
 0x2a4   :  { %5435 = vmatpush1.bf16.msra.mxu0 %v7335_v47  ;;  %v7391_v47 = vld [vmem:[#allocation7 + $0x1ec] ss:$16 sps:$4 sm:$0xff]  }
 0x2a5   :  { %5436 = vmatprep.subr.bf16.mxu0 %v7340_v12  ;;  %v7389_v12 = vld [vmem:[#allocation7 + $0x1e8] ss:$16 sps:$4 sm:$0xff]  }
 0x2a6   :  { %5478 = vmatpush1.bf16.msra.mxu1 %v7431_v20  ;;  %v7406_v20 = vld [vmem:[#allocation7 + $0x14c] ss:$16 sps:$4 sm:$0xff]  }
 0x2a7   :  { %5479 = vmatprep.subr.bf16.mxu1 %v7436_v17  ;;  %v7404_v17 = vld [vmem:[#allocation7 + $0x148] ss:$16 sps:$4 sm:$0xff]  }
 0x2a8   :  { %5437 = vmatpush1.bf16.msra.mxu0 %v7338_v32  ;;  %v7397_v32 = vld [vmem:[#allocation7 + $0x1ac] ss:$16 sps:$4 sm:$0xff]  }
 0x2a9   :  { %5438 = vmatprep.subr.bf16.mxu0 %v7343_v14  ;;  %v7395_v14 = vld [vmem:[#allocation7 + $0x1a8] ss:$16 sps:$4 sm:$0xff]  }
 0x2aa   :  { %5480 = vmatpush1.bf16.msra.mxu1 %v7434_v26  ;;  %v7412_v26 = vld [vmem:[#allocation7 + $0x10c] ss:$16 sps:$4 sm:$0xff]  }
 0x2ab   :  { %5481 = vmatprep.subr.bf16.mxu1 %v7439_v44  ;;  %v7410_v44 = vld [vmem:[#allocation7 + $0x108] ss:$16 sps:$4 sm:$0xff]  }
 0x2ac   :  { %5439 = vmatpush2.bf16.msra.mxu0 %v7341_v58  ;;  %v7403_v58 = vld [vmem:[#allocation7 + $0x16c] ss:$16 sps:$4 sm:$0xff]  }
 0x2ad   :  { %5440 = vmatprep.subr.bf16.mxu0 %v7346_v43  ;;  %v7401_v43 = vld [vmem:[#allocation7 + $0x168] ss:$16 sps:$4 sm:$0xff]  }
 0x2ae   :  { %5482 = vmatpush2.bf16.msra.mxu1 %v7437_v25 }
 0x2af   :  { %5483 = vmatprep.subr.bf16.mxu1 %v7442_v61 }
 0x2b0   :  { %5441 = vmatpush2.bf16.msra.mxu0 %v7344_v22  ;;  %v7409_v22 = vld [vmem:[#allocation7 + $0x12c] ss:$16 sps:$4 sm:$0xff]  }
 0x2b1   :  { %5442 = vmatprep.subr.bf16.mxu0 %v7349_v23  ;;  %v7407_v23 = vld [vmem:[#allocation7 + $0x128] ss:$16 sps:$4 sm:$0xff]  }
 0x2b2   :  { %5484 = vmatpush2.bf16.msra.mxu1 %v7440_v56 }
 0x2b3   :  { %5485 = vmatprep.subr.bf16.mxu1 %v7445_v42 }
 0x2b4   :  { %5443 = vmatpush2.bf16.msra.mxu0 %v7347_v27  ;;  %v4224_v27 = vpop.f32.mrf.mxu1 }
 0x2b5   :  { %5444 = vmatprep.subr.bf16.mxu0 %v7352_v21  ;;  %v4267_v21 = vpop.f32.mrf.mxu0 }
 0x2b6   :  { %5486 = vmatpush2.bf16.msra.mxu1 %v7443_v45  ;;  %v4226_v25 = vpop.f32.mrf.mxu1 }
 0x2b7   :  { %5487 = vmatprep.subr.bf16.mxu1 %v7448_v37  ;;  %v4269_v61 = vpop.f32.mrf.mxu0 }
 0x2b8   :  { %5445 = vmatpush2.bf16.msra.mxu0 %v7350_v28  ;;  %v4228_v28 = vpop.f32.mrf.mxu1 }
 0x2b9   :  { %5446 = vmatprep.subr.bf16.mxu0 %v7355_v29  ;;  %v4271_v29 = vpop.f32.mrf.mxu0 }
 0x2ba   :  { %5488 = vmatpush2.bf16.msra.mxu1 %v7446_v50  ;;  %v4230_v56 = vpop.f32.mrf.mxu1 }
 0x2bb   :  { %5489 = vmatprep.subr.bf16.mxu1 %v7451_v51  ;;  %v7919_v51 = vsub.s32 3, %v7743_v13 }
 0x2bc   :  { %5447 = vmatpush2.bf16.msra.mxu0 %v7353_v19  ;;  %v4273_v19 = vpop.f32.mrf.mxu0 }
 0x2bd   :  { %5448 = vmatprep.subr.bf16.mxu0 %v7358_v30  ;;  %v4310_v30 = vpop.f32.mrf.mxu1 }
 0x2be   :  { %5490 = vmatpush2.bf16.msra.mxu1 %v7449_v52  ;;  %v7922_v52 = vsub.s32 2, %v7743_v13 }
 0x2bf   :  { %5491 = vmatprep.subr.bf16.mxu1 %v7454_v55 }
 0x2c0   :  { %5449 = vmatpush2.bf16.msra.mxu0 %v7356_v33  ;;  %v4353_v33 = vpop.f32.mrf.mxu0  ;;  %v712_v55 = vrot.slane %v7879_v5, %v7922_v52 }
 0x2c1   :  { %5450 = vmatprep.subr.bf16.mxu0 %v7361_v40  ;;  %v4312_v40 = vpop.f32.mrf.mxu1 }
 0x2c2   :  { %5492 = vmatpush2.bf16.msra.mxu1 %v7452_v62 }
 0x2c3   :  { %5493 = vmatprep.subr.bf16.mxu1 %v7457_v24  ;;  %v4314_v42 = vpop.f32.mrf.mxu1 }
 0x2c4   :  { %5451 = vmatpush2.bf16.msra.mxu0 %v7359_v41  ;;  %v4355_v41 = vpop.f32.mrf.mxu0 }
 0x2c5   :  { %5452 = vmatprep.subr.bf16.mxu0 %v7364_v59  ;;  %v4316_v45 = vpop.f32.mrf.mxu1 }
 0x2c6   :  { %5494 = vmatpush2.bf16.msra.mxu1 %v7455_v1  ;;  %v4357_v59 = vpop.f32.mrf.mxu0 }
 0x2c7   :  { %5495 = vmatprep.subr.bf16.mxu1 %v7460_v35 }
 0x2c8   :  { %5453 = vmatpush2.bf16.msra.mxu0 %v7362_v63  ;;  %v4359_v63 = vpop.f32.mrf.mxu0 }
 0x2c9   :  { %5508 = vmatprep.subr.bf16.mxu0 %v7367_v46 }
 0x2ca   :  { %5496 = vmatpush2.bf16.msra.mxu1 %v7458_v2 }
 0x2cb   :  { %5455 = vmatmul.mubr.bf16.vlgmr.msra.gmra.mxu0 %v7868_v38  ;;  %5551 = vmatprep.subr.bf16.mxu1 %v7463_v4 }
 0x2cc   :  { %5509 = vmatpush1.bf16.msra.mxu0 %v7365_v39  ;;  %5540 = vmatprep.mubr.bf16.mxu0 %v7905_v53  ;;  %v7379_v53 = vld [vmem:[#allocation7 + $0x6c] ss:$16 sps:$4 sm:$0xff]   ;;  %v4396_v37 = vpop.f32.mrf.mxu1 }
 0x2cd   :  { %5510 = vmatprep.subr.bf16.mxu0 %v7370_v34 }
 0x2ce   :  { %v4398_v50 = vpop.f32.mrf.mxu1 }
 0x2d0   :  { %5511 = vmatpush1.bf16.msra.mxu0 %v7368_v54  ;;  %v4400_v39 = vpop.f32.mrf.mxu1  ;;  %v716_v54 = vrot.slane %v7879_v5, %v7919_v51 }
 0x2d1   :  { %5512 = vmatprep.subr.bf16.mxu0 %v7373_v60 }
 0x2d2   :  { %v4402_v60 = vpop.f32.mrf.mxu1  ;;  %v4227_v24 = vadd.f32 %v4226_v25, %v716_v54 }
 0x2d4   :  { %5513 = vmatpush1.bf16.msra.mxu0 %v7371_v0  ;;  %v4270_v35 = vadd.f32 %v4269_v61, %v4227_v24  ;;  %v7461_v24 = vld [vmem:[#allocation7 + $0x2e8] ss:$16 sps:$4 sm:$0xff]  }
 0x2d5   :  { %5514 = vmatprep.subr.bf16.mxu0 %v7376_v7  ;;  %v4225_v7 = vadd.f32 %v4224_v27, %v712_v55 }
 0x2d8   :  { %5515 = vmatpush1.bf16.msra.mxu0 %v7374_v48  ;;  %v4229_v48 = vadd.f32 %v4228_v28, %v712_v55 }
 0x2d9   :  { %5516 = vmatprep.subr.bf16.mxu0 %v7379_v53  ;;  %v4268_v53 = vadd.f32 %v4267_v21, %v4225_v7 }
 0x2da   :  { %v4272_v4 = vadd.f32 %v4271_v29, %v4229_v48  ;;  %v7464_v48 = vld [vmem:[#allocation7 + $0x2c8] ss:$16 sps:$4 sm:$0xff]  }
 0x2dc   :  { %5517 = vmatpush1.bf16.msra.mxu0 %v7377_v3  ;;  %v4231_v3 = vadd.f32 %v4230_v56, %v716_v54 }
 0x2dd   :  { %5518 = vmatprep.subr.bf16.mxu0 %v7382_v6  ;;  %v4313_v6 = vadd.f32 %v4312_v40, %v4270_v35  ;;  %v7469_v35 = vld [vmem:[#allocation7 + $0x2ac] ss:$16 sps:$4 sm:$0xff]  }
 0x2e0   :  { %5519 = vmatpush1.bf16.msra.mxu0 %v7380_v49  ;;  %v4311_v49 = vadd.f32 %v4310_v30, %v4268_v53  ;;  %v7467_v53 = vld [vmem:[#allocation7 + $0x2a8] ss:$16 sps:$4 sm:$0xff]  }
 0x2e1   :  { %5520 = vmatprep.subr.bf16.mxu0 %v7385_v36  ;;  %v4274_v36 = vadd.f32 %v4273_v19, %v4231_v3  ;;  %v7475_v3 = vld [vmem:[#allocation7 + $0x26c] ss:$16 sps:$4 sm:$0xff]  }
 0x2e4   :  { %5521 = vmatpush1.bf16.msra.mxu0 %v7383_v9  ;;  %v4315_v9 = vadd.f32 %v4314_v42, %v4272_v4  ;;  %v7473_v4 = vld [vmem:[#allocation7 + $0x268] ss:$16 sps:$4 sm:$0xff]  }
 0x2e5   :  { %5522 = vmatprep.subr.bf16.mxu0 %v7388_v8  ;;  %v4356_v8 = vadd.f32 %v4355_v41, %v4313_v6  ;;  %v7478_v6 = vld [vmem:[#allocation7 + $0x24c] ss:$16 sps:$4 sm:$0xff]  }
 0x2e8   :  { %5523 = vmatpush1.bf16.msra.mxu0 %v7386_v11  ;;  %v4354_v11 = vadd.f32 %v4353_v33, %v4311_v49  ;;  %v7476_v49 = vld [vmem:[#allocation7 + $0x248] ss:$16 sps:$4 sm:$0xff]  }
 0x2e9   :  { %5524 = vmatprep.subr.bf16.mxu0 %v7391_v47 }
 0x2ec   :  { %5525 = vmatpush2.bf16.msra.mxu0 %v7389_v12  ;;  %v4317_v12 = vadd.f32 %v4316_v45, %v4274_v36  ;;  %v7481_v36 = vld [vmem:[#allocation7 + $0x22c] ss:$16 sps:$4 sm:$0xff]  }
 0x2ed   :  { %5526 = vmatprep.subr.bf16.mxu0 %v7394_v57  ;;  %v4358_v57 = vadd.f32 %v4357_v59, %v4315_v9  ;;  %v7479_v9 = vld [vmem:[#allocation7 + $0x228] ss:$16 sps:$4 sm:$0xff]  }
 0x2f0   :  { %5527 = vmatpush2.bf16.msra.mxu0 %v7392_v10  ;;  %v4399_v10 = vadd.f32 %v4398_v50, %v4356_v8  ;;  %v7484_v8 = vld [vmem:[#allocation7 + $0x20c] ss:$16 sps:$4 sm:$0xff]  }
 0x2f1   :  { %5528 = vmatprep.subr.bf16.mxu0 %v7397_v32  ;;  %v4397_v32 = vadd.f32 %v4396_v37, %v4354_v11  ;;  %v7482_v11 = vld [vmem:[#allocation7 + $0x208] ss:$16 sps:$4 sm:$0xff]  }
 0x2f4   :  { %5529 = vmatpush2.bf16.msra.mxu0 %v7395_v14  ;;  %v4360_v14 = vadd.f32 %v4359_v63, %v4317_v12  ;;  %v7490_v12 = vld [vmem:[#allocation7 + $0x3cc] ss:$16 sps:$4 sm:$0xff]  }
 0x2f5   :  { %5530 = vmatprep.subr.bf16.mxu0 %v7400_v15  ;;  %v4401_v15 = vadd.f32 %v4400_v39, %v4358_v57  ;;  %v7488_v57 = vld [vmem:[#allocation7 + $0x3c8] ss:$16 sps:$4 sm:$0xff]  }
 0x2f8   :  { %5531 = vmatpush2.bf16.msra.mxu0 %v7398_v16 }
 0x2f9   :  { %5532 = vmatprep.subr.bf16.mxu0 %v7403_v58 }
 0x2fc   :  { %5533 = vmatpush2.bf16.msra.mxu0 %v7401_v43 }
 0x2fd   :  { %5534 = vmatprep.subr.bf16.mxu0 %v7406_v20 }
 0x2ff   :  { %v4439_v46 = vpop.f32.mrf.mxu0 }
 0x300   :  { %5535 = vmatpush2.bf16.msra.mxu0 %v7404_v17  ;;  %v4440_v58 = vadd.f32 %v4439_v46, %v4397_v32  ;;  %v4403_v17 = vadd.f32 %v4402_v60, %v4360_v14  ;;  %v7491_v32 = vld [vmem:[#allocation7 + $0x3a8] ss:$16 sps:$4 sm:$0xff]   ;;  %v7496_v14 = vld [vmem:[#allocation7 + $0x38c] ss:$16 sps:$4 sm:$0xff]  }
 0x301   :  { %5536 = vmatprep.subr.bf16.mxu0 %v7409_v22 }
 0x304   :  { %5537 = vmatpush2.bf16.msra.mxu0 %v7407_v23 }
 0x305   :  { %5538 = vmatprep.subr.bf16.mxu0 %v7412_v26 }
 0x308   :  { %5539 = vmatpush2.bf16.msra.mxu0 %v7410_v44 }
 0x30b   :  { %5541 = vmatmul.mubr.bf16.vlgmr.msra.gmra.mxu0 %v7868_v38  ;;  %v4441_v38 = vpop.f32.mrf.mxu0 }
 0x30c   :  { %v4482_v0 = vpop.f32.mrf.mxu1  ;;  %v4442_v16 = vadd.f32 %v4441_v38, %v4399_v10  ;;  %v7493_v10 = vld [vmem:[#allocation7 + $0x3ac] ss:$16 sps:$4 sm:$0xff]  }
 0x30d   :  { %v4443_v34 = vpop.f32.mrf.mxu0  ;;  %v4483_v26 = vadd.f32 %v4482_v0, %v4440_v58  ;;  %v7497_v58 = vld [vmem:[#allocation7 + $0x368] ss:$16 sps:$4 sm:$0xff]  }
 0x30e   :  { %v4484_v2 = vpop.f32.mrf.mxu1  ;;  %v4444_v22 = vadd.f32 %v4443_v34, %v4401_v15  ;;  %v7494_v15 = vld [vmem:[#allocation7 + $0x388] ss:$16 sps:$4 sm:$0xff]  }
 0x30f   :  { %v4445_v62 = vpop.f32.mrf.mxu0  ;;  %v4485_v23 = vadd.f32 %v4484_v2, %v4442_v16  ;;  %v7472_v2 = vld [vmem:[#allocation7 + $0x28c] ss:$16 sps:$4 sm:$0xff]  }
 0x310   :  { %v4486_v5 = vpop.f32.mrf.mxu1  ;;  %v4446_v21 = vadd.f32 %v4445_v62, %v4403_v17  ;;  %v7499_v16 = vld [vmem:[#allocation7 + $0x36c] ss:$16 sps:$4 sm:$0xff]  }
 0x311   :  { %v4487_v25 = vadd.f32 %v4486_v5, %v4444_v22  ;;  %v7487_v5 = vld [vmem:[#allocation7 + $0x3ec] ss:$16 sps:$4 sm:$0xff]   ;;  %v7503_v22 = vld [vmem:[#allocation7 + $0x328] ss:$16 sps:$4 sm:$0xff]  }
 0x312   :  { %v4488_v43 = vpop.f32.mrf.mxu1  ;;  %v7505_v17 = vld [vmem:[#allocation7 + $0x32c] ss:$16 sps:$4 sm:$0xff]  }
 0x313   :  { %v4489_v19 = vadd.f32 %v4488_v43, %v4446_v21  ;;  %v7502_v43 = vld [vmem:[#allocation7 + $0x34c] ss:$16 sps:$4 sm:$0xff]  }
 0x33f   :  { %v4525_v1 = vpop.f32.mrf.mxu0 }
 0x340   :  { %v4526_v28 = vadd.f32 %v4525_v1, %v4483_v26  ;;  %v7466_v1 = vld [vmem:[#allocation7 + $0x2cc] ss:$16 sps:$4 sm:$0xff]   ;;  %v7506_v26 = vld [vmem:[#allocation7 + $0x308] ss:$16 sps:$4 sm:$0xff]  }
 0x341   :  { %v4527_v13 = vpop.f32.mrf.mxu0 }
 0x342   :  { %v4528_v61 = vadd.f32 %v4527_v13, %v4485_v23  ;;  %v7470_v13 = vld [vmem:[#allocation7 + $0x288] ss:$16 sps:$4 sm:$0xff]   ;;  %v7508_v23 = vld [vmem:[#allocation7 + $0x30c] ss:$16 sps:$4 sm:$0xff]  }
 0x343   :  { %v4529_v47 = vpop.f32.mrf.mxu0 }
 0x344   :  { %v4530_v30 = vadd.f32 %v4529_v47, %v4487_v25  ;;  %v7485_v47 = vld [vmem:[#allocation7 + $0x3e8] ss:$16 sps:$4 sm:$0xff]  }
 0x345   :  { %v4531_v20 = vpop.f32.mrf.mxu0 }
 0x346   :  { %v4532_v59 = vadd.f32 %v4531_v20, %v4489_v19  ;;  %v7500_v20 = vld [vmem:[#allocation7 + $0x348] ss:$16 sps:$4 sm:$0xff]  }
 0x34b   :  { %v4611_v27 = vpop.f32.mrf.mxu0 }
 0x34c   :  { %v4568_v44 = vpop.f32.mrf.mxu1 }
 0x34d   :  { %v4613_v56 = vpop.f32.mrf.mxu0  ;;  %v4569_v40 = vadd.f32 %v4568_v44, %v4526_v28 }
 0x34e   :  { %v4570_v29 = vpop.f32.mrf.mxu1 }
 0x34f   :  { %v4571_v33 = vadd.f32 %v4570_v29, %v4528_v61  ;;  %v4615_v42 = vpop.f32.mrf.mxu0  ;;  %v4612_v38 = vadd.f32 %v4611_v27, %v4569_v40  ;;  %v4760_v61 = vld [vmem:[#allocation8] sm:$0xf] }
 0x350   :  { %v4572_v41 = vpop.f32.mrf.mxu1  ;;  %v4769_v28 = vrot.slane %v4760_v61, %v7877_v31  ;;  %v4765_v19 = vrot.slane %v4760_v61, %v7746_v18 }
 0x351   :  { %v4573_v45 = vadd.f32 %v4572_v41, %v4530_v30  ;;  %v4614_v37 = vadd.f32 %v4613_v56, %v4571_v33  ;;  %v4617_v39 = vpop.f32.mrf.mxu0  ;;  %v4622_v62 = vmax.f32 %v4612_v38, 0.0 }
 0x352   :  { %v4574_v63 = vpop.f32.mrf.mxu1 }
 0x353   :  { %v4616_v46 = vadd.f32 %v4615_v42, %v4573_v45  ;;  %v4575_v50 = vadd.f32 %v4574_v63, %v4532_v59  ;;  %v4623_v55 = vmax.f32 %v4614_v37, 0.0 }
 0x355   :  { %v4618_v34 = vadd.f32 %v4617_v39, %v4575_v50  ;;  %v4626_v54 = vmax.f32 %v4616_v46, 0.0  ;;  %v4773_v46 = vrot.slane %v4760_v61, %v7922_v52  ;;  %v5602_v50 = vld [vmem:[#allocation10] sm:$0xf] }
 0x357   :  { %v4627_v60 = vmax.f32 %v4618_v34, 0.0  ;;  %v7928_v7 = vpack.c.bf16 %v4626_v54, %v4622_v62  ;;  %v5611_v34 = vrot.slane %v5602_v50, %v7877_v31  ;;  %v4777_v54 = vrot.slane %v4760_v61, %v7919_v51 }
 0x359   :  { %v4631_v0 = vpack.c.bf16 %v4627_v60, %v4623_v55 }
 0x35b   :  { %5497 = vmatprep.mubr.bf16.mxu1 %v4631_v0 }
 0x35c   :  { %5498 = vmatmul.mubr.bf16.vlgmr.msra.gmra.mxu1 %v7928_v7 }
 0x35d   :  { %5552 = vmatpush1.bf16.msra.mxu1 %v7461_v24  ;;  %5583 = vmatprep.mubr.bf16.mxu1 %v4631_v0  ;;  %v5607_v0 = vrot.slane %v5602_v50, %v7746_v18 }
 0x35e   :  { %5553 = vmatprep.subr.bf16.mxu1 %v7466_v1 }
 0x361   :  { %5554 = vmatpush1.bf16.msra.mxu1 %v7464_v48 }
 0x362   :  { %5555 = vmatprep.subr.bf16.mxu1 %v7469_v35 }
 0x365   :  { %5556 = vmatpush1.bf16.msra.mxu1 %v7467_v53 }
 0x366   :  { %5557 = vmatprep.subr.bf16.mxu1 %v7472_v2 }
 0x369   :  { %5558 = vmatpush1.bf16.msra.mxu1 %v7470_v13 }
 0x36a   :  { %5559 = vmatprep.subr.bf16.mxu1 %v7475_v3  ;;  %v5615_v3 = vrot.slane %v5602_v50, %v7922_v52 }
 0x36d   :  { %5560 = vmatpush1.bf16.msra.mxu1 %v7473_v4 }
 0x36e   :  { %5561 = vmatprep.subr.bf16.mxu1 %v7478_v6 }
 0x371   :  { %5562 = vmatpush1.bf16.msra.mxu1 %v7476_v49 }
 0x372   :  { %5563 = vmatprep.subr.bf16.mxu1 %v7481_v36 }
 0x375   :  { %5564 = vmatpush1.bf16.msra.mxu1 %v7479_v9 }
 0x376   :  { %5565 = vmatprep.subr.bf16.mxu1 %v7484_v8  ;;  %v5619_v8 = vrot.slane %v5602_v50, %v7919_v51 }
 0x379   :  { %5566 = vmatpush1.bf16.msra.mxu1 %v7482_v11 }
 0x37a   :  { %5567 = vmatprep.subr.bf16.mxu1 %v7487_v5 }
 0x37d   :  { %5568 = vmatpush2.bf16.msra.mxu1 %v7485_v47 }
 0x37e   :  { %5569 = vmatprep.subr.bf16.mxu1 %v7490_v12 }
 0x381   :  { %5570 = vmatpush2.bf16.msra.mxu1 %v7488_v57 }
 0x382   :  { %5571 = vmatprep.subr.bf16.mxu1 %v7493_v10 }
 0x385   :  { %5572 = vmatpush2.bf16.msra.mxu1 %v7491_v32 }
 0x386   :  { %5573 = vmatprep.subr.bf16.mxu1 %v7496_v14 }
 0x389   :  { %5574 = vmatpush2.bf16.msra.mxu1 %v7494_v15 }
 0x38a   :  { %5575 = vmatprep.subr.bf16.mxu1 %v7499_v16 }
 0x38b   :  { %v5456_v44 = vpop.f32.mrf.mxu0 }
 0x38c   :  { %v5457_v41 = vadd.f32 %v5456_v44, %v4765_v19  ;;  %v6398_v44 = vld [vmem:[#allocation2] ss:$0 sm:$0xff] }
 0x38d   :  { %5576 = vmatpush2.bf16.msra.mxu1 %v7497_v58  ;;  %v5458_v27 = vpop.f32.mrf.mxu0 }
 0x38e   :  { %5577 = vmatprep.subr.bf16.mxu1 %v7502_v43  ;;  %v5459_v33 = vadd.f32 %v5458_v27, %v4769_v28 }
 0x38f   :  { %v5460_v25 = vpop.f32.mrf.mxu0 }
 0x390   :  { %v5461_v38 = vadd.f32 %v5460_v25, %v4765_v19 }
 0x391   :  { %5578 = vmatpush2.bf16.msra.mxu1 %v7500_v20  ;;  %v5462_v56 = vpop.f32.mrf.mxu0 }
 0x392   :  { %5579 = vmatprep.subr.bf16.mxu1 %v7505_v17  ;;  %v5463_v37 = vadd.f32 %v5462_v56, %v4769_v28 }
 0x395   :  { %5580 = vmatpush2.bf16.msra.mxu1 %v7503_v22 }
 0x396   :  { %5581 = vmatprep.subr.bf16.mxu1 %v7508_v23 }
 0x399   :  { %5582 = vmatpush2.bf16.msra.mxu1 %v7506_v26 }
 0x39c   :  { %5584 = vmatmul.mubr.bf16.vlgmr.msra.gmra.mxu1 %v7928_v7 }
 0x3cb   :  { %v5542_v30 = vpop.f32.mrf.mxu0 }
 0x3cc   :  { %v5543_v7 = vadd.f32 %v5542_v30, %v4773_v46 }
 0x3cd   :  { %v5544_v59 = vpop.f32.mrf.mxu0 }
 0x3ce   :  { %v5545_v35 = vadd.f32 %v5544_v59, %v4777_v54 }
 0x3cf   :  { %v5546_v55 = vpop.f32.mrf.mxu0 }
 0x3d0   :  { %v5547_v49 = vadd.f32 %v5546_v55, %v4773_v46 }
 0x3d1   :  { %v5548_v53 = vpop.f32.mrf.mxu0 }
 0x3d2   :  { %v5549_v11 = vadd.f32 %v5548_v53, %v4777_v54 }
 0x41c   :  { %v5499_v21 = vpop.f32.mrf.mxu1 }
 0x41d   :  { %v5500_v45 = vadd.f32 %v5499_v21, %v5457_v41 }
 0x41e   :  { %v5501_v29 = vpop.f32.mrf.mxu1 }
 0x41f   :  { %v5502_v42 = vadd.f32 %v5501_v29, %v5459_v33  ;;  %v5594_v62 = vmax.f32 %v5500_v45, 0.0 }
 0x420   :  { %v5503_v40 = vpop.f32.mrf.mxu1 }
 0x421   :  { %v5595_v39 = vmax.f32 %v5502_v42, 0.0  ;;  %v5504_v24 = vadd.f32 %v5503_v40, %v5461_v38  ;;  %v5624_v4 = vmul.f32 %v5607_v0, %v5594_v62 }
 0x422   :  { %v5505_v63 = vpop.f32.mrf.mxu1 }
 0x423   :  { %v5506_v60 = vadd.f32 %v5505_v63, %v5463_v37  ;;  %v5625_v1 = vmul.f32 %v5611_v34, %v5595_v39  ;;  %v5598_v6 = vmax.f32 %v5504_v24, 0.0 }
 0x425   :  { %v5599_v2 = vmax.f32 %v5506_v60, 0.0  ;;  %v5632_v5 = vadd.f32 %v5625_v1, %v5624_v4  ;;  %v5628_v32 = vmul.f32 %v5607_v0, %v5598_v6 }
 0x427   :  { %v5629_v47 = vmul.f32 %v5611_v34, %v5599_v2 }
 0x429   :  { %v5637_v43 = vadd.f32 %v5629_v47, %v5628_v32 }
 0x45c   :  { %v5585_v48 = vpop.f32.mrf.mxu1 }
 0x45d   :  { %v5586_v13 = vadd.f32 %v5585_v48, %v5543_v7 }
 0x45e   :  { %v5587_v31 = vpop.f32.mrf.mxu1 }
 0x45f   :  { %v5596_v36 = vmax.f32 %v5586_v13, 0.0  ;;  %v5588_v9 = vadd.f32 %v5587_v31, %v5545_v35 }
 0x460   :  { %v5589_v18 = vpop.f32.mrf.mxu1 }
 0x461   :  { %v5626_v12 = vmul.f32 %v5615_v3, %v5596_v36  ;;  %v5597_v57 = vmax.f32 %v5588_v9, 0.0  ;;  %v5590_v10 = vadd.f32 %v5589_v18, %v5547_v49 }
 0x462   :  { %v5591_v14 = vpop.f32.mrf.mxu1 }
 0x463   :  { %v5600_v15 = vmax.f32 %v5590_v10, 0.0  ;;  %v5592_v16 = vadd.f32 %v5591_v14, %v5549_v11  ;;  %v5627_v52 = vmul.f32 %v5619_v8, %v5597_v57  ;;  %v5633_v58 = vadd.f32 %v5632_v5, %v5626_v12 }
 0x465   :  { %v5630_v20 = vmul.f32 %v5615_v3, %v5600_v15  ;;  %v5601_v17 = vmax.f32 %v5592_v16, 0.0  ;;  %v5634_v22 = vadd.f32 %v5633_v58, %v5627_v52 }
 0x467   :  { %v5631_v23 = vmul.f32 %v5619_v8, %v5601_v17  ;;  %5635 = vadd.xlane.f32.xlu0 %v5634_v22  ;;  %v5638_v51 = vadd.f32 %v5637_v43, %v5630_v20 }
 0x469   :  { %v5639_v26 = vadd.f32 %v5638_v51, %v5631_v23 }
 0x46b   :  { %5640 = vadd.xlane.f32.xlu0 %v5639_v26 }
 0x4f0   :  { %v5636_v27 = vpop.xlane.xlu0 %5635 }
 0x4f1   :  { %v5649_v21 = vadd.f32 %v6398_v44, %v5636_v27 }
 0x4f3   :  { %5652 = vst.msk [vmem:[%s7953_s7] sm:$0xff] %vm5651_vm1, %v5649_v21 }
 0x4f4   :  { %v5641_v25 = vpop.xlane.xlu0 %5640 }
 0x4f5   :  { %v5650_v61 = vadd.f32 %v6398_v44, %v5641_v25 }
 0x4f7   :  { %5653 = vst.msk [vmem:[%s7953_s7 + $0x8] sm:$0xff] %vm5651_vm1, %v5650_v61 }
 0x4f8   :  { %5658 = vsyncpa [#allocation4], 1 }
 0x4f9   :  { %5659 = vsyncpa [#allocation6], 1 }
 0x4fa   :  { %5660 = vsyncpa [#allocation9], 1 }

</bundles_post_ra>
